<compile_context>
chip_gen: v7x
topology: tpu7x:2x2x1
jax: 0.10.0
libtpu: 0.0.40
codegen_flags: <defaults>
</compile_context>

<pallas_src>
import functools
import math

import jax
import jax.numpy as jnp
from jax.experimental import pallas as pl
from jax.experimental.pallas import tpu as pltpu

# ----------------------------- constants (from FSIM_base.__init__) -------------
NSCALE = 4
NORIENT = 4
K_CONST = 2.0
EPSILON = 1e-4
T1, T2, T3, T4 = 0.85, 160.0, 200.0, 200.0
LAMBDAC = 0.03
MIN_WAVELENGTH = 6
MULT = 2
SIGMA_ONF = 0.55
D_THETA_ON_SIGMA = 1.2
THETA_SIGMA = math.pi / NORIENT / D_THETA_ON_SIGMA
DEN = 2.0 * math.log(SIGMA_ONF) ** 2

_MIB = 1 << 20


# ----------------------------- tiling / compiler-param helpers -----------------
def _vmem_capacity_bytes():
    try:
        return int(pltpu.get_tpu_info().vmem_capacity_bytes)
    except Exception:  # pragma: no cover - conservative (v7x-sized) fallback
        return 64 * _MIB


def _pick_row_tile(H, io_bytes_per_row):
    """Largest row tile (multiple of 8, or the full height) whose double-buffered
    I/O fits ~1/4 of physical VMEM.  The explicit vmem_limit_bytes still bounds
    the compiler, so a generous streaming budget is safe and keeps HBM-bound
    kernels close to the roofline (bigger tiles amortize the ~0.35us/step cost)."""
    budget = max(4 * _MIB, _vmem_capacity_bytes() // 4)
    if H <= 8 or H * io_bytes_per_row <= budget:
        return H
    for cand in (1024, 512, 256, 128, 64, 32, 16, 8):
        if cand <= H and cand * io_bytes_per_row <= budget:
            return cand
    return 8


def _compiler_params(semantics, block_bytes):
    # Generation-aware scoped-VMEM limit: request what the (double-buffered)
    # blocks need plus headroom, with a floor so big frames compile, clamped a
    # little under the physical VMEM of the part we are running on.
    cap = _vmem_capacity_bytes()
    want = 2 * block_bytes + 8 * _MIB
    floor_ = min(48 * _MIB, (cap * 3) // 4)
    limit = int(min(max(want, floor_), cap - 8 * _MIB))
    return pltpu.CompilerParams(dimension_semantics=semantics,
                                vmem_limit_bytes=limit)


# ----------------------------- Pallas kernel 1: RGB -> YIQ ---------------------
def _yiq_kernel(img_ref, y_ref, i_ref, q_ref):
    r = img_ref[0, 0, :, :]
    g = img_ref[0, 1, :, :]
    b = img_ref[0, 2, :, :]
    y_ref[0] = 0.299 * r + 0.587 * g + 0.114 * b
    i_ref[0] = 0.596 * r - 0.274 * g - 0.322 * b
    q_ref[0] = 0.211 * r - 0.523 * g + 0.312 * b


def rgb_to_yiq(img):
    B, C, H, W = img.shape
    assert C == 3, "FSIMc kernel expects 3-channel RGB input"
    io_bytes_per_row = (3 + 3) * W * 4 * 2            # (in + 3 outs) double-buffered
    TH = _pick_row_tile(H, io_bytes_per_row)
    R = pl.cdiv(H, TH)
    out_sds = jax.ShapeDtypeStruct((B, H, W), jnp.float32)
    out_spec = pl.BlockSpec((1, TH, W), lambda b, r: (b, r, 0))
    block_bytes = (3 + 3) * TH * W * 4
    y, i, q = pl.pallas_call(
        _yiq_kernel,
        out_shape=(out_sds, out_sds, out_sds),
        grid=(B, R),
        in_specs=[pl.BlockSpec((1, 3, TH, W), lambda b, r: (b, 0, r, 0))],
        out_specs=(out_spec, out_spec, out_spec),
        compiler_params=_compiler_params(("parallel", "parallel"), block_bytes),
    )(img)
    return y, i, q


# ----------------------------- Pallas kernel 2: phase-congruency energy --------
def _pc_energy_kernel(t_ref, e_ref, o_ref, pc_ref, energy_acc, an_acc, *, S):
    # t_ref: (B, NORIENT) f32 in SMEM (scalar prefetch)
    # e_ref/o_ref: (1, 1, S, TH, W) blocks of one orientation
    b = pl.program_id(0)
    ori = pl.program_id(2)

    @pl.when(ori == 0)
    def _():
        energy_acc[...] = jnp.zeros_like(energy_acc)
        an_acc[...] = jnp.zeros_like(an_acc)

    # pass 1 over scales: per-orientation sums (only (TH, W) temporaries live)
    sum_e = sum_o = sum_an = None
    for s in range(S):
        e = e_ref[0, 0, s, :, :]
        oo = o_ref[0, 0, s, :, :]
        an = jnp.sqrt(e * e + oo * oo)
        sum_e = e if sum_e is None else sum_e + e
        sum_o = oo if sum_o is None else sum_o + oo
        sum_an = an if sum_an is None else sum_an + an
    # 1/xen via the EUP reciprocal (free slot; VPU is the binding unit here)
    inv_xen = pl.reciprocal(jnp.sqrt(sum_e * sum_e + sum_o * sum_o) + EPSILON,
                            approx=True)
    mean_e = sum_e * inv_xen
    mean_o = sum_o * inv_xen
    # pass 2 over scales: Energy accumulation (re-reads VMEM-resident planes)
    energy = None
    for s in range(S):
        e = e_ref[0, 0, s, :, :]
        oo = o_ref[0, 0, s, :, :]
        c = e * mean_e + oo * mean_o - jnp.abs(e * mean_o - oo * mean_e)
        energy = c if energy is None else energy + c
    energy_acc[...] += jnp.maximum(energy - t_ref[b, ori], 0.0)
    an_acc[...] += sum_an

    @pl.when(ori == pl.num_programs(2) - 1)
    def _():
        pc_ref[0] = energy_acc[...] / an_acc[...]


def pc_energy(E, O, T):
    """E, O: (B, NORIENT, NSCALE, H, W) float32; T: (B, NORIENT) float32."""
    B, Ori, S, H, W = E.shape
    # per-step traffic: E + O blocks of one orientation + pc out, double-buffered
    io_bytes_per_row = (2 * S + 1) * W * 4 * 2
    TH = _pick_row_tile(H, io_bytes_per_row)
    R = pl.cdiv(H, TH)
    eo_spec = pl.BlockSpec((1, 1, S, TH, W), lambda b, r, o, *_: (b, o, 0, r, 0))
    grid_spec = pltpu.PrefetchScalarGridSpec(
        num_scalar_prefetch=1,
        grid=(B, R, Ori),
        in_specs=[eo_spec, eo_spec],
        out_specs=pl.BlockSpec((1, TH, W), lambda b, r, o, *_: (b, r, 0)),
        scratch_shapes=[pltpu.VMEM((TH, W), jnp.float32),
                        pltpu.VMEM((TH, W), jnp.float32)])
    block_bytes = (2 * S + 1 + 2) * TH * W * 4
    return pl.pallas_call(
        functools.partial(_pc_energy_kernel, S=S),
        out_shape=jax.ShapeDtypeStruct((B, H, W), jnp.float32),
        grid_spec=grid_spec,
        compiler_params=_compiler_params(("parallel", "parallel", "arbitrary"),
                                         block_bytes),
    )(T, E, O)


# ----------------------------- Pallas kernel 3: gradients + FSIMc combine ------
def _cols_left(x):   # x[:, j+1]; zero past the right image edge
    h, w = x.shape
    c = jax.lax.broadcasted_iota(jnp.int32, (h, w), 1)
    return jnp.where(c < w - 1, pltpu.roll(x, w - 1, axis=1), 0.0)


def _cols_right(x):  # x[:, j-1]; zero past the left image edge
    h, w = x.shape
    c = jax.lax.broadcasted_iota(jnp.int32, (h, w), 1)
    return jnp.where(c >= 1, pltpu.roll(x, 1, axis=1), 0.0)


def _rows_down(x, prev_row):  # x[i-1, :]; row 0 comes from the halo row above
    h, w = x.shape
    r = jax.lax.broadcasted_iota(jnp.int32, (h, w), 0)
    return jnp.where(r == 0, prev_row, pltpu.roll(x, 1, axis=0))


def _rows_up(x, next_row):    # x[i+1, :]; last row comes from the halo row below
    h, w = x.shape
    r = jax.lax.broadcasted_iota(jnp.int32, (h, w), 0)
    return jnp.where(r == h - 1, next_row, pltpu.roll(x, h - 1, axis=0))


def _scharr_gradient(y, y_prev, y_next):
    # Separable form of the reference conv2d(dx/dy, padding=1):
    #   IxY = (3*hx[i-1] + 10*hx[i] + 3*hx[i+1]) / 16,  hx = y[:,j+1] - y[:,j-1]
    #   IyY = (hy[i+1] - hy[i-1]) / 16,  hy = 3*y[:,j-1] + 10*y + 3*y[:,j+1]
    # Shifts are XLU rolls + boundary masks; the +/-1-row halo across row tiles
    # comes from y_prev / y_next (zeros at the true image border).
    hx = _cols_left(y) - _cols_right(y)
    hx_p = _cols_left(y_prev) - _cols_right(y_prev)
    hx_n = _cols_left(y_next) - _cols_right(y_next)
    ix = (3.0 * _rows_down(hx, hx_p) + 10.0 * hx
          + 3.0 * _rows_up(hx, hx_n)) * (1.0 / 16.0)
    hy = 3.0 * _cols_right(y) + 10.0 * y + 3.0 * _cols_left(y)
    hy_p = 3.0 * _cols_right(y_prev) + 10.0 * y_prev + 3.0 * _cols_left(y_prev)
    hy_n = 3.0 * _cols_right(y_next) + 10.0 * y_next + 3.0 * _cols_left(y_next)
    iy = (_rows_up(hy, hy_n) - _rows_down(hy, hy_p)) * (1.0 / 16.0)
    return jnp.sqrt(ix * ix + iy * iy)


def _fsimc_kernel(y1_ref, y1p_ref, y1n_ref, y2_ref, y2p_ref, y2n_ref,
                  pc1_ref, pc2_ref, i1_ref, q1_ref, i2_ref, q2_ref,
                  num_ref, den_ref, *, TH, H, HALO):
    r = pl.program_id(1)
    W = y1_ref.shape[-1]

    row = jax.lax.broadcasted_iota(jnp.int32, (TH, W), 0)
    valid = (r * TH + row) < H                 # mask pad rows of a partial last tile
    have_prev = r > 0
    have_next = (r + 1) * TH < H

    def halo_rows(p_ref, n_ref):
        p = jnp.where(have_prev, p_ref[0, HALO - 1:HALO, :], 0.0)
        n = jnp.where(have_next, n_ref[0, 0:1, :], 0.0)
        return p, n

    y1 = jnp.where(valid, y1_ref[0], 0.0)
    y2 = jnp.where(valid, y2_ref[0], 0.0)
    p1, n1 = halo_rows(y1p_ref, y1n_ref)
    p2, n2 = halo_rows(y2p_ref, y2n_ref)

    g1 = _scharr_gradient(y1, p1, n1)
    g2 = _scharr_gradient(y2, p2, n2)
    gsim = (2.0 * g1 * g2 + T2) / (g1 * g1 + g2 * g2 + T2)

    pc1 = pc1_ref[0]
    pc2 = pc2_ref[0]
    pcsim = (2.0 * pc1 * pc2 + T1) / (pc1 * pc1 + pc2 * pc2 + T1)
    pcm = jnp.where(pc1 > pc2, pc1, pc2)

    i1 = i1_ref[0]
    i2 = i2_ref[0]
    q1 = q1_ref[0]
    q2 = q2_ref[0]
    isim = (2.0 * i1 * i2 + T3) / (i1 * i1 + i2 * i2 + T3)
    qsim = (2.0 * q1 * q2 + T4) / (q1 * q1 + q2 * q2 + T4)

    # |ISim*QSim| ** lambdac  (exp/log form == pow for non-negative base)
    chroma = jnp.exp(LAMBDAC * jnp.log(jnp.abs(isim * qsim)))
    simc = gsim * pcsim * chroma * pcm

    # lane-dense partial row-sums; the tiny (B, R, 1, W) outputs are reduced in glue
    num_ref[0, 0] = jnp.sum(jnp.where(valid, simc, 0.0), axis=0, keepdims=True)
    den_ref[0, 0] = jnp.sum(jnp.where(valid, pcm, 0.0), axis=0, keepdims=True)


def fsimc_combine(Y1, Y2, PC1, PC2, I1, Q1, I2, Q2):
    B, H, W = Y1.shape
    io_bytes_per_row = 8 * W * 4 * 2                   # 8 maps, double-buffered
    TH = _pick_row_tile(H, io_bytes_per_row)           # multiple of 8, or TH == H
    R = pl.cdiv(H, TH)
    HALO = min(8, H)                                   # halo block height
    HB = pl.cdiv(H, HALO)                              # number of halo blocks in H
    THB = max(TH // HALO, 1)                           # row tile in halo-block units

    tile_spec = pl.BlockSpec((1, TH, W), lambda b, r: (b, r, 0))
    prev_spec = pl.BlockSpec((1, HALO, W),
                             lambda b, r: (b, jnp.maximum(r * THB - 1, 0), 0))
    next_spec = pl.BlockSpec((1, HALO, W),
                             lambda b, r: (b, jnp.minimum((r + 1) * THB, HB - 1), 0))
    out_spec = pl.BlockSpec((1, 1, 1, W), lambda b, r: (b, r, 0, 0))

    block_bytes = (8 * TH + 4 * HALO + 2) * W * 4
    kernel = functools.partial(_fsimc_kernel, TH=TH, H=H, HALO=HALO)
    num, den = pl.pallas_call(
        kernel,
        out_shape=(jax.ShapeDtypeStruct((B, R, 1, W), jnp.float32),
                   jax.ShapeDtypeStruct((B, R, 1, W), jnp.float32)),
        grid=(B, R),
        in_specs=[tile_spec, prev_spec, next_spec,      # Y1 tile + 8-row halos
                  tile_spec, prev_spec, next_spec,      # Y2 tile + 8-row halos
                  tile_spec, tile_spec,                 # PC1, PC2
                  tile_spec, tile_spec, tile_spec, tile_spec],   # I1, Q1, I2, Q2
        out_specs=(out_spec, out_spec),
        compiler_params=_compiler_params(("parallel", "parallel"), block_bytes),
    )(Y1, Y1, Y1, Y2, Y2, Y2, PC1, PC2, I1, Q1, I2, Q2)
    num_b = jnp.sum(num, axis=(1, 2, 3))
    den_b = jnp.sum(den, axis=(1, 2, 3))
    return jnp.mean(num_b / den_b)


# ----------------------------- JAX glue: log-Gabor filters & FFT ---------------
def _freq_range(n):
    if n % 2:
        return jnp.arange(-(n - 1) / 2.0, (n - 1) / 2.0 + 1.0, dtype=jnp.float32) / (n - 1)
    return jnp.arange(-n / 2.0, n / 2.0, dtype=jnp.float32) / n


def _log_gabor_filters(H, W):
    xr = _freq_range(W)
    yr = _freq_range(H)
    x = jnp.broadcast_to(xr[None, :], (H, W))
    y = jnp.broadcast_to(yr[:, None], (H, W))
    radius = jnp.sqrt(x * x + y * y)
    theta = jnp.arctan2(-y, x)
    radius_s = jnp.fft.ifftshift(radius)
    theta_s = jnp.fft.ifftshift(theta)
    radius_s = radius_s.at[0, 0].set(1.0)

    # low-pass filter
    cutoff, n = 0.45, 15
    lp = jnp.fft.ifftshift(1.0 / (1.0 + (radius / cutoff) ** (2 * n)))

    fo = 1.0 / (MIN_WAVELENGTH * (float(MULT) ** jnp.arange(NSCALE, dtype=jnp.float32)))
    logGabor = jnp.exp(-(jnp.log(radius_s[None] / fo[:, None, None])) ** 2 / DEN)
    logGabor = logGabor * lp[None]
    logGabor = logGabor.at[:, 0, 0].set(0.0)

    angl = jnp.arange(NORIENT, dtype=jnp.float32) / NORIENT * math.pi
    sinth, costh = jnp.sin(theta_s), jnp.cos(theta_s)
    ds = sinth[None] * jnp.cos(angl)[:, None, None] - costh[None] * jnp.sin(angl)[:, None, None]
    dc = costh[None] * jnp.cos(angl)[:, None, None] + sinth[None] * jnp.sin(angl)[:, None, None]
    dtheta = jnp.abs(jnp.arctan2(ds, dc))
    spread = jnp.exp(-(dtheta ** 2) / (2.0 * THETA_SIGMA ** 2))

    return logGabor[:, None] * spread[None]   # (S, O, H, W)


def phasecong2(Y):
    """Y: (B, H, W). Returns phase-congruency map (B, H, W)."""
    B, H, W = Y.shape
    # TODO(synk): 2-D FFT / IFFT log-Gabor filtering has no Pallas equivalent (jnp.fft glue).
    filt = _log_gabor_filters(H, W)                               # (S, O, H, W)
    iff = jnp.real(jnp.fft.ifft2(filt)) * math.sqrt(H * W)        # ifftFilterArray

    imfft = jnp.fft.fft2(Y)                                       # (B, H, W) complex
    # (B, O, S, H, W) layout so the Pallas kernel can block one orientation per step
    filt_os = jnp.transpose(filt, (1, 0, 2, 3))                   # (O, S, H, W)
    EO = jnp.fft.ifft2(filt_os[None] * imfft[:, None, None])      # (B, O, S, H, W)
    # TODO(synk): E/O could be streamed as bf16 to halve HBM traffic into the PC
    # kernel, pending accuracy validation against the float64 reference.
    E = jnp.real(EO).astype(jnp.float32)
    O = jnp.imag(EO).astype(jnp.float32)

    # --- noise threshold T (small per-(batch,orientation) scalars; glue) ---
    An0_sq = E[:, :, 0] ** 2 + O[:, :, 0] ** 2                    # (B, O, H, W)
    flat = An0_sq.reshape(B, NORIENT, H * W)
    # torch.median returns the *lower* median for even counts
    medianE2n = jnp.sort(flat, axis=-1)[..., (H * W - 1) // 2]    # (B, O)
    EM_n = jnp.sum(filt[0] ** 2, axis=(-2, -1))                   # (O,)
    noisePower = -(medianE2n / math.log(0.5)) / EM_n[None]
    sumEstSumAn2 = jnp.sum(jnp.sum(iff ** 2, axis=0), axis=(-2, -1))          # (O,)
    rolling = (iff * jnp.roll(iff, 1, axis=0)
               + iff * jnp.roll(iff, 2, axis=0)
               + iff * jnp.roll(iff, 3, axis=0))
    sumEstSumAiAj = jnp.sum(jnp.sum(rolling, axis=0) / 2.0, axis=(-2, -1))    # (O,)
    EstNoiseEnergy2 = (2.0 * noisePower * sumEstSumAn2[None]
                       + 4.0 * noisePower * sumEstSumAiAj[None])
    tau = jnp.sqrt(EstNoiseEnergy2 / 2.0)
    EstNoiseEnergy = tau * math.sqrt(math.pi / 2.0)
    EstNoiseEnergySigma = jnp.sqrt((2.0 - math.pi / 2.0) * tau ** 2)
    T = ((EstNoiseEnergy + K_CONST * EstNoiseEnergySigma) / 1.7).astype(jnp.float32)  # (B, O)

    # T is passed as per-(batch, orientation) SMEM scalars — no (B,4,H,W) broadcast.
    return pc_energy(E, O, T)


def process_image_channels(img):
    B, C, H, W = img.shape
    F = max(1, int(round(min(H, W) / 256)))
    if F > 1:
        # AvgPool2d(F) commutes exactly with the (linear) RGB->YIQ transform, so
        # pooling the RGB image first removes a full-resolution YIQ round trip.
        # TODO(synk): the AvgPool2d downsample itself stays as XLA glue (no Pallas op).
        Hc, Wc = (H // F) * F, (W // F) * F
        img = img[:, :, :Hc, :Wc].reshape(B, C, Hc // F, F, Wc // F, F).mean(axis=(3, 5))
    Y, I, Q = rgb_to_yiq(img)
    return I, Q, Y


def fsimc(imgr, imgd):
    """FSIMc forward: imgr, imgd are (B, 3, H, W) float32 in [0, 255]."""
    I1, Q1, Y1 = process_image_channels(imgr)
    I2, Q2, Y2 = process_image_channels(imgd)
    PC1 = phasecong2(Y1)
    PC2 = phasecong2(Y2)
    return fsimc_combine(Y1, Y2, PC1, PC2, I1, Q1, I2, Q2)


if __name__ == "__main__":
    key = jax.random.PRNGKey(0)
    k1, k2 = jax.random.split(key)
    B, C, H, W = 2, 3, 16, 16
    imgr = jax.random.uniform(k1, (B, C, H, W), jnp.float32, 0.0, 255.0)
    imgd = jax.random.uniform(k2, (B, C, H, W), jnp.float32, 0.0, 255.0)

    out = jax.jit(fsimc)(imgr, imgd)
    jax.block_until_ready(out)
    assert out.shape == () and jnp.isfinite(out)
    print("KERNEL_OK")
</pallas_src>

<mosaic_0001>
module attributes {stable_mosaic.version = 11 : i64} {
  func.func @_yiq_kernel(%arg0: i32, %arg1: i32, %arg2: memref<1x3x16x16xf32, #tpu.memory_space<vmem>>, %arg3: memref<1x16x16xf32, #tpu.memory_space<vmem>>, %arg4: memref<1x16x16xf32, #tpu.memory_space<vmem>>, %arg5: memref<1x16x16xf32, #tpu.memory_space<vmem>>) attributes {dimension_semantics = [#tpu.dimension_semantics<parallel>, #tpu.dimension_semantics<parallel>], iteration_bounds = array<i64: 2, 1>, scalar_prefetch = 0 : i64, scratch_operands = 0 : i64, tpu.core_type = #tpu.core_type<tc>, window_params = [{transform_indices = @transform_0, window_bounds = array<i64: 1, 3, 16, 16>}, {transform_indices = @transform_1, window_bounds = array<i64: 1, 16, 16>}, {transform_indices = @transform_2, window_bounds = array<i64: 1, 16, 16>}, {transform_indices = @transform_3, window_bounds = array<i64: 1, 16, 16>}]} {
    %c0 = arith.constant 0 : index
    %c0_0 = arith.constant 0 : index
    %c0_1 = arith.constant 0 : index
    %c0_2 = arith.constant 0 : index
    %0 = vector.load %arg2[%c0, %c0_0, %c0_1, %c0_2] : memref<1x3x16x16xf32, #tpu.memory_space<vmem>>, vector<1x1x16x16xf32>
    %1 = vector.shape_cast %0 : vector<1x1x16x16xf32> to vector<16x16xf32>
    %c0_3 = arith.constant 0 : index
    %c1 = arith.constant 1 : index
    %c0_4 = arith.constant 0 : index
    %c0_5 = arith.constant 0 : index
    %2 = vector.load %arg2[%c0_3, %c1, %c0_4, %c0_5] : memref<1x3x16x16xf32, #tpu.memory_space<vmem>>, vector<1x1x16x16xf32>
    %3 = vector.shape_cast %2 : vector<1x1x16x16xf32> to vector<16x16xf32>
    %c0_6 = arith.constant 0 : index
    %c2 = arith.constant 2 : index
    %c0_7 = arith.constant 0 : index
    %c0_8 = arith.constant 0 : index
    %4 = vector.load %arg2[%c0_6, %c2, %c0_7, %c0_8] : memref<1x3x16x16xf32, #tpu.memory_space<vmem>>, vector<1x1x16x16xf32>
    %5 = vector.shape_cast %4 : vector<1x1x16x16xf32> to vector<16x16xf32>
    %cst = arith.constant 2.990000e-01 : f32
    %6 = vector.broadcast %cst : f32 to vector<16x16xf32>
    %7 = arith.mulf %6, %1 : vector<16x16xf32>
    %cst_9 = arith.constant 5.870000e-01 : f32
    %8 = vector.broadcast %cst_9 : f32 to vector<16x16xf32>
    %9 = arith.mulf %8, %3 : vector<16x16xf32>
    %10 = arith.addf %7, %9 : vector<16x16xf32>
    %cst_10 = arith.constant 1.140000e-01 : f32
    %11 = vector.broadcast %cst_10 : f32 to vector<16x16xf32>
    %12 = arith.mulf %11, %5 : vector<16x16xf32>
    %13 = arith.addf %10, %12 : vector<16x16xf32>
    %c0_11 = arith.constant 0 : index
    %c0_12 = arith.constant 0 : index
    %c0_13 = arith.constant 0 : index
    %14 = vector.load %arg3[%c0_11, %c0_12, %c0_13] : memref<1x16x16xf32, #tpu.memory_space<vmem>>, vector<1x16x16xf32>
    %15 = vector.shape_cast %14 : vector<1x16x16xf32> to vector<16x16xf32>
    %16 = vector.shape_cast %13 : vector<16x16xf32> to vector<1x16x16xf32>
    tpu.vector_store %arg3[%c0_11, %c0_12, %c0_13], %16 {strides = array<i32>} : memref<1x16x16xf32, #tpu.memory_space<vmem>>, vector<1x16x16xf32>,
    %cst_14 = arith.constant 5.960000e-01 : f32
    %17 = vector.broadcast %cst_14 : f32 to vector<16x16xf32>
    %18 = arith.mulf %17, %1 : vector<16x16xf32>
    %cst_15 = arith.constant 2.740000e-01 : f32
    %19 = vector.broadcast %cst_15 : f32 to vector<16x16xf32>
    %20 = arith.mulf %19, %3 : vector<16x16xf32>
    %21 = arith.subf %18, %20 : vector<16x16xf32>
    %cst_16 = arith.constant 3.220000e-01 : f32
    %22 = vector.broadcast %cst_16 : f32 to vector<16x16xf32>
    %23 = arith.mulf %22, %5 : vector<16x16xf32>
    %24 = arith.subf %21, %23 : vector<16x16xf32>
    %c0_17 = arith.constant 0 : index
    %c0_18 = arith.constant 0 : index
    %c0_19 = arith.constant 0 : index
    %25 = vector.load %arg4[%c0_17, %c0_18, %c0_19] : memref<1x16x16xf32, #tpu.memory_space<vmem>>, vector<1x16x16xf32>
    %26 = vector.shape_cast %25 : vector<1x16x16xf32> to vector<16x16xf32>
    %27 = vector.shape_cast %24 : vector<16x16xf32> to vector<1x16x16xf32>
    tpu.vector_store %arg4[%c0_17, %c0_18, %c0_19], %27 {strides = array<i32>} : memref<1x16x16xf32, #tpu.memory_space<vmem>>, vector<1x16x16xf32>,
    %cst_20 = arith.constant 2.110000e-01 : f32
    %28 = vector.broadcast %cst_20 : f32 to vector<16x16xf32>
    %29 = arith.mulf %28, %1 : vector<16x16xf32>
    %cst_21 = arith.constant 5.230000e-01 : f32
    %30 = vector.broadcast %cst_21 : f32 to vector<16x16xf32>
    %31 = arith.mulf %30, %3 : vector<16x16xf32>
    %32 = arith.subf %29, %31 : vector<16x16xf32>
    %cst_22 = arith.constant 3.120000e-01 : f32
    %33 = vector.broadcast %cst_22 : f32 to vector<16x16xf32>
    %34 = arith.mulf %33, %5 : vector<16x16xf32>
    %35 = arith.addf %32, %34 : vector<16x16xf32>
    %c0_23 = arith.constant 0 : index
    %c0_24 = arith.constant 0 : index
    %c0_25 = arith.constant 0 : index
    %36 = vector.load %arg5[%c0_23, %c0_24, %c0_25] : memref<1x16x16xf32, #tpu.memory_space<vmem>>, vector<1x16x16xf32>
    %37 = vector.shape_cast %36 : vector<1x16x16xf32> to vector<16x16xf32>
    %38 = vector.shape_cast %35 : vector<16x16xf32> to vector<1x16x16xf32>
    tpu.vector_store %arg5[%c0_23, %c0_24, %c0_25], %38 {strides = array<i32>} : memref<1x16x16xf32, #tpu.memory_space<vmem>>, vector<1x16x16xf32>,
    return
  }
  func.func @transform_0(%arg0: i32, %arg1: i32) -> (i32, i32, i32, i32) {
    %c0_i32 = arith.constant 0 : i32
    %c0_i32_0 = arith.constant 0 : i32
    %c0_i32_1 = arith.constant 0 : i32
    return %arg0, %c0_i32, %arg1, %c0_i32_0 : i32, i32, i32, i32
  }
  func.func @transform_1(%arg0: i32, %arg1: i32) -> (i32, i32, i32) {
    %c0_i32 = arith.constant 0 : i32
    %c0_i32_0 = arith.constant 0 : i32
    return %arg0, %arg1, %c0_i32 : i32, i32, i32
  }
  func.func @transform_2(%arg0: i32, %arg1: i32) -> (i32, i32, i32) {
    %c0_i32 = arith.constant 0 : i32
    %c0_i32_0 = arith.constant 0 : i32
    return %arg0, %arg1, %c0_i32 : i32, i32, i32
  }
  func.func @transform_3(%arg0: i32, %arg1: i32) -> (i32, i32, i32) {
    %c0_i32 = arith.constant 0 : i32
    %c0_i32_0 = arith.constant 0 : i32
    return %arg0, %arg1, %c0_i32 : i32, i32, i32
  }
}

module attributes {stable_mosaic.version = 11 : i64} {
  func.func @_yiq_kernel(%arg0: i32, %arg1: i32, %arg2: memref<1x3x16x16xf32, #tpu.memory_space<vmem>>, %arg3: memref<1x16x16xf32, #tpu.memory_space<vmem>>, %arg4: memref<1x16x16xf32, #tpu.memory_space<vmem>>, %arg5: memref<1x16x16xf32, #tpu.memory_space<vmem>>) attributes {dimension_semantics = [#tpu.dimension_semantics<parallel>, #tpu.dimension_semantics<parallel>], iteration_bounds = array<i64: 2, 1>, scalar_prefetch = 0 : i64, scratch_operands = 0 : i64, tpu.core_type = #tpu.core_type<tc>, window_params = [{transform_indices = @transform_0, window_bounds = array<i64: 1, 3, 16, 16>}, {transform_indices = @transform_1, window_bounds = array<i64: 1, 16, 16>}, {transform_indices = @transform_2, window_bounds = array<i64: 1, 16, 16>}, {transform_indices = @transform_3, window_bounds = array<i64: 1, 16, 16>}]} {
    %c0 = arith.constant 0 : index
    %c0_0 = arith.constant 0 : index
    %c0_1 = arith.constant 0 : index
    %c0_2 = arith.constant 0 : index
    %0 = vector.load %arg2[%c0, %c0_0, %c0_1, %c0_2] : memref<1x3x16x16xf32, #tpu.memory_space<vmem>>, vector<1x1x16x16xf32>
    %1 = vector.shape_cast %0 : vector<1x1x16x16xf32> to vector<16x16xf32>
    %c0_3 = arith.constant 0 : index
    %c1 = arith.constant 1 : index
    %c0_4 = arith.constant 0 : index
    %c0_5 = arith.constant 0 : index
    %2 = vector.load %arg2[%c0_3, %c1, %c0_4, %c0_5] : memref<1x3x16x16xf32, #tpu.memory_space<vmem>>, vector<1x1x16x16xf32>
    %3 = vector.shape_cast %2 : vector<1x1x16x16xf32> to vector<16x16xf32>
    %c0_6 = arith.constant 0 : index
    %c2 = arith.constant 2 : index
    %c0_7 = arith.constant 0 : index
    %c0_8 = arith.constant 0 : index
    %4 = vector.load %arg2[%c0_6, %c2, %c0_7, %c0_8] : memref<1x3x16x16xf32, #tpu.memory_space<vmem>>, vector<1x1x16x16xf32>
    %5 = vector.shape_cast %4 : vector<1x1x16x16xf32> to vector<16x16xf32>
    %cst = arith.constant 2.990000e-01 : f32
    %6 = vector.broadcast %cst : f32 to vector<16x16xf32>
    %7 = arith.mulf %6, %1 : vector<16x16xf32>
    %cst_9 = arith.constant 5.870000e-01 : f32
    %8 = vector.broadcast %cst_9 : f32 to vector<16x16xf32>
    %9 = arith.mulf %8, %3 : vector<16x16xf32>
    %10 = arith.addf %7, %9 : vector<16x16xf32>
    %cst_10 = arith.constant 1.140000e-01 : f32
    %11 = vector.broadcast %cst_10 : f32 to vector<16x16xf32>
    %12 = arith.mulf %11, %5 : vector<16x16xf32>
    %13 = arith.addf %10, %12 : vector<16x16xf32>
    %c0_11 = arith.constant 0 : index
    %c0_12 = arith.constant 0 : index
    %c0_13 = arith.constant 0 : index
    %14 = vector.load %arg3[%c0_11, %c0_12, %c0_13] : memref<1x16x16xf32, #tpu.memory_space<vmem>>, vector<1x16x16xf32>
    %15 = vector.shape_cast %14 : vector<1x16x16xf32> to vector<16x16xf32>
    %16 = vector.shape_cast %13 : vector<16x16xf32> to vector<1x16x16xf32>
    tpu.vector_store %arg3[%c0_11, %c0_12, %c0_13], %16 {strides = array<i32>} : memref<1x16x16xf32, #tpu.memory_space<vmem>>, vector<1x16x16xf32>,
    %cst_14 = arith.constant 5.960000e-01 : f32
    %17 = vector.broadcast %cst_14 : f32 to vector<16x16xf32>
    %18 = arith.mulf %17, %1 : vector<16x16xf32>
    %cst_15 = arith.constant 2.740000e-01 : f32
    %19 = vector.broadcast %cst_15 : f32 to vector<16x16xf32>
    %20 = arith.mulf %19, %3 : vector<16x16xf32>
    %21 = arith.subf %18, %20 : vector<16x16xf32>
    %cst_16 = arith.constant 3.220000e-01 : f32
    %22 = vector.broadcast %cst_16 : f32 to vector<16x16xf32>
    %23 = arith.mulf %22, %5 : vector<16x16xf32>
    %24 = arith.subf %21, %23 : vector<16x16xf32>
    %c0_17 = arith.constant 0 : index
    %c0_18 = arith.constant 0 : index
    %c0_19 = arith.constant 0 : index
    %25 = vector.load %arg4[%c0_17, %c0_18, %c0_19] : memref<1x16x16xf32, #tpu.memory_space<vmem>>, vector<1x16x16xf32>
    %26 = vector.shape_cast %25 : vector<1x16x16xf32> to vector<16x16xf32>
    %27 = vector.shape_cast %24 : vector<16x16xf32> to vector<1x16x16xf32>
    tpu.vector_store %arg4[%c0_17, %c0_18, %c0_19], %27 {strides = array<i32>} : memref<1x16x16xf32, #tpu.memory_space<vmem>>, vector<1x16x16xf32>,
    %cst_20 = arith.constant 2.110000e-01 : f32
    %28 = vector.broadcast %cst_20 : f32 to vector<16x16xf32>
    %29 = arith.mulf %28, %1 : vector<16x16xf32>
    %cst_21 = arith.constant 5.230000e-01 : f32
    %30 = vector.broadcast %cst_21 : f32 to vector<16x16xf32>
    %31 = arith.mulf %30, %3 : vector<16x16xf32>
    %32 = arith.subf %29, %31 : vector<16x16xf32>
    %cst_22 = arith.constant 3.120000e-01 : f32
    %33 = vector.broadcast %cst_22 : f32 to vector<16x16xf32>
    %34 = arith.mulf %33, %5 : vector<16x16xf32>
    %35 = arith.addf %32, %34 : vector<16x16xf32>
    %c0_23 = arith.constant 0 : index
    %c0_24 = arith.constant 0 : index
    %c0_25 = arith.constant 0 : index
    %36 = vector.load %arg5[%c0_23, %c0_24, %c0_25] : memref<1x16x16xf32, #tpu.memory_space<vmem>>, vector<1x16x16xf32>
    %37 = vector.shape_cast %36 : vector<1x16x16xf32> to vector<16x16xf32>
    %38 = vector.shape_cast %35 : vector<16x16xf32> to vector<1x16x16xf32>
    tpu.vector_store %arg5[%c0_23, %c0_24, %c0_25], %38 {strides = array<i32>} : memref<1x16x16xf32, #tpu.memory_space<vmem>>, vector<1x16x16xf32>,
    return
  }
  func.func @transform_0(%arg0: i32, %arg1: i32) -> (i32, i32, i32, i32) {
    %c0_i32 = arith.constant 0 : i32
    %c0_i32_0 = arith.constant 0 : i32
    %c0_i32_1 = arith.constant 0 : i32
    return %arg0, %c0_i32, %arg1, %c0_i32_0 : i32, i32, i32, i32
  }
  func.func @transform_1(%arg0: i32, %arg1: i32) -> (i32, i32, i32) {
    %c0_i32 = arith.constant 0 : i32
    %c0_i32_0 = arith.constant 0 : i32
    return %arg0, %arg1, %c0_i32 : i32, i32, i32
  }
  func.func @transform_2(%arg0: i32, %arg1: i32) -> (i32, i32, i32) {
    %c0_i32 = arith.constant 0 : i32
    %c0_i32_0 = arith.constant 0 : i32
    return %arg0, %arg1, %c0_i32 : i32, i32, i32
  }
  func.func @transform_3(%arg0: i32, %arg1: i32) -> (i32, i32, i32) {
    %c0_i32 = arith.constant 0 : i32
    %c0_i32_0 = arith.constant 0 : i32
    return %arg0, %arg1, %c0_i32 : i32, i32, i32
  }
}

module attributes {stable_mosaic.version = 11 : i64} {
  func.func @_pc_energy_kernel(%arg0: i32, %arg1: i32, %arg2: i32, %arg3: memref<2x4xf32, #tpu.memory_space<smem>>, %arg4: memref<1x1x4x16x16xf32, #tpu.memory_space<vmem>>, %arg5: memref<1x1x4x16x16xf32, #tpu.memory_space<vmem>>, %arg6: memref<1x16x16xf32, #tpu.memory_space<vmem>>, %arg7: memref<16x16xf32, #tpu.memory_space<vmem>>, %arg8: memref<16x16xf32, #tpu.memory_space<vmem>>) attributes {dimension_semantics = [#tpu.dimension_semantics<parallel>, #tpu.dimension_semantics<parallel>, #tpu.dimension_semantics<arbitrary>], iteration_bounds = array<i64: 2, 1, 4>, scalar_prefetch = 1 : i64, scratch_operands = 2 : i64, tpu.core_type = #tpu.core_type<tc>, window_params = [{transform_indices = @transform_0, window_bounds = array<i64: 1, 1, 4, 16, 16>}, {transform_indices = @transform_1, window_bounds = array<i64: 1, 1, 4, 16, 16>}, {transform_indices = @transform_2, window_bounds = array<i64: 1, 16, 16>}]} {
    %c0_i32 = arith.constant 0 : i32
    %0 = arith.cmpi eq, %arg2, %c0_i32 : i32
    %1 = arith.extui %0 : i1 to i32
    %c0_i32_0 = arith.constant 0 : i32
    %2 = arith.cmpi ne, %1, %c0_i32_0 : i32
    scf.if %2 {
      %cst_87 = arith.constant 0.000000e+00 : f32
      %120 = vector.broadcast %cst_87 : f32 to vector<16x16xf32>
      %c0_88 = arith.constant 0 : index
      %c0_89 = arith.constant 0 : index
      %121 = vector.load %arg7[%c0_88, %c0_89] : memref<16x16xf32, #tpu.memory_space<vmem>>, vector<16x16xf32>
      tpu.vector_store %arg7[%c0_88, %c0_89], %120 {strides = array<i32>} : memref<16x16xf32, #tpu.memory_space<vmem>>, vector<16x16xf32>,
      %cst_90 = arith.constant 0.000000e+00 : f32
      %122 = vector.broadcast %cst_90 : f32 to vector<16x16xf32>
      %c0_91 = arith.constant 0 : index
      %c0_92 = arith.constant 0 : index
      %123 = vector.load %arg8[%c0_91, %c0_92] : memref<16x16xf32, #tpu.memory_space<vmem>>, vector<16x16xf32>
      tpu.vector_store %arg8[%c0_91, %c0_92], %122 {strides = array<i32>} : memref<16x16xf32, #tpu.memory_space<vmem>>, vector<16x16xf32>,
    } else {
    }
    %c0 = arith.constant 0 : index
    %c0_1 = arith.constant 0 : index
    %c0_2 = arith.constant 0 : index
    %c0_3 = arith.constant 0 : index
    %c0_4 = arith.constant 0 : index
    %3 = vector.load %arg4[%c0, %c0_1, %c0_2, %c0_3, %c0_4] : memref<1x1x4x16x16xf32, #tpu.memory_space<vmem>>, vector<1x1x1x16x16xf32>
    %4 = vector.shape_cast %3 : vector<1x1x1x16x16xf32> to vector<16x16xf32>
    %c0_5 = arith.constant 0 : index
    %c0_6 = arith.constant 0 : index
    %c0_7 = arith.constant 0 : index
    %c0_8 = arith.constant 0 : index
    %c0_9 = arith.constant 0 : index
    %5 = vector.load %arg5[%c0_5, %c0_6, %c0_7, %c0_8, %c0_9] : memref<1x1x4x16x16xf32, #tpu.memory_space<vmem>>, vector<1x1x1x16x16xf32>
    %6 = vector.shape_cast %5 : vector<1x1x1x16x16xf32> to vector<16x16xf32>
    %7 = arith.mulf %4, %4 : vector<16x16xf32>
    %8 = arith.mulf %6, %6 : vector<16x16xf32>
    %9 = arith.addf %7, %8 : vector<16x16xf32>
    %10 = math.sqrt %9 : vector<16x16xf32>
    %c0_10 = arith.constant 0 : index
    %c0_11 = arith.constant 0 : index
    %c1 = arith.constant 1 : index
    %c0_12 = arith.constant 0 : index
    %c0_13 = arith.constant 0 : index
    %11 = vector.load %arg4[%c0_10, %c0_11, %c1, %c0_12, %c0_13] : memref<1x1x4x16x16xf32, #tpu.memory_space<vmem>>, vector<1x1x1x16x16xf32>
    %12 = vector.shape_cast %11 : vector<1x1x1x16x16xf32> to vector<16x16xf32>
    %c0_14 = arith.constant 0 : index
    %c0_15 = arith.constant 0 : index
    %c1_16 = arith.constant 1 : index
    %c0_17 = arith.constant 0 : index
    %c0_18 = arith.constant 0 : index
    %13 = vector.load %arg5[%c0_14, %c0_15, %c1_16, %c0_17, %c0_18] : memref<1x1x4x16x16xf32, #tpu.memory_space<vmem>>, vector<1x1x1x16x16xf32>
    %14 = vector.shape_cast %13 : vector<1x1x1x16x16xf32> to vector<16x16xf32>
    %15 = arith.mulf %12, %12 : vector<16x16xf32>
    %16 = arith.mulf %14, %14 : vector<16x16xf32>
    %17 = arith.addf %15, %16 : vector<16x16xf32>
    %18 = math.sqrt %17 : vector<16x16xf32>
    %19 = arith.addf %4, %12 : vector<16x16xf32>
    %20 = arith.addf %6, %14 : vector<16x16xf32>
    %21 = arith.addf %10, %18 : vector<16x16xf32>
    %c0_19 = arith.constant 0 : index
    %c0_20 = arith.constant 0 : index
    %c2 = arith.constant 2 : index
    %c0_21 = arith.constant 0 : index
    %c0_22 = arith.constant 0 : index
    %22 = vector.load %arg4[%c0_19, %c0_20, %c2, %c0_21, %c0_22] : memref<1x1x4x16x16xf32, #tpu.memory_space<vmem>>, vector<1x1x1x16x16xf32>
    %23 = vector.shape_cast %22 : vector<1x1x1x16x16xf32> to vector<16x16xf32>
    %c0_23 = arith.constant 0 : index
    %c0_24 = arith.constant 0 : index
    %c2_25 = arith.constant 2 : index
    %c0_26 = arith.constant 0 : index
    %c0_27 = arith.constant 0 : index
    %24 = vector.load %arg5[%c0_23, %c0_24, %c2_25, %c0_26, %c0_27] : memref<1x1x4x16x16xf32, #tpu.memory_space<vmem>>, vector<1x1x1x16x16xf32>
    %25 = vector.shape_cast %24 : vector<1x1x1x16x16xf32> to vector<16x16xf32>
    %26 = arith.mulf %23, %23 : vector<16x16xf32>
    %27 = arith.mulf %25, %25 : vector<16x16xf32>
    %28 = arith.addf %26, %27 : vector<16x16xf32>
    %29 = math.sqrt %28 : vector<16x16xf32>
    %30 = arith.addf %19, %23 : vector<16x16xf32>
    %31 = arith.addf %20, %25 : vector<16x16xf32>
    %32 = arith.addf %21, %29 : vector<16x16xf32>
    %c0_28 = arith.constant 0 : index
    %c0_29 = arith.constant 0 : index
    %c3 = arith.constant 3 : index
    %c0_30 = arith.constant 0 : index
    %c0_31 = arith.constant 0 : index
    %33 = vector.load %arg4[%c0_28, %c0_29, %c3, %c0_30, %c0_31] : memref<1x1x4x16x16xf32, #tpu.memory_space<vmem>>, vector<1x1x1x16x16xf32>
    %34 = vector.shape_cast %33 : vector<1x1x1x16x16xf32> to vector<16x16xf32>
    %c0_32 = arith.constant 0 : index
    %c0_33 = arith.constant 0 : index
    %c3_34 = arith.constant 3 : index
    %c0_35 = arith.constant 0 : index
    %c0_36 = arith.constant 0 : index
    %35 = vector.load %arg5[%c0_32, %c0_33, %c3_34, %c0_35, %c0_36] : memref<1x1x4x16x16xf32, #tpu.memory_space<vmem>>, vector<1x1x1x16x16xf32>
    %36 = vector.shape_cast %35 : vector<1x1x1x16x16xf32> to vector<16x16xf32>
    %37 = arith.mulf %34, %34 : vector<16x16xf32>
    %38 = arith.mulf %36, %36 : vector<16x16xf32>
    %39 = arith.addf %37, %38 : vector<16x16xf32>
    %40 = math.sqrt %39 : vector<16x16xf32>
    %41 = arith.addf %30, %34 : vector<16x16xf32>
    %42 = arith.addf %31, %36 : vector<16x16xf32>
    %43 = arith.addf %32, %40 : vector<16x16xf32>
    %44 = arith.mulf %41, %41 : vector<16x16xf32>
    %45 = arith.mulf %42, %42 : vector<16x16xf32>
    %46 = arith.addf %44, %45 : vector<16x16xf32>
    %47 = math.sqrt %46 : vector<16x16xf32>
    %cst = arith.constant 9.99999974E-5 : f32
    %48 = vector.broadcast %cst : f32 to vector<16x16xf32>
    %49 = arith.addf %47, %48 : vector<16x16xf32>
    %50 = tpu.reciprocal %49 {approx = true} : vector<16x16xf32> -> vector<16x16xf32>
    %51 = arith.mulf %41, %50 : vector<16x16xf32>
    %52 = arith.mulf %42, %50 : vector<16x16xf32>
    %c0_37 = arith.constant 0 : index
    %c0_38 = arith.constant 0 : index
    %c0_39 = arith.constant 0 : index
    %c0_40 = arith.constant 0 : index
    %c0_41 = arith.constant 0 : index
    %53 = vector.load %arg4[%c0_37, %c0_38, %c0_39, %c0_40, %c0_41] : memref<1x1x4x16x16xf32, #tpu.memory_space<vmem>>, vector<1x1x1x16x16xf32>
    %54 = vector.shape_cast %53 : vector<1x1x1x16x16xf32> to vector<16x16xf32>
    %c0_42 = arith.constant 0 : index
    %c0_43 = arith.constant 0 : index
    %c0_44 = arith.constant 0 : index
    %c0_45 = arith.constant 0 : index
    %c0_46 = arith.constant 0 : index
    %55 = vector.load %arg5[%c0_42, %c0_43, %c0_44, %c0_45, %c0_46] : memref<1x1x4x16x16xf32, #tpu.memory_space<vmem>>, vector<1x1x1x16x16xf32>
    %56 = vector.shape_cast %55 : vector<1x1x1x16x16xf32> to vector<16x16xf32>
    %57 = arith.mulf %54, %51 : vector<16x16xf32>
    %58 = arith.mulf %56, %52 : vector<16x16xf32>
    %59 = arith.addf %57, %58 : vector<16x16xf32>
    %60 = arith.mulf %54, %52 : vector<16x16xf32>
    %61 = arith.mulf %56, %51 : vector<16x16xf32>
    %62 = arith.subf %60, %61 : vector<16x16xf32>
    %63 = math.absf %62 : vector<16x16xf32>
    %64 = arith.subf %59, %63 : vector<16x16xf32>
    %c0_47 = arith.constant 0 : index
    %c0_48 = arith.constant 0 : index
    %c1_49 = arith.constant 1 : index
    %c0_50 = arith.constant 0 : index
    %c0_51 = arith.constant 0 : index
    %65 = vector.load %arg4[%c0_47, %c0_48, %c1_49, %c0_50, %c0_51] : memref<1x1x4x16x16xf32, #tpu.memory_space<vmem>>, vector<1x1x1x16x16xf32>
    %66 = vector.shape_cast %65 : vector<1x1x1x16x16xf32> to vector<16x16xf32>
    %c0_52 = arith.constant 0 : index
    %c0_53 = arith.constant 0 : index
    %c1_54 = arith.constant 1 : index
    %c0_55 = arith.constant 0 : index
    %c0_56 = arith.constant 0 : index
    %67 = vector.load %arg5[%c0_52, %c0_53, %c1_54, %c0_55, %c0_56] : memref<1x1x4x16x16xf32, #tpu.memory_space<vmem>>, vector<1x1x1x16x16xf32>
    %68 = vector.shape_cast %67 : vector<1x1x1x16x16xf32> to vector<16x16xf32>
    %69 = arith.mulf %66, %51 : vector<16x16xf32>
    %70 = arith.mulf %68, %52 : vector<16x16xf32>
    %71 = arith.addf %69, %70 : vector<16x16xf32>
    %72 = arith.mulf %66, %52 : vector<16x16xf32>
    %73 = arith.mulf %68, %51 : vector<16x16xf32>
    %74 = arith.subf %72, %73 : vector<16x16xf32>
    %75 = math.absf %74 : vector<16x16xf32>
    %76 = arith.subf %71, %75 : vector<16x16xf32>
    %77 = arith.addf %64, %76 : vector<16x16xf32>
    %c0_57 = arith.constant 0 : index
    %c0_58 = arith.constant 0 : index
    %c2_59 = arith.constant 2 : index
    %c0_60 = arith.constant 0 : index
    %c0_61 = arith.constant 0 : index
    %78 = vector.load %arg4[%c0_57, %c0_58, %c2_59, %c0_60, %c0_61] : memref<1x1x4x16x16xf32, #tpu.memory_space<vmem>>, vector<1x1x1x16x16xf32>
    %79 = vector.shape_cast %78 : vector<1x1x1x16x16xf32> to vector<16x16xf32>
    %c0_62 = arith.constant 0 : index
    %c0_63 = arith.constant 0 : index
    %c2_64 = arith.constant 2 : index
    %c0_65 = arith.constant 0 : index
    %c0_66 = arith.constant 0 : index
    %80 = vector.load %arg5[%c0_62, %c0_63, %c2_64, %c0_65, %c0_66] : memref<1x1x4x16x16xf32, #tpu.memory_space<vmem>>, vector<1x1x1x16x16xf32>
    %81 = vector.shape_cast %80 : vector<1x1x1x16x16xf32> to vector<16x16xf32>
    %82 = arith.mulf %79, %51 : vector<16x16xf32>
    %83 = arith.mulf %81, %52 : vector<16x16xf32>
    %84 = arith.addf %82, %83 : vector<16x16xf32>
    %85 = arith.mulf %79, %52 : vector<16x16xf32>
    %86 = arith.mulf %81, %51 : vector<16x16xf32>
    %87 = arith.subf %85, %86 : vector<16x16xf32>
    %88 = math.absf %87 : vector<16x16xf32>
    %89 = arith.subf %84, %88 : vector<16x16xf32>
    %90 = arith.addf %77, %89 : vector<16x16xf32>
    %c0_67 = arith.constant 0 : index
    %c0_68 = arith.constant 0 : index
    %c3_69 = arith.constant 3 : index
    %c0_70 = arith.constant 0 : index
    %c0_71 = arith.constant 0 : index
    %91 = vector.load %arg4[%c0_67, %c0_68, %c3_69, %c0_70, %c0_71] : memref<1x1x4x16x16xf32, #tpu.memory_space<vmem>>, vector<1x1x1x16x16xf32>
    %92 = vector.shape_cast %91 : vector<1x1x1x16x16xf32> to vector<16x16xf32>
    %c0_72 = arith.constant 0 : index
    %c0_73 = arith.constant 0 : index
    %c3_74 = arith.constant 3 : index
    %c0_75 = arith.constant 0 : index
    %c0_76 = arith.constant 0 : index
    %93 = vector.load %arg5[%c0_72, %c0_73, %c3_74, %c0_75, %c0_76] : memref<1x1x4x16x16xf32, #tpu.memory_space<vmem>>, vector<1x1x1x16x16xf32>
    %94 = vector.shape_cast %93 : vector<1x1x1x16x16xf32> to vector<16x16xf32>
    %95 = arith.mulf %92, %51 : vector<16x16xf32>
    %96 = arith.mulf %94, %52 : vector<16x16xf32>
    %97 = arith.addf %95, %96 : vector<16x16xf32>
    %98 = arith.mulf %92, %52 : vector<16x16xf32>
    %99 = arith.mulf %94, %51 : vector<16x16xf32>
    %100 = arith.subf %98, %99 : vector<16x16xf32>
    %101 = math.absf %100 : vector<16x16xf32>
    %102 = arith.subf %97, %101 : vector<16x16xf32>
    %103 = arith.addf %90, %102 : vector<16x16xf32>
    %c0_77 = arith.constant 0 : index
    %c0_78 = arith.constant 0 : index
    %104 = vector.load %arg7[%c0_77, %c0_78] : memref<16x16xf32, #tpu.memory_space<vmem>>, vector<16x16xf32>
    %105 = arith.index_cast %arg0 : i32 to index
    %106 = arith.index_cast %arg2 : i32 to index
    %107 = memref.load %arg3[%105, %106] : memref<2x4xf32, #tpu.memory_space<smem>>
    %108 = vector.broadcast %107 : f32 to vector<16x16xf32>
    %109 = arith.subf %103, %108 : vector<16x16xf32>
    %cst_79 = arith.constant 0.000000e+00 : f32
    %110 = vector.broadcast %cst_79 : f32 to vector<16x16xf32>
    %111 = arith.maximumf %109, %110 : vector<16x16xf32>
    %112 = arith.addf %104, %111 : vector<16x16xf32>
    %c0_80 = arith.constant 0 : index
    %c0_81 = arith.constant 0 : index
    %113 = vector.load %arg7[%c0_80, %c0_81] : memref<16x16xf32, #tpu.memory_space<vmem>>, vector<16x16xf32>
    tpu.vector_store %arg7[%c0_80, %c0_81], %112 {strides = array<i32>} : memref<16x16xf32, #tpu.memory_space<vmem>>, vector<16x16xf32>,
    %c0_82 = arith.constant 0 : index
    %c0_83 = arith.constant 0 : index
    %114 = vector.load %arg8[%c0_82, %c0_83] : memref<16x16xf32, #tpu.memory_space<vmem>>, vector<16x16xf32>
    %115 = arith.addf %114, %43 : vector<16x16xf32>
    %c0_84 = arith.constant 0 : index
    %c0_85 = arith.constant 0 : index
    %116 = vector.load %arg8[%c0_84, %c0_85] : memref<16x16xf32, #tpu.memory_space<vmem>>, vector<16x16xf32>
    tpu.vector_store %arg8[%c0_84, %c0_85], %115 {strides = array<i32>} : memref<16x16xf32, #tpu.memory_space<vmem>>, vector<16x16xf32>,
    %c3_i32 = arith.constant 3 : i32
    %117 = arith.cmpi eq, %arg2, %c3_i32 : i32
    %118 = arith.extui %117 : i1 to i32
    %c0_i32_86 = arith.constant 0 : i32
    %119 = arith.cmpi ne, %118, %c0_i32_86 : i32
    scf.if %119 {
      %c0_87 = arith.constant 0 : index
      %c0_88 = arith.constant 0 : index
      %120 = vector.load %arg7[%c0_87, %c0_88] : memref<16x16xf32, #tpu.memory_space<vmem>>, vector<16x16xf32>
      %c0_89 = arith.constant 0 : index
      %c0_90 = arith.constant 0 : index
      %121 = vector.load %arg8[%c0_89, %c0_90] : memref<16x16xf32, #tpu.memory_space<vmem>>, vector<16x16xf32>
      %122 = arith.divf %120, %121 : vector<16x16xf32>
      %c0_91 = arith.constant 0 : index
      %c0_92 = arith.constant 0 : index
      %c0_93 = arith.constant 0 : index
      %123 = vector.load %arg6[%c0_91, %c0_92, %c0_93] : memref<1x16x16xf32, #tpu.memory_space<vmem>>, vector<1x16x16xf32>
      %124 = vector.shape_cast %123 : vector<1x16x16xf32> to vector<16x16xf32>
      %125 = vector.shape_cast %122 : vector<16x16xf32> to vector<1x16x16xf32>
      tpu.vector_store %arg6[%c0_91, %c0_92, %c0_93], %125 {strides = array<i32>} : memref<1x16x16xf32, #tpu.memory_space<vmem>>, vector<1x16x16xf32>,
    } else {
    }
    return
  }
  func.func @transform_0(%arg0: i32, %arg1: i32, %arg2: i32, %arg3: memref<2x4xf32, #tpu.memory_space<smem>>) -> (i32, i32, i32, i32, i32) {
    %c0_i32 = arith.constant 0 : i32
    %c0_i32_0 = arith.constant 0 : i32
    %c0_i32_1 = arith.constant 0 : i32
    return %arg0, %arg2, %c0_i32, %arg1, %c0_i32_0 : i32, i32, i32, i32, i32
  }
  func.func @transform_1(%arg0: i32, %arg1: i32, %arg2: i32, %arg3: memref<2x4xf32, #tpu.memory_space<smem>>) -> (i32, i32, i32, i32, i32) {
    %c0_i32 = arith.constant 0 : i32
    %c0_i32_0 = arith.constant 0 : i32
    %c0_i32_1 = arith.constant 0 : i32
    return %arg0, %arg2, %c0_i32, %arg1, %c0_i32_0 : i32, i32, i32, i32, i32
  }
  func.func @transform_2(%arg0: i32, %arg1: i32, %arg2: i32, %arg3: memref<2x4xf32, #tpu.memory_space<smem>>) -> (i32, i32, i32) {
    %c0_i32 = arith.constant 0 : i32
    %c0_i32_0 = arith.constant 0 : i32
    return %arg0, %arg1, %c0_i32 : i32, i32, i32
  }
}

module attributes {stable_mosaic.version = 11 : i64} {
  func.func @_fsimc_kernel(%arg0: i32, %arg1: i32, %arg2: memref<1x16x16xf32, #tpu.memory_space<vmem>>, %arg3: memref<1x8x16xf32, #tpu.memory_space<vmem>>, %arg4: memref<1x8x16xf32, #tpu.memory_space<vmem>>, %arg5: memref<1x16x16xf32, #tpu.memory_space<vmem>>, %arg6: memref<1x8x16xf32, #tpu.memory_space<vmem>>, %arg7: memref<1x8x16xf32, #tpu.memory_space<vmem>>, %arg8: memref<1x16x16xf32, #tpu.memory_space<vmem>>, %arg9: memref<1x16x16xf32, #tpu.memory_space<vmem>>, %arg10: memref<1x16x16xf32, #tpu.memory_space<vmem>>, %arg11: memref<1x16x16xf32, #tpu.memory_space<vmem>>, %arg12: memref<1x16x16xf32, #tpu.memory_space<vmem>>, %arg13: memref<1x16x16xf32, #tpu.memory_space<vmem>>, %arg14: memref<1x1x1x16xf32, #tpu.memory_space<vmem>>, %arg15: memref<1x1x1x16xf32, #tpu.memory_space<vmem>>) attributes {dimension_semantics = [#tpu.dimension_semantics<parallel>, #tpu.dimension_semantics<parallel>], iteration_bounds = array<i64: 2, 1>, scalar_prefetch = 0 : i64, scratch_operands = 0 : i64, tpu.core_type = #tpu.core_type<tc>, window_params = [{transform_indices = @transform_0, window_bounds = array<i64: 1, 16, 16>}, {transform_indices = @transform_1, window_bounds = array<i64: 1, 8, 16>}, {transform_indices = @transform_2, window_bounds = array<i64: 1, 8, 16>}, {transform_indices = @transform_3, window_bounds = array<i64: 1, 16, 16>}, {transform_indices = @transform_4, window_bounds = array<i64: 1, 8, 16>}, {transform_indices = @transform_5, window_bounds = array<i64: 1, 8, 16>}, {transform_indices = @transform_6, window_bounds = array<i64: 1, 16, 16>}, {transform_indices = @transform_7, window_bounds = array<i64: 1, 16, 16>}, {transform_indices = @transform_8, window_bounds = array<i64: 1, 16, 16>}, {transform_indices = @transform_9, window_bounds = array<i64: 1, 16, 16>}, {transform_indices = @transform_10, window_bounds = array<i64: 1, 16, 16>}, {transform_indices = @transform_11, window_bounds = array<i64: 1, 16, 16>}, {transform_indices = @transform_12, window_bounds = array<i64: 1, 1, 1, 16>}, {transform_indices = @transform_13, window_bounds = array<i64: 1, 1, 1, 16>}]} {
    %0 = tpu.iota {dimensions = array<i32: 0>} : vector<16x16xi32>
    %c16_i32 = arith.constant 16 : i32
    %1 = arith.muli %arg1, %c16_i32 : i32
    %2 = vector.broadcast %1 : i32 to vector<16x16xi32>
    %3 = arith.addi %2, %0 : vector<16x16xi32>
    %c16_i32_0 = arith.constant 16 : i32
    %4 = vector.broadcast %c16_i32_0 : i32 to vector<16x16xi32>
    %5 = arith.cmpi slt, %3, %4 : vector<16x16xi32>
    %c0_i32 = arith.constant 0 : i32
    %6 = arith.cmpi sgt, %arg1, %c0_i32 : i32
    %c1_i32 = arith.constant 1 : i32
    %7 = arith.addi %arg1, %c1_i32 : i32
    %c16_i32_1 = arith.constant 16 : i32
    %8 = arith.muli %7, %c16_i32_1 : i32
    %c16_i32_2 = arith.constant 16 : i32
    %9 = arith.cmpi slt, %8, %c16_i32_2 : i32
    %c0 = arith.constant 0 : index
    %c0_3 = arith.constant 0 : index
    %c0_4 = arith.constant 0 : index
    %10 = vector.load %arg2[%c0, %c0_3, %c0_4] : memref<1x16x16xf32, #tpu.memory_space<vmem>>, vector<1x16x16xf32>
    %11 = vector.shape_cast %10 : vector<1x16x16xf32> to vector<16x16xf32>
    %cst = arith.constant 0.000000e+00 : f32
    %12 = vector.broadcast %cst : f32 to vector<16x16xf32>
    %13 = arith.select %5, %11, %12 : vector<16x16xi1>, vector<16x16xf32>
    %c0_5 = arith.constant 0 : index
    %c0_6 = arith.constant 0 : index
    %c0_7 = arith.constant 0 : index
    %14 = vector.load %arg5[%c0_5, %c0_6, %c0_7] : memref<1x16x16xf32, #tpu.memory_space<vmem>>, vector<1x16x16xf32>
    %15 = vector.shape_cast %14 : vector<1x16x16xf32> to vector<16x16xf32>
    %cst_8 = arith.constant 0.000000e+00 : f32
    %16 = vector.broadcast %cst_8 : f32 to vector<16x16xf32>
    %17 = arith.select %5, %15, %16 : vector<16x16xi1>, vector<16x16xf32>
    %c0_9 = arith.constant 0 : index
    %c7 = arith.constant 7 : index
    %c0_10 = arith.constant 0 : index
    %18 = vector.load %arg3[%c0_9, %c7, %c0_10] : memref<1x8x16xf32, #tpu.memory_space<vmem>>, vector<1x1x16xf32>
    %19 = vector.shape_cast %18 : vector<1x1x16xf32> to vector<1x16xf32>
    %cst_11 = arith.constant 0.000000e+00 : f32
    %20 = vector.broadcast %cst_11 : f32 to vector<1x16xf32>
    %21 = arith.select %6, %19, %20 : vector<1x16xf32>
    %c0_12 = arith.constant 0 : index
    %c0_13 = arith.constant 0 : index
    %c0_14 = arith.constant 0 : index
    %22 = vector.load %arg4[%c0_12, %c0_13, %c0_14] : memref<1x8x16xf32, #tpu.memory_space<vmem>>, vector<1x1x16xf32>
    %23 = vector.shape_cast %22 : vector<1x1x16xf32> to vector<1x16xf32>
    %cst_15 = arith.constant 0.000000e+00 : f32
    %24 = vector.broadcast %cst_15 : f32 to vector<1x16xf32>
    %25 = arith.select %9, %23, %24 : vector<1x16xf32>
    %c0_16 = arith.constant 0 : index
    %c7_17 = arith.constant 7 : index
    %c0_18 = arith.constant 0 : index
    %26 = vector.load %arg6[%c0_16, %c7_17, %c0_18] : memref<1x8x16xf32, #tpu.memory_space<vmem>>, vector<1x1x16xf32>
    %27 = vector.shape_cast %26 : vector<1x1x16xf32> to vector<1x16xf32>
    %cst_19 = arith.constant 0.000000e+00 : f32
    %28 = vector.broadcast %cst_19 : f32 to vector<1x16xf32>
    %29 = arith.select %6, %27, %28 : vector<1x16xf32>
    %c0_20 = arith.constant 0 : index
    %c0_21 = arith.constant 0 : index
    %c0_22 = arith.constant 0 : index
    %30 = vector.load %arg7[%c0_20, %c0_21, %c0_22] : memref<1x8x16xf32, #tpu.memory_space<vmem>>, vector<1x1x16xf32>
    %31 = vector.shape_cast %30 : vector<1x1x16xf32> to vector<1x16xf32>
    %cst_23 = arith.constant 0.000000e+00 : f32
    %32 = vector.broadcast %cst_23 : f32 to vector<1x16xf32>
    %33 = arith.select %9, %31, %32 : vector<1x16xf32>
    %34 = tpu.iota {dimensions = array<i32: 1>} : vector<16x16xi32>
    %c15_i32 = arith.constant 15 : i32
    %35 = vector.broadcast %c15_i32 : i32 to vector<16x16xi32>
    %36 = arith.cmpi slt, %34, %35 : vector<16x16xi32>
    %c15_i32_24 = arith.constant 15 : i32
    %37 = tpu.dynamic_rotate %13 by %c15_i32_24 dim 1 : vector<16x16xf32>, i32 -> vector<16x16xf32>
    %cst_25 = arith.constant 0.000000e+00 : f32
    %38 = vector.broadcast %cst_25 : f32 to vector<16x16xf32>
    %39 = arith.select %36, %37, %38 : vector<16x16xi1>, vector<16x16xf32>
    %40 = tpu.iota {dimensions = array<i32: 1>} : vector<16x16xi32>
    %c1_i32_26 = arith.constant 1 : i32
    %41 = vector.broadcast %c1_i32_26 : i32 to vector<16x16xi32>
    %42 = arith.cmpi sge, %40, %41 : vector<16x16xi32>
    %c1_i32_27 = arith.constant 1 : i32
    %43 = tpu.dynamic_rotate %13 by %c1_i32_27 dim 1 : vector<16x16xf32>, i32 -> vector<16x16xf32>
    %cst_28 = arith.constant 0.000000e+00 : f32
    %44 = vector.broadcast %cst_28 : f32 to vector<16x16xf32>
    %45 = arith.select %42, %43, %44 : vector<16x16xi1>, vector<16x16xf32>
    %46 = arith.subf %39, %45 : vector<16x16xf32>
    %47 = tpu.iota {dimensions = array<i32: 1>} : vector<1x16xi32>
    %c15_i32_29 = arith.constant 15 : i32
    %48 = vector.broadcast %c15_i32_29 : i32 to vector<1x16xi32>
    %49 = arith.cmpi slt, %47, %48 : vector<1x16xi32>
    %c15_i32_30 = arith.constant 15 : i32
    %50 = tpu.dynamic_rotate %21 by %c15_i32_30 dim 1 : vector<1x16xf32>, i32 -> vector<1x16xf32>
    %cst_31 = arith.constant 0.000000e+00 : f32
    %51 = vector.broadcast %cst_31 : f32 to vector<1x16xf32>
    %52 = arith.select %49, %50, %51 : vector<1x16xi1>, vector<1x16xf32>
    %53 = tpu.iota {dimensions = array<i32: 1>} : vector<1x16xi32>
    %c1_i32_32 = arith.constant 1 : i32
    %54 = vector.broadcast %c1_i32_32 : i32 to vector<1x16xi32>
    %55 = arith.cmpi sge, %53, %54 : vector<1x16xi32>
    %c1_i32_33 = arith.constant 1 : i32
    %56 = tpu.dynamic_rotate %21 by %c1_i32_33 dim 1 : vector<1x16xf32>, i32 -> vector<1x16xf32>
    %cst_34 = arith.constant 0.000000e+00 : f32
    %57 = vector.broadcast %cst_34 : f32 to vector<1x16xf32>
    %58 = arith.select %55, %56, %57 : vector<1x16xi1>, vector<1x16xf32>
    %59 = arith.subf %52, %58 : vector<1x16xf32>
    %60 = tpu.iota {dimensions = array<i32: 1>} : vector<1x16xi32>
    %c15_i32_35 = arith.constant 15 : i32
    %61 = vector.broadcast %c15_i32_35 : i32 to vector<1x16xi32>
    %62 = arith.cmpi slt, %60, %61 : vector<1x16xi32>
    %c15_i32_36 = arith.constant 15 : i32
    %63 = tpu.dynamic_rotate %25 by %c15_i32_36 dim 1 : vector<1x16xf32>, i32 -> vector<1x16xf32>
    %cst_37 = arith.constant 0.000000e+00 : f32
    %64 = vector.broadcast %cst_37 : f32 to vector<1x16xf32>
    %65 = arith.select %62, %63, %64 : vector<1x16xi1>, vector<1x16xf32>
    %66 = tpu.iota {dimensions = array<i32: 1>} : vector<1x16xi32>
    %c1_i32_38 = arith.constant 1 : i32
    %67 = vector.broadcast %c1_i32_38 : i32 to vector<1x16xi32>
    %68 = arith.cmpi sge, %66, %67 : vector<1x16xi32>
    %c1_i32_39 = arith.constant 1 : i32
    %69 = tpu.dynamic_rotate %25 by %c1_i32_39 dim 1 : vector<1x16xf32>, i32 -> vector<1x16xf32>
    %cst_40 = arith.constant 0.000000e+00 : f32
    %70 = vector.broadcast %cst_40 : f32 to vector<1x16xf32>
    %71 = arith.select %68, %69, %70 : vector<1x16xi1>, vector<1x16xf32>
    %72 = arith.subf %65, %71 : vector<1x16xf32>
    %73 = tpu.iota {dimensions = array<i32: 0>} : vector<16x16xi32>
    %c0_i32_41 = arith.constant 0 : i32
    %74 = vector.broadcast %c0_i32_41 : i32 to vector<16x16xi32>
    %75 = arith.cmpi eq, %73, %74 : vector<16x16xi32>
    %c1_i32_42 = arith.constant 1 : i32
    %76 = tpu.dynamic_rotate %46 by %c1_i32_42 dim 0 : vector<16x16xf32>, i32 -> vector<16x16xf32>
    %77 = vector.shape_cast %59 : vector<1x16xf32> to vector<1x16xf32>
    %78 = vector.broadcast %77 : vector<1x16xf32> to vector<16x16xf32>
    %79 = arith.select %75, %78, %76 : vector<16x16xi1>, vector<16x16xf32>
    %cst_43 = arith.constant 3.000000e+00 : f32
    %80 = vector.broadcast %cst_43 : f32 to vector<16x16xf32>
    %81 = arith.mulf %80, %79 : vector<16x16xf32>
    %cst_44 = arith.constant 1.000000e+01 : f32
    %82 = vector.broadcast %cst_44 : f32 to vector<16x16xf32>
    %83 = arith.mulf %82, %46 : vector<16x16xf32>
    %84 = arith.addf %81, %83 : vector<16x16xf32>
    %85 = tpu.iota {dimensions = array<i32: 0>} : vector<16x16xi32>
    %c15_i32_45 = arith.constant 15 : i32
    %86 = vector.broadcast %c15_i32_45 : i32 to vector<16x16xi32>
    %87 = arith.cmpi eq, %85, %86 : vector<16x16xi32>
    %c15_i32_46 = arith.constant 15 : i32
    %88 = tpu.dynamic_rotate %46 by %c15_i32_46 dim 0 : vector<16x16xf32>, i32 -> vector<16x16xf32>
    %89 = vector.shape_cast %72 : vector<1x16xf32> to vector<1x16xf32>
    %90 = vector.broadcast %89 : vector<1x16xf32> to vector<16x16xf32>
    %91 = arith.select %87, %90, %88 : vector<16x16xi1>, vector<16x16xf32>
    %cst_47 = arith.constant 3.000000e+00 : f32
    %92 = vector.broadcast %cst_47 : f32 to vector<16x16xf32>
    %93 = arith.mulf %92, %91 : vector<16x16xf32>
    %94 = arith.addf %84, %93 : vector<16x16xf32>
    %cst_48 = arith.constant 6.250000e-02 : f32
    %95 = vector.broadcast %cst_48 : f32 to vector<16x16xf32>
    %96 = arith.mulf %94, %95 : vector<16x16xf32>
    %97 = tpu.iota {dimensions = array<i32: 1>} : vector<16x16xi32>
    %c1_i32_49 = arith.constant 1 : i32
    %98 = vector.broadcast %c1_i32_49 : i32 to vector<16x16xi32>
    %99 = arith.cmpi sge, %97, %98 : vector<16x16xi32>
    %c1_i32_50 = arith.constant 1 : i32
    %100 = tpu.dynamic_rotate %13 by %c1_i32_50 dim 1 : vector<16x16xf32>, i32 -> vector<16x16xf32>
    %cst_51 = arith.constant 0.000000e+00 : f32
    %101 = vector.broadcast %cst_51 : f32 to vector<16x16xf32>
    %102 = arith.select %99, %100, %101 : vector<16x16xi1>, vector<16x16xf32>
    %cst_52 = arith.constant 3.000000e+00 : f32
    %103 = vector.broadcast %cst_52 : f32 to vector<16x16xf32>
    %104 = arith.mulf %103, %102 : vector<16x16xf32>
    %cst_53 = arith.constant 1.000000e+01 : f32
    %105 = vector.broadcast %cst_53 : f32 to vector<16x16xf32>
    %106 = arith.mulf %105, %13 : vector<16x16xf32>
    %107 = arith.addf %104, %106 : vector<16x16xf32>
    %108 = tpu.iota {dimensions = array<i32: 1>} : vector<16x16xi32>
    %c15_i32_54 = arith.constant 15 : i32
    %109 = vector.broadcast %c15_i32_54 : i32 to vector<16x16xi32>
    %110 = arith.cmpi slt, %108, %109 : vector<16x16xi32>
    %c15_i32_55 = arith.constant 15 : i32
    %111 = tpu.dynamic_rotate %13 by %c15_i32_55 dim 1 : vector<16x16xf32>, i32 -> vector<16x16xf32>
    %cst_56 = arith.constant 0.000000e+00 : f32
    %112 = vector.broadcast %cst_56 : f32 to vector<16x16xf32>
    %113 = arith.select %110, %111, %112 : vector<16x16xi1>, vector<16x16xf32>
    %cst_57 = arith.constant 3.000000e+00 : f32
    %114 = vector.broadcast %cst_57 : f32 to vector<16x16xf32>
    %115 = arith.mulf %114, %113 : vector<16x16xf32>
    %116 = arith.addf %107, %115 : vector<16x16xf32>
    %117 = tpu.iota {dimensions = array<i32: 1>} : vector<1x16xi32>
    %c1_i32_58 = arith.constant 1 : i32
    %118 = vector.broadcast %c1_i32_58 : i32 to vector<1x16xi32>
    %119 = arith.cmpi sge, %117, %118 : vector<1x16xi32>
    %c1_i32_59 = arith.constant 1 : i32
    %120 = tpu.dynamic_rotate %21 by %c1_i32_59 dim 1 : vector<1x16xf32>, i32 -> vector<1x16xf32>
    %cst_60 = arith.constant 0.000000e+00 : f32
    %121 = vector.broadcast %cst_60 : f32 to vector<1x16xf32>
    %122 = arith.select %119, %120, %121 : vector<1x16xi1>, vector<1x16xf32>
    %cst_61 = arith.constant 3.000000e+00 : f32
    %123 = vector.broadcast %cst_61 : f32 to vector<1x16xf32>
    %124 = arith.mulf %123, %122 : vector<1x16xf32>
    %cst_62 = arith.constant 1.000000e+01 : f32
    %125 = vector.broadcast %cst_62 : f32 to vector<1x16xf32>
    %126 = arith.mulf %125, %21 : vector<1x16xf32>
    %127 = arith.addf %124, %126 : vector<1x16xf32>
    %128 = tpu.iota {dimensions = array<i32: 1>} : vector<1x16xi32>
    %c15_i32_63 = arith.constant 15 : i32
    %129 = vector.broadcast %c15_i32_63 : i32 to vector<1x16xi32>
    %130 = arith.cmpi slt, %128, %129 : vector<1x16xi32>
    %c15_i32_64 = arith.constant 15 : i32
    %131 = tpu.dynamic_rotate %21 by %c15_i32_64 dim 1 : vector<1x16xf32>, i32 -> vector<1x16xf32>
    %cst_65 = arith.constant 0.000000e+00 : f32
    %132 = vector.broadcast %cst_65 : f32 to vector<1x16xf32>
    %133 = arith.select %130, %131, %132 : vector<1x16xi1>, vector<1x16xf32>
    %cst_66 = arith.constant 3.000000e+00 : f32
    %134 = vector.broadcast %cst_66 : f32 to vector<1x16xf32>
    %135 = arith.mulf %134, %133 : vector<1x16xf32>
    %136 = arith.addf %127, %135 : vector<1x16xf32>
    %137 = tpu.iota {dimensions = array<i32: 1>} : vector<1x16xi32>
    %c1_i32_67 = arith.constant 1 : i32
    %138 = vector.broadcast %c1_i32_67 : i32 to vector<1x16xi32>
    %139 = arith.cmpi sge, %137, %138 : vector<1x16xi32>
    %c1_i32_68 = arith.constant 1 : i32
    %140 = tpu.dynamic_rotate %25 by %c1_i32_68 dim 1 : vector<1x16xf32>, i32 -> vector<1x16xf32>
    %cst_69 = arith.constant 0.000000e+00 : f32
    %141 = vector.broadcast %cst_69 : f32 to vector<1x16xf32>
    %142 = arith.select %139, %140, %141 : vector<1x16xi1>, vector<1x16xf32>
    %cst_70 = arith.constant 3.000000e+00 : f32
    %143 = vector.broadcast %cst_70 : f32 to vector<1x16xf32>
    %144 = arith.mulf %143, %142 : vector<1x16xf32>
    %cst_71 = arith.constant 1.000000e+01 : f32
    %145 = vector.broadcast %cst_71 : f32 to vector<1x16xf32>
    %146 = arith.mulf %145, %25 : vector<1x16xf32>
    %147 = arith.addf %144, %146 : vector<1x16xf32>
    %148 = tpu.iota {dimensions = array<i32: 1>} : vector<1x16xi32>
    %c15_i32_72 = arith.constant 15 : i32
    %149 = vector.broadcast %c15_i32_72 : i32 to vector<1x16xi32>
    %150 = arith.cmpi slt, %148, %149 : vector<1x16xi32>
    %c15_i32_73 = arith.constant 15 : i32
    %151 = tpu.dynamic_rotate %25 by %c15_i32_73 dim 1 : vector<1x16xf32>, i32 -> vector<1x16xf32>
    %cst_74 = arith.constant 0.000000e+00 : f32
    %152 = vector.broadcast %cst_74 : f32 to vector<1x16xf32>
    %153 = arith.select %150, %151, %152 : vector<1x16xi1>, vector<1x16xf32>
    %cst_75 = arith.constant 3.000000e+00 : f32
    %154 = vector.broadcast %cst_75 : f32 to vector<1x16xf32>
    %155 = arith.mulf %154, %153 : vector<1x16xf32>
    %156 = arith.addf %147, %155 : vector<1x16xf32>
    %157 = tpu.iota {dimensions = array<i32: 0>} : vector<16x16xi32>
    %c15_i32_76 = arith.constant 15 : i32
    %158 = vector.broadcast %c15_i32_76 : i32 to vector<16x16xi32>
    %159 = arith.cmpi eq, %157, %158 : vector<16x16xi32>
    %c15_i32_77 = arith.constant 15 : i32
    %160 = tpu.dynamic_rotate %116 by %c15_i32_77 dim 0 : vector<16x16xf32>, i32 -> vector<16x16xf32>
    %161 = vector.shape_cast %156 : vector<1x16xf32> to vector<1x16xf32>
    %162 = vector.broadcast %161 : vector<1x16xf32> to vector<16x16xf32>
    %163 = arith.select %159, %162, %160 : vector<16x16xi1>, vector<16x16xf32>
    %164 = tpu.iota {dimensions = array<i32: 0>} : vector<16x16xi32>
    %c0_i32_78 = arith.constant 0 : i32
    %165 = vector.broadcast %c0_i32_78 : i32 to vector<16x16xi32>
    %166 = arith.cmpi eq, %164, %165 : vector<16x16xi32>
    %c1_i32_79 = arith.constant 1 : i32
    %167 = tpu.dynamic_rotate %116 by %c1_i32_79 dim 0 : vector<16x16xf32>, i32 -> vector<16x16xf32>
    %168 = vector.shape_cast %136 : vector<1x16xf32> to vector<1x16xf32>
    %169 = vector.broadcast %168 : vector<1x16xf32> to vector<16x16xf32>
    %170 = arith.select %166, %169, %167 : vector<16x16xi1>, vector<16x16xf32>
    %171 = arith.subf %163, %170 : vector<16x16xf32>
    %cst_80 = arith.constant 6.250000e-02 : f32
    %172 = vector.broadcast %cst_80 : f32 to vector<16x16xf32>
    %173 = arith.mulf %171, %172 : vector<16x16xf32>
    %174 = arith.mulf %96, %96 : vector<16x16xf32>
    %175 = arith.mulf %173, %173 : vector<16x16xf32>
    %176 = arith.addf %174, %175 : vector<16x16xf32>
    %177 = math.sqrt %176 : vector<16x16xf32>
    %178 = tpu.iota {dimensions = array<i32: 1>} : vector<16x16xi32>
    %c15_i32_81 = arith.constant 15 : i32
    %179 = vector.broadcast %c15_i32_81 : i32 to vector<16x16xi32>
    %180 = arith.cmpi slt, %178, %179 : vector<16x16xi32>
    %c15_i32_82 = arith.constant 15 : i32
    %181 = tpu.dynamic_rotate %17 by %c15_i32_82 dim 1 : vector<16x16xf32>, i32 -> vector<16x16xf32>
    %cst_83 = arith.constant 0.000000e+00 : f32
    %182 = vector.broadcast %cst_83 : f32 to vector<16x16xf32>
    %183 = arith.select %180, %181, %182 : vector<16x16xi1>, vector<16x16xf32>
    %184 = tpu.iota {dimensions = array<i32: 1>} : vector<16x16xi32>
    %c1_i32_84 = arith.constant 1 : i32
    %185 = vector.broadcast %c1_i32_84 : i32 to vector<16x16xi32>
    %186 = arith.cmpi sge, %184, %185 : vector<16x16xi32>
    %c1_i32_85 = arith.constant 1 : i32
    %187 = tpu.dynamic_rotate %17 by %c1_i32_85 dim 1 : vector<16x16xf32>, i32 -> vector<16x16xf32>
    %cst_86 = arith.constant 0.000000e+00 : f32
    %188 = vector.broadcast %cst_86 : f32 to vector<16x16xf32>
    %189 = arith.select %186, %187, %188 : vector<16x16xi1>, vector<16x16xf32>
    %190 = arith.subf %183, %189 : vector<16x16xf32>
    %191 = tpu.iota {dimensions = array<i32: 1>} : vector<1x16xi32>
    %c15_i32_87 = arith.constant 15 : i32
    %192 = vector.broadcast %c15_i32_87 : i32 to vector<1x16xi32>
    %193 = arith.cmpi slt, %191, %192 : vector<1x16xi32>
    %c15_i32_88 = arith.constant 15 : i32
    %194 = tpu.dynamic_rotate %29 by %c15_i32_88 dim 1 : vector<1x16xf32>, i32 -> vector<1x16xf32>
    %cst_89 = arith.constant 0.000000e+00 : f32
    %195 = vector.broadcast %cst_89 : f32 to vector<1x16xf32>
    %196 = arith.select %193, %194, %195 : vector<1x16xi1>, vector<1x16xf32>
    %197 = tpu.iota {dimensions = array<i32: 1>} : vector<1x16xi32>
    %c1_i32_90 = arith.constant 1 : i32
    %198 = vector.broadcast %c1_i32_90 : i32 to vector<1x16xi32>
    %199 = arith.cmpi sge, %197, %198 : vector<1x16xi32>
    %c1_i32_91 = arith.constant 1 : i32
    %200 = tpu.dynamic_rotate %29 by %c1_i32_91 dim 1 : vector<1x16xf32>, i32 -> vector<1x16xf32>
    %cst_92 = arith.constant 0.000000e+00 : f32
    %201 = vector.broadcast %cst_92 : f32 to vector<1x16xf32>
    %202 = arith.select %199, %200, %201 : vector<1x16xi1>, vector<1x16xf32>
    %203 = arith.subf %196, %202 : vector<1x16xf32>
    %204 = tpu.iota {dimensions = array<i32: 1>} : vector<1x16xi32>
    %c15_i32_93 = arith.constant 15 : i32
    %205 = vector.broadcast %c15_i32_93 : i32 to vector<1x16xi32>
    %206 = arith.cmpi slt, %204, %205 : vector<1x16xi32>
    %c15_i32_94 = arith.constant 15 : i32
    %207 = tpu.dynamic_rotate %33 by %c15_i32_94 dim 1 : vector<1x16xf32>, i32 -> vector<1x16xf32>
    %cst_95 = arith.constant 0.000000e+00 : f32
    %208 = vector.broadcast %cst_95 : f32 to vector<1x16xf32>
    %209 = arith.select %206, %207, %208 : vector<1x16xi1>, vector<1x16xf32>
    %210 = tpu.iota {dimensions = array<i32: 1>} : vector<1x16xi32>
    %c1_i32_96 = arith.constant 1 : i32
    %211 = vector.broadcast %c1_i32_96 : i32 to vector<1x16xi32>
    %212 = arith.cmpi sge, %210, %211 : vector<1x16xi32>
    %c1_i32_97 = arith.constant 1 : i32
    %213 = tpu.dynamic_rotate %33 by %c1_i32_97 dim 1 : vector<1x16xf32>, i32 -> vector<1x16xf32>
    %cst_98 = arith.constant 0.000000e+00 : f32
    %214 = vector.broadcast %cst_98 : f32 to vector<1x16xf32>
    %215 = arith.select %212, %213, %214 : vector<1x16xi1>, vector<1x16xf32>
    %216 = arith.subf %209, %215 : vector<1x16xf32>
    %217 = tpu.iota {dimensions = array<i32: 0>} : vector<16x16xi32>
    %c0_i32_99 = arith.constant 0 : i32
    %218 = vector.broadcast %c0_i32_99 : i32 to vector<16x16xi32>
    %219 = arith.cmpi eq, %217, %218 : vector<16x16xi32>
    %c1_i32_100 = arith.constant 1 : i32
    %220 = tpu.dynamic_rotate %190 by %c1_i32_100 dim 0 : vector<16x16xf32>, i32 -> vector<16x16xf32>
    %221 = vector.shape_cast %203 : vector<1x16xf32> to vector<1x16xf32>
    %222 = vector.broadcast %221 : vector<1x16xf32> to vector<16x16xf32>
    %223 = arith.select %219, %222, %220 : vector<16x16xi1>, vector<16x16xf32>
    %cst_101 = arith.constant 3.000000e+00 : f32
    %224 = vector.broadcast %cst_101 : f32 to vector<16x16xf32>
    %225 = arith.mulf %224, %223 : vector<16x16xf32>
    %cst_102 = arith.constant 1.000000e+01 : f32
    %226 = vector.broadcast %cst_102 : f32 to vector<16x16xf32>
    %227 = arith.mulf %226, %190 : vector<16x16xf32>
    %228 = arith.addf %225, %227 : vector<16x16xf32>
    %229 = tpu.iota {dimensions = array<i32: 0>} : vector<16x16xi32>
    %c15_i32_103 = arith.constant 15 : i32
    %230 = vector.broadcast %c15_i32_103 : i32 to vector<16x16xi32>
    %231 = arith.cmpi eq, %229, %230 : vector<16x16xi32>
    %c15_i32_104 = arith.constant 15 : i32
    %232 = tpu.dynamic_rotate %190 by %c15_i32_104 dim 0 : vector<16x16xf32>, i32 -> vector<16x16xf32>
    %233 = vector.shape_cast %216 : vector<1x16xf32> to vector<1x16xf32>
    %234 = vector.broadcast %233 : vector<1x16xf32> to vector<16x16xf32>
    %235 = arith.select %231, %234, %232 : vector<16x16xi1>, vector<16x16xf32>
    %cst_105 = arith.constant 3.000000e+00 : f32
    %236 = vector.broadcast %cst_105 : f32 to vector<16x16xf32>
    %237 = arith.mulf %236, %235 : vector<16x16xf32>
    %238 = arith.addf %228, %237 : vector<16x16xf32>
    %cst_106 = arith.constant 6.250000e-02 : f32
    %239 = vector.broadcast %cst_106 : f32 to vector<16x16xf32>
    %240 = arith.mulf %238, %239 : vector<16x16xf32>
    %241 = tpu.iota {dimensions = array<i32: 1>} : vector<16x16xi32>
    %c1_i32_107 = arith.constant 1 : i32
    %242 = vector.broadcast %c1_i32_107 : i32 to vector<16x16xi32>
    %243 = arith.cmpi sge, %241, %242 : vector<16x16xi32>
    %c1_i32_108 = arith.constant 1 : i32
    %244 = tpu.dynamic_rotate %17 by %c1_i32_108 dim 1 : vector<16x16xf32>, i32 -> vector<16x16xf32>
    %cst_109 = arith.constant 0.000000e+00 : f32
    %245 = vector.broadcast %cst_109 : f32 to vector<16x16xf32>
    %246 = arith.select %243, %244, %245 : vector<16x16xi1>, vector<16x16xf32>
    %cst_110 = arith.constant 3.000000e+00 : f32
    %247 = vector.broadcast %cst_110 : f32 to vector<16x16xf32>
    %248 = arith.mulf %247, %246 : vector<16x16xf32>
    %cst_111 = arith.constant 1.000000e+01 : f32
    %249 = vector.broadcast %cst_111 : f32 to vector<16x16xf32>
    %250 = arith.mulf %249, %17 : vector<16x16xf32>
    %251 = arith.addf %248, %250 : vector<16x16xf32>
    %252 = tpu.iota {dimensions = array<i32: 1>} : vector<16x16xi32>
    %c15_i32_112 = arith.constant 15 : i32
    %253 = vector.broadcast %c15_i32_112 : i32 to vector<16x16xi32>
    %254 = arith.cmpi slt, %252, %253 : vector<16x16xi32>
    %c15_i32_113 = arith.constant 15 : i32
    %255 = tpu.dynamic_rotate %17 by %c15_i32_113 dim 1 : vector<16x16xf32>, i32 -> vector<16x16xf32>
    %cst_114 = arith.constant 0.000000e+00 : f32
    %256 = vector.broadcast %cst_114 : f32 to vector<16x16xf32>
    %257 = arith.select %254, %255, %256 : vector<16x16xi1>, vector<16x16xf32>
    %cst_115 = arith.constant 3.000000e+00 : f32
    %258 = vector.broadcast %cst_115 : f32 to vector<16x16xf32>
    %259 = arith.mulf %258, %257 : vector<16x16xf32>
    %260 = arith.addf %251, %259 : vector<16x16xf32>
    %261 = tpu.iota {dimensions = array<i32: 1>} : vector<1x16xi32>
    %c1_i32_116 = arith.constant 1 : i32
    %262 = vector.broadcast %c1_i32_116 : i32 to vector<1x16xi32>
    %263 = arith.cmpi sge, %261, %262 : vector<1x16xi32>
    %c1_i32_117 = arith.constant 1 : i32
    %264 = tpu.dynamic_rotate %29 by %c1_i32_117 dim 1 : vector<1x16xf32>, i32 -> vector<1x16xf32>
    %cst_118 = arith.constant 0.000000e+00 : f32
    %265 = vector.broadcast %cst_118 : f32 to vector<1x16xf32>
    %266 = arith.select %263, %264, %265 : vector<1x16xi1>, vector<1x16xf32>
    %cst_119 = arith.constant 3.000000e+00 : f32
    %267 = vector.broadcast %cst_119 : f32 to vector<1x16xf32>
    %268 = arith.mulf %267, %266 : vector<1x16xf32>
    %cst_120 = arith.constant 1.000000e+01 : f32
    %269 = vector.broadcast %cst_120 : f32 to vector<1x16xf32>
    %270 = arith.mulf %269, %29 : vector<1x16xf32>
    %271 = arith.addf %268, %270 : vector<1x16xf32>
    %272 = tpu.iota {dimensions = array<i32: 1>} : vector<1x16xi32>
    %c15_i32_121 = arith.constant 15 : i32
    %273 = vector.broadcast %c15_i32_121 : i32 to vector<1x16xi32>
    %274 = arith.cmpi slt, %272, %273 : vector<1x16xi32>
    %c15_i32_122 = arith.constant 15 : i32
    %275 = tpu.dynamic_rotate %29 by %c15_i32_122 dim 1 : vector<1x16xf32>, i32 -> vector<1x16xf32>
    %cst_123 = arith.constant 0.000000e+00 : f32
    %276 = vector.broadcast %cst_123 : f32 to vector<1x16xf32>
    %277 = arith.select %274, %275, %276 : vector<1x16xi1>, vector<1x16xf32>
    %cst_124 = arith.constant 3.000000e+00 : f32
    %278 = vector.broadcast %cst_124 : f32 to vector<1x16xf32>
    %279 = arith.mulf %278, %277 : vector<1x16xf32>
    %280 = arith.addf %271, %279 : vector<1x16xf32>
    %281 = tpu.iota {dimensions = array<i32: 1>} : vector<1x16xi32>
    %c1_i32_125 = arith.constant 1 : i32
    %282 = vector.broadcast %c1_i32_125 : i32 to vector<1x16xi32>
    %283 = arith.cmpi sge, %281, %282 : vector<1x16xi32>
    %c1_i32_126 = arith.constant 1 : i32
    %284 = tpu.dynamic_rotate %33 by %c1_i32_126 dim 1 : vector<1x16xf32>, i32 -> vector<1x16xf32>
    %cst_127 = arith.constant 0.000000e+00 : f32
    %285 = vector.broadcast %cst_127 : f32 to vector<1x16xf32>
    %286 = arith.select %283, %284, %285 : vector<1x16xi1>, vector<1x16xf32>
    %cst_128 = arith.constant 3.000000e+00 : f32
    %287 = vector.broadcast %cst_128 : f32 to vector<1x16xf32>
    %288 = arith.mulf %287, %286 : vector<1x16xf32>
    %cst_129 = arith.constant 1.000000e+01 : f32
    %289 = vector.broadcast %cst_129 : f32 to vector<1x16xf32>
    %290 = arith.mulf %289, %33 : vector<1x16xf32>
    %291 = arith.addf %288, %290 : vector<1x16xf32>
    %292 = tpu.iota {dimensions = array<i32: 1>} : vector<1x16xi32>
    %c15_i32_130 = arith.constant 15 : i32
    %293 = vector.broadcast %c15_i32_130 : i32 to vector<1x16xi32>
    %294 = arith.cmpi slt, %292, %293 : vector<1x16xi32>
    %c15_i32_131 = arith.constant 15 : i32
    %295 = tpu.dynamic_rotate %33 by %c15_i32_131 dim 1 : vector<1x16xf32>, i32 -> vector<1x16xf32>
    %cst_132 = arith.constant 0.000000e+00 : f32
    %296 = vector.broadcast %cst_132 : f32 to vector<1x16xf32>
    %297 = arith.select %294, %295, %296 : vector<1x16xi1>, vector<1x16xf32>
    %cst_133 = arith.constant 3.000000e+00 : f32
    %298 = vector.broadcast %cst_133 : f32 to vector<1x16xf32>
    %299 = arith.mulf %298, %297 : vector<1x16xf32>
    %300 = arith.addf %291, %299 : vector<1x16xf32>
    %301 = tpu.iota {dimensions = array<i32: 0>} : vector<16x16xi32>
    %c15_i32_134 = arith.constant 15 : i32
    %302 = vector.broadcast %c15_i32_134 : i32 to vector<16x16xi32>
    %303 = arith.cmpi eq, %301, %302 : vector<16x16xi32>
    %c15_i32_135 = arith.constant 15 : i32
    %304 = tpu.dynamic_rotate %260 by %c15_i32_135 dim 0 : vector<16x16xf32>, i32 -> vector<16x16xf32>
    %305 = vector.shape_cast %300 : vector<1x16xf32> to vector<1x16xf32>
    %306 = vector.broadcast %305 : vector<1x16xf32> to vector<16x16xf32>
    %307 = arith.select %303, %306, %304 : vector<16x16xi1>, vector<16x16xf32>
    %308 = tpu.iota {dimensions = array<i32: 0>} : vector<16x16xi32>
    %c0_i32_136 = arith.constant 0 : i32
    %309 = vector.broadcast %c0_i32_136 : i32 to vector<16x16xi32>
    %310 = arith.cmpi eq, %308, %309 : vector<16x16xi32>
    %c1_i32_137 = arith.constant 1 : i32
    %311 = tpu.dynamic_rotate %260 by %c1_i32_137 dim 0 : vector<16x16xf32>, i32 -> vector<16x16xf32>
    %312 = vector.shape_cast %280 : vector<1x16xf32> to vector<1x16xf32>
    %313 = vector.broadcast %312 : vector<1x16xf32> to vector<16x16xf32>
    %314 = arith.select %310, %313, %311 : vector<16x16xi1>, vector<16x16xf32>
    %315 = arith.subf %307, %314 : vector<16x16xf32>
    %cst_138 = arith.constant 6.250000e-02 : f32
    %316 = vector.broadcast %cst_138 : f32 to vector<16x16xf32>
    %317 = arith.mulf %315, %316 : vector<16x16xf32>
    %318 = arith.mulf %240, %240 : vector<16x16xf32>
    %319 = arith.mulf %317, %317 : vector<16x16xf32>
    %320 = arith.addf %318, %319 : vector<16x16xf32>
    %321 = math.sqrt %320 : vector<16x16xf32>
    %cst_139 = arith.constant 2.000000e+00 : f32
    %322 = vector.broadcast %cst_139 : f32 to vector<16x16xf32>
    %323 = arith.mulf %322, %177 : vector<16x16xf32>
    %324 = arith.mulf %323, %321 : vector<16x16xf32>
    %cst_140 = arith.constant 1.600000e+02 : f32
    %325 = vector.broadcast %cst_140 : f32 to vector<16x16xf32>
    %326 = arith.addf %324, %325 : vector<16x16xf32>
    %327 = arith.mulf %177, %177 : vector<16x16xf32>
    %328 = arith.mulf %321, %321 : vector<16x16xf32>
    %329 = arith.addf %327, %328 : vector<16x16xf32>
    %cst_141 = arith.constant 1.600000e+02 : f32
    %330 = vector.broadcast %cst_141 : f32 to vector<16x16xf32>
    %331 = arith.addf %329, %330 : vector<16x16xf32>
    %332 = arith.divf %326, %331 : vector<16x16xf32>
    %c0_142 = arith.constant 0 : index
    %c0_143 = arith.constant 0 : index
    %c0_144 = arith.constant 0 : index
    %333 = vector.load %arg8[%c0_142, %c0_143, %c0_144] : memref<1x16x16xf32, #tpu.memory_space<vmem>>, vector<1x16x16xf32>
    %334 = vector.shape_cast %333 : vector<1x16x16xf32> to vector<16x16xf32>
    %c0_145 = arith.constant 0 : index
    %c0_146 = arith.constant 0 : index
    %c0_147 = arith.constant 0 : index
    %335 = vector.load %arg9[%c0_145, %c0_146, %c0_147] : memref<1x16x16xf32, #tpu.memory_space<vmem>>, vector<1x16x16xf32>
    %336 = vector.shape_cast %335 : vector<1x16x16xf32> to vector<16x16xf32>
    %cst_148 = arith.constant 2.000000e+00 : f32
    %337 = vector.broadcast %cst_148 : f32 to vector<16x16xf32>
    %338 = arith.mulf %337, %334 : vector<16x16xf32>
    %339 = arith.mulf %338, %336 : vector<16x16xf32>
    %cst_149 = arith.constant 8.500000e-01 : f32
    %340 = vector.broadcast %cst_149 : f32 to vector<16x16xf32>
    %341 = arith.addf %339, %340 : vector<16x16xf32>
    %342 = arith.mulf %334, %334 : vector<16x16xf32>
    %343 = arith.mulf %336, %336 : vector<16x16xf32>
    %344 = arith.addf %342, %343 : vector<16x16xf32>
    %cst_150 = arith.constant 8.500000e-01 : f32
    %345 = vector.broadcast %cst_150 : f32 to vector<16x16xf32>
    %346 = arith.addf %344, %345 : vector<16x16xf32>
    %347 = arith.divf %341, %346 : vector<16x16xf32>
    %348 = arith.cmpf ogt, %334, %336 : vector<16x16xf32>
    %349 = arith.select %348, %334, %336 : vector<16x16xi1>, vector<16x16xf32>
    %c0_151 = arith.constant 0 : index
    %c0_152 = arith.constant 0 : index
    %c0_153 = arith.constant 0 : index
    %350 = vector.load %arg10[%c0_151, %c0_152, %c0_153] : memref<1x16x16xf32, #tpu.memory_space<vmem>>, vector<1x16x16xf32>
    %351 = vector.shape_cast %350 : vector<1x16x16xf32> to vector<16x16xf32>
    %c0_154 = arith.constant 0 : index
    %c0_155 = arith.constant 0 : index
    %c0_156 = arith.constant 0 : index
    %352 = vector.load %arg12[%c0_154, %c0_155, %c0_156] : memref<1x16x16xf32, #tpu.memory_space<vmem>>, vector<1x16x16xf32>
    %353 = vector.shape_cast %352 : vector<1x16x16xf32> to vector<16x16xf32>
    %c0_157 = arith.constant 0 : index
    %c0_158 = arith.constant 0 : index
    %c0_159 = arith.constant 0 : index
    %354 = vector.load %arg11[%c0_157, %c0_158, %c0_159] : memref<1x16x16xf32, #tpu.memory_space<vmem>>, vector<1x16x16xf32>
    %355 = vector.shape_cast %354 : vector<1x16x16xf32> to vector<16x16xf32>
    %c0_160 = arith.constant 0 : index
    %c0_161 = arith.constant 0 : index
    %c0_162 = arith.constant 0 : index
    %356 = vector.load %arg13[%c0_160, %c0_161, %c0_162] : memref<1x16x16xf32, #tpu.memory_space<vmem>>, vector<1x16x16xf32>
    %357 = vector.shape_cast %356 : vector<1x16x16xf32> to vector<16x16xf32>
    %cst_163 = arith.constant 2.000000e+00 : f32
    %358 = vector.broadcast %cst_163 : f32 to vector<16x16xf32>
    %359 = arith.mulf %358, %351 : vector<16x16xf32>
    %360 = arith.mulf %359, %353 : vector<16x16xf32>
    %cst_164 = arith.constant 2.000000e+02 : f32
    %361 = vector.broadcast %cst_164 : f32 to vector<16x16xf32>
    %362 = arith.addf %360, %361 : vector<16x16xf32>
    %363 = arith.mulf %351, %351 : vector<16x16xf32>
    %364 = arith.mulf %353, %353 : vector<16x16xf32>
    %365 = arith.addf %363, %364 : vector<16x16xf32>
    %cst_165 = arith.constant 2.000000e+02 : f32
    %366 = vector.broadcast %cst_165 : f32 to vector<16x16xf32>
    %367 = arith.addf %365, %366 : vector<16x16xf32>
    %368 = arith.divf %362, %367 : vector<16x16xf32>
    %cst_166 = arith.constant 2.000000e+00 : f32
    %369 = vector.broadcast %cst_166 : f32 to vector<16x16xf32>
    %370 = arith.mulf %369, %355 : vector<16x16xf32>
    %371 = arith.mulf %370, %357 : vector<16x16xf32>
    %cst_167 = arith.constant 2.000000e+02 : f32
    %372 = vector.broadcast %cst_167 : f32 to vector<16x16xf32>
    %373 = arith.addf %371, %372 : vector<16x16xf32>
    %374 = arith.mulf %355, %355 : vector<16x16xf32>
    %375 = arith.mulf %357, %357 : vector<16x16xf32>
    %376 = arith.addf %374, %375 : vector<16x16xf32>
    %cst_168 = arith.constant 2.000000e+02 : f32
    %377 = vector.broadcast %cst_168 : f32 to vector<16x16xf32>
    %378 = arith.addf %376, %377 : vector<16x16xf32>
    %379 = arith.divf %373, %378 : vector<16x16xf32>
    %380 = arith.mulf %368, %379 : vector<16x16xf32>
    %381 = math.absf %380 : vector<16x16xf32>
    %382 = math.log %381 : vector<16x16xf32>
    %cst_169 = arith.constant 3.000000e-02 : f32
    %383 = vector.broadcast %cst_169 : f32 to vector<16x16xf32>
    %384 = arith.mulf %383, %382 : vector<16x16xf32>
    %385 = math.exp %384 : vector<16x16xf32>
    %386 = arith.mulf %332, %347 : vector<16x16xf32>
    %387 = arith.mulf %386, %385 : vector<16x16xf32>
    %388 = arith.mulf %387, %349 : vector<16x16xf32>
    %cst_170 = arith.constant 0.000000e+00 : f32
    %389 = vector.broadcast %cst_170 : f32 to vector<16x16xf32>
    %390 = arith.select %5, %388, %389 : vector<16x16xi1>, vector<16x16xf32>
    %cst_171 = arith.constant dense<0.000000e+00> : vector<16xf32>
    %391 = vector.multi_reduction <add>, %390, %cst_171 [0] : vector<16x16xf32> to vector<16xf32>
    %392 = vector.shape_cast %391 : vector<16xf32> to vector<1x16xf32>
    %c0_172 = arith.constant 0 : index
    %c0_173 = arith.constant 0 : index
    %c0_174 = arith.constant 0 : index
    %c0_175 = arith.constant 0 : index
    %393 = vector.load %arg14[%c0_172, %c0_173, %c0_174, %c0_175] : memref<1x1x1x16xf32, #tpu.memory_space<vmem>>, vector<1x1x1x16xf32>
    %394 = vector.shape_cast %393 : vector<1x1x1x16xf32> to vector<1x16xf32>
    %395 = vector.shape_cast %392 : vector<1x16xf32> to vector<1x1x1x16xf32>
    tpu.vector_store %arg14[%c0_172, %c0_173, %c0_174, %c0_175], %395 {strides = array<i32>} : memref<1x1x1x16xf32, #tpu.memory_space<vmem>>, vector<1x1x1x16xf32>,
    %cst_176 = arith.constant 0.000000e+00 : f32
    %396 = vector.broadcast %cst_176 : f32 to vector<16x16xf32>
    %397 = arith.select %5, %349, %396 : vector<16x16xi1>, vector<16x16xf32>
    %cst_177 = arith.constant dense<0.000000e+00> : vector<16xf32>
    %398 = vector.multi_reduction <add>, %397, %cst_177 [0] : vector<16x16xf32> to vector<16xf32>
    %399 = vector.shape_cast %398 : vector<16xf32> to vector<1x16xf32>
    %c0_178 = arith.constant 0 : index
    %c0_179 = arith.constant 0 : index
    %c0_180 = arith.constant 0 : index
    %c0_181 = arith.constant 0 : index
    %400 = vector.load %arg15[%c0_178, %c0_179, %c0_180, %c0_181] : memref<1x1x1x16xf32, #tpu.memory_space<vmem>>, vector<1x1x1x16xf32>
    %401 = vector.shape_cast %400 : vector<1x1x1x16xf32> to vector<1x16xf32>
    %402 = vector.shape_cast %399 : vector<1x16xf32> to vector<1x1x1x16xf32>
    tpu.vector_store %arg15[%c0_178, %c0_179, %c0_180, %c0_181], %402 {strides = array<i32>} : memref<1x1x1x16xf32, #tpu.memory_space<vmem>>, vector<1x1x1x16xf32>,
    return
  }
  func.func @transform_0(%arg0: i32, %arg1: i32) -> (i32, i32, i32) {
    %c0_i32 = arith.constant 0 : i32
    %c0_i32_0 = arith.constant 0 : i32
    return %arg0, %arg1, %c0_i32 : i32, i32, i32
  }
  func.func @transform_1(%arg0: i32, %arg1: i32) -> (i32, i32, i32) {
    %c2_i32 = arith.constant 2 : i32
    %0 = arith.muli %arg1, %c2_i32 : i32
    %c1_i32 = arith.constant 1 : i32
    %1 = arith.subi %0, %c1_i32 : i32
    %c0_i32 = arith.constant 0 : i32
    %2 = arith.maxsi %1, %c0_i32 : i32
    %c0_i32_0 = arith.constant 0 : i32
    %c0_i32_1 = arith.constant 0 : i32
    return %arg0, %2, %c0_i32_0 : i32, i32, i32
  }
  func.func @transform_2(%arg0: i32, %arg1: i32) -> (i32, i32, i32) {
    %c1_i32 = arith.constant 1 : i32
    %0 = arith.addi %arg1, %c1_i32 : i32
    %c2_i32 = arith.constant 2 : i32
    %1 = arith.muli %0, %c2_i32 : i32
    %c1_i32_0 = arith.constant 1 : i32
    %2 = arith.minsi %1, %c1_i32_0 : i32
    %c0_i32 = arith.constant 0 : i32
    %c0_i32_1 = arith.constant 0 : i32
    return %arg0, %2, %c0_i32 : i32, i32, i32
  }
  func.func @transform_3(%arg0: i32, %arg1: i32) -> (i32, i32, i32) {
    %c0_i32 = arith.constant 0 : i32
    %c0_i32_0 = arith.constant 0 : i32
    return %arg0, %arg1, %c0_i32 : i32, i32, i32
  }
  func.func @transform_4(%arg0: i32, %arg1: i32) -> (i32, i32, i32) {
    %c2_i32 = arith.constant 2 : i32
    %0 = arith.muli %arg1, %c2_i32 : i32
    %c1_i32 = arith.constant 1 : i32
    %1 = arith.subi %0, %c1_i32 : i32
    %c0_i32 = arith.constant 0 : i32
    %2 = arith.maxsi %1, %c0_i32 : i32
    %c0_i32_0 = arith.constant 0 : i32
    %c0_i32_1 = arith.constant 0 : i32
    return %arg0, %2, %c0_i32_0 : i32, i32, i32
  }
  func.func @transform_5(%arg0: i32, %arg1: i32) -> (i32, i32, i32) {
    %c1_i32 = arith.constant 1 : i32
    %0 = arith.addi %arg1, %c1_i32 : i32
    %c2_i32 = arith.constant 2 : i32
    %1 = arith.muli %0, %c2_i32 : i32
    %c1_i32_0 = arith.constant 1 : i32
    %2 = arith.minsi %1, %c1_i32_0 : i32
    %c0_i32 = arith.constant 0 : i32
    %c0_i32_1 = arith.constant 0 : i32
    return %arg0, %2, %c0_i32 : i32, i32, i32
  }
  func.func @transform_6(%arg0: i32, %arg1: i32) -> (i32, i32, i32) {
    %c0_i32 = arith.constant 0 : i32
    %c0_i32_0 = arith.constant 0 : i32
    return %arg0, %arg1, %c0_i32 : i32, i32, i32
  }
  func.func @transform_7(%arg0: i32, %arg1: i32) -> (i32, i32, i32) {
    %c0_i32 = arith.constant 0 : i32
    %c0_i32_0 = arith.constant 0 : i32
    return %arg0, %arg1, %c0_i32 : i32, i32, i32
  }
  func.func @transform_8(%arg0: i32, %arg1: i32) -> (i32, i32, i32) {
    %c0_i32 = arith.constant 0 : i32
    %c0_i32_0 = arith.constant 0 : i32
    return %arg0, %arg1, %c0_i32 : i32, i32, i32
  }
  func.func @transform_9(%arg0: i32, %arg1: i32) -> (i32, i32, i32) {
    %c0_i32 = arith.constant 0 : i32
    %c0_i32_0 = arith.constant 0 : i32
    return %arg0, %arg1, %c0_i32 : i32, i32, i32
  }
  func.func @transform_10(%arg0: i32, %arg1: i32) -> (i32, i32, i32) {
    %c0_i32 = arith.constant 0 : i32
    %c0_i32_0 = arith.constant 0 : i32
    return %arg0, %arg1, %c0_i32 : i32, i32, i32
  }
  func.func @transform_11(%arg0: i32, %arg1: i32) -> (i32, i32, i32) {
    %c0_i32 = arith.constant 0 : i32
    %c0_i32_0 = arith.constant 0 : i32
    return %arg0, %arg1, %c0_i32 : i32, i32, i32
  }
  func.func @transform_12(%arg0: i32, %arg1: i32) -> (i32, i32, i32, i32) {
    %c0_i32 = arith.constant 0 : i32
    %c0_i32_0 = arith.constant 0 : i32
    %c0_i32_1 = arith.constant 0 : i32
    return %arg0, %arg1, %c0_i32, %c0_i32_0 : i32, i32, i32, i32
  }
  func.func @transform_13(%arg0: i32, %arg1: i32) -> (i32, i32, i32, i32) {
    %c0_i32 = arith.constant 0 : i32
    %c0_i32_0 = arith.constant 0 : i32
    %c0_i32_1 = arith.constant 0 : i32
    return %arg0, %arg1, %c0_i32, %c0_i32_0 : i32, i32, i32, i32
  }
}

</mosaic_0001>

<bundles_post_ra>
// kernel: fsimc.5
= control target key start
LH: loop header
LB: loop body
LE: loop exit
PB: predicated region body
PF: predicated region fallthrough
CT: control target
= control target key end

     0   :  { %9 = vsyncpa [#allocation3], 0  ;;  %s827_s0 = inlined_call_operand.hbm [shape: f32[2,3,16,16], index: 0, kind: input, shape index: {}]   ;;  %s828_s1 = inlined_call_operand.vmem [shape: f32[2,16,16], index: 1, kind: output, shape index: {0}]   ;;  %s829_s2 = inlined_call_operand.vmem [shape: f32[2,16,16], index: 2, kind: output, shape index: {1}]   ;;  %s830_s3 = inlined_call_operand.vmem [shape: f32[2,16,16], index: 3, kind: output, shape index: {2}]  }
   0x1   :  { %11 = vsyncpa [#allocation3 + $0x1], 0  ;;  %s692_s12 = smov 0   ;;  %s694_s13 = smov 0  }
   0x2   :  { %s696_s14 = smov 0   ;;  %s698_s15 = smov 0  }
   0x3   :  { %s700_s16 = smov 0   ;;  %s702_s17 = smov 0  }
   0x4 LB: > { %s506_s18 = sadd.s32 4294967295, %s667_s17   ;;  %s29_s19 = sadd.s32 1, %s663_s16  ;;  %s667_s17 = sphi %s702_s17, %s17_s17   ;;  %s663_s16 = sphi %s700_s16, %s837_s16   ;;  %s659_s15 = sphi %s698_s15, %s836_s15   ;;  %s655_s14 = sphi %s696_s14, %s835_s14   ;;  %s651_s13 = sphi %s694_s13, %s834_s13   ;;  %s647_s12 = sphi %s692_s12, %s833_s12  }
   0x5   : > { %p31_p0 = scmp.ge.s32.totalorder %s29_s19, 2  ;;  %s38_s20 = sadd.s32 1, %s655_s14 }
   0x6   : > { %p45_p1 = scmp.ne.s32.totalorder %s655_s14, %s651_s13  ;;  %p46_p2 = scmp.eq.s32.totalorder %s667_s17, 0 }
   0x7   : > { %s839_s19 = smov (%p31_p0, %s29_s19), 0  ;;  %p51_p4 = scmp.ne.s32.totalorder %s651_s13, %s647_s12 }
   0x8   : > { %p47_p3 = por %p46_p2, %p45_p1  ;;  %s33_s21 = ssub.s32 %s663_s16, %s839_s19 }
   0x9   : > { %p52_p5 = scmp.eq.s32.totalorder %s506_s18, 0  ;;  %p36_p6 = scmp.eq.s32.totalorder %s33_s21, 0 }
   0xa   : > { %p536_p8 = scmp.lt.s32.totalorder %s667_s17, 2  ;;  %s159_s24 = sand.u32 1, %s655_s14  }
   0xb   : > { %p731_p7 = por %p52_p5, %p51_p4  ;;  %s528_s25 = smul.u32 768, %s663_s16 }
   0xc   : > { %s737_s23 = scalar_select %p36_p6, %s655_s14, %s38_s20  }
   0xd   : > { %s527_s26 = smul.u32 48, %s159_s24  ;;  %s744_s29 = scalar_lea.hbm %s827_s0, %s528_s25 }
   0xe   : > { %p746_p9 = pnand %p536_p8, %p47_p3  ;;  %s752_s6 = scalar_lea.sflag [#allocation3], %s159_s24 }
   0xf   : > { %s163_s4 = scalar_lea.vmem [#allocation2], %s527_s26  ;;  %s587_s7 = scalar_lea.hbm %s744_s29, 768 }
  0x10   : > { %s172_s5 = sshll.u32 %s163_s4, 4  ;;  %p588_p10 = scmp.ne.s32.totalorder %s744_s29, %s587_s7  ;;  %s750_s5 = int_to_ptr.vmem [resolvable:$true] %s172_s5 }
  0x11   : > { %p589_p11 = pneg %p746_p9  ;;  %s592_s10 = scalar_lea.hbm %s827_s0, 1536 }
  0x12   : > { %p593_p0 = scmp.lt.u32.totalorder %s744_s29, %s827_s0  ;;  %p594_p1 = scmp.lt.u32.totalorder %s592_s10, %s587_s7 }
  0x13   : > { %p590_p12 = pnand %p589_p11, %p588_p10  ;;  %p596_p3 = scmp.lt.u32.totalorder %s587_s7, %s744_s29 }
  0x14   : > { %p595_p2 = por %p594_p1, %p593_p0 }
  0x15   : > { %p591_p13 = pneg %p590_p12 }
  0x16   : > { %p597_p4 = por %p596_p3, %p595_p2 }
  0x18   : > { %p598_p5 = pnand %p597_p4, %p591_p13 }
  0x1a   : > { %601 = shalt.err (!%p598_p5)
}
  0x1b   : > { %s602_s18 = scalar_lea.vmem %s750_s5, 768  ;;  %s669_s20 = smov [#allocation2]  }
  0x1c   : > { %p603_p6 = scmp.ne.s32.totalorder %s750_s5, %s602_s18  ;;  %s607_s21 = sshll.u32 %s669_s20, 4  ;;  %s608_s21 = int_to_ptr.vmem [resolvable:$false] %s607_s21 }
  0x1d   : > { %s609_s24 = scalar_lea.vmem %s608_s21, 1536  ;;  %p610_p12 = scmp.lt.s32.totalorder %s750_s5, %s608_s21 }
  0x1e   : > { %p605_p8 = pnand %p603_p6, %p589_p11  ;;  %p611_p0 = scmp.lt.s32.totalorder %s609_s24, %s602_s18 }
  0x20   : > { %p606_p10 = pneg %p605_p8  ;;  %p612_p1 = por %p611_p0, %p610_p12 }
  0x22   : > { %p613_p2 = pnand %p612_p1, %p606_p10 }
  0x24   : > { %616 = shalt.err (!%p613_p2)
}
  0x25   : > { %s670_s25 = smov 128   ;;  %s671_s26 = smov 8  }
  0x26   : > { %535 = dma.hbm_to_vmem [thread:$0]  (!%p746_p9), %s744_s29, 768, %s750_s5, %s752_s6, %s670_s25, %s670_s25, %s671_s26  }
  0x27   : > { %p511_p11 = scmp.ge.s32.totalorder %s667_s17, 1  ;;  %p180_p13 = scmp.lt.s32.totalorder %s667_s17, 3 }
  0x29   : > { %p181_p3 = pnand %p511_p11, %p180_p13 }
  0x2a   : > { %s186_s27 = sand.u32 (!%p181_p3), 1, %s651_s13  }
  0x2b   : > { %184 = sbr.rel (%p181_p3) target bundleno = 66 (0x42), region = 24  ;;  %s187_s4 = scalar_lea.sflag (!%p181_p3), [#allocation3], %s186_s27 }
  0x2c   : > { %s529_s28 = smul.u32 (!%p181_p3), 48, %s186_s27 }
  0x2e   : > { %s190_s7 = scalar_lea.vmem (!%p181_p3), [#allocation2], %s529_s28 }
  0x32   : > { %642 = dma.done.wait (%p731_p7), %s187_s4, 768  }
  0x33   : > { %644 = vsyncadd (%p731_p7), %s187_s4, 4294966528  ;;  %p237_p4 = scmp.lt.s32.totalorder %s659_s15, 1  ;;  %v266_v0 = vld [vmem:[%s190_s7] sm:$0xff]  ;;  %v518_v1 = vld [vmem:[%s190_s7 + $0x10] sm:$0xff]  ;;  %vm284_vm0 = vcmask 130048  }
  0x34   : > { %v520_v2 = vld [vmem:[%s190_s7 + $0x20] sm:$0xff]  ;;  %v274_v3 = vmul.f32 0.299, %v266_v0  ;;  %v276_v4 = vmul.f32 0.587, %v518_v1  ;;  %v267_v6 = vld [vmem:[%s190_s7 + $0x8] sm:$0xff] }
  0x35   : > { %s841_s15 = smov (!%p237_p4, %s659_s15), 1  ;;  %v280_v5 = vmul.f32 0.114, %v520_v2  ;;  %v519_v7 = vld [vmem:[%s190_s7 + $0x18] sm:$0xff]  ;;  %v521_v8 = vld [vmem:[%s190_s7 + $0x28] sm:$0xff] }
  0x36   : > { %s789_s29 = sshll.u32 %s841_s15, 4  ;;  %v287_v9 = vmul.f32 0.596, %v266_v0  ;;  %v278_v10 = vadd.f32 %v276_v4, %v274_v3  ;;  %v275_v11 = vmul.f32 0.299, %v267_v6 }
  0x37   : > { %v277_v12 = vmul.f32 0.587, %v519_v7  ;;  %v281_v13 = vmul.f32 0.114, %v521_v8  ;;  %s244_s30 = scalar_lea.vmem %s828_s1, %s789_s29  ;;  %v289_v14 = vmul.f32 0.274, %v518_v1  ;;  %s254_s8 = scalar_lea.vmem %s829_s2, %s789_s29 }
  0x38   : > { %v293_v15 = vmul.f32 0.322, %v520_v2  ;;  %v288_v16 = vmul.f32 0.596, %v267_v6  ;;  %v282_v17 = vadd.f32 %v280_v5, %v278_v10  ;;  %v290_v19 = vmul.f32 0.274, %v519_v7  ;;  %s264_s11 = scalar_lea.vmem %s830_s3, %s789_s29 }
  0x39   : > { %v279_v18 = vadd.f32 %v277_v12, %v275_v11  ;;  %v294_v20 = vmul.f32 0.322, %v521_v8  ;;  %v291_v21 = vsub.f32 %v287_v9, %v289_v14  ;;  %v299_v22 = vmul.f32 0.211, %v266_v0 }
  0x3a   : > { %v301_v23 = vmul.f32 0.523, %v518_v1  ;;  %v305_v24 = vmul.f32 0.312, %v520_v2  ;;  %285 = vst.msk [vmem:[%s244_s30] sm:$0xff] %vm284_vm0, %v282_v17  ;;  %v292_v26 = vsub.f32 %v288_v16, %v290_v19 }
  0x3b   : > { %v283_v25 = vadd.f32 %v281_v13, %v279_v18  ;;  %v300_v27 = vmul.f32 0.211, %v267_v6  ;;  %v302_v28 = vmul.f32 0.523, %v519_v7  ;;  %v295_v29 = vsub.f32 %v291_v21, %v293_v15 }
  0x3c   : > { %v303_v30 = vsub.f32 %v299_v22, %v301_v23  ;;  %v306_v31 = vmul.f32 0.312, %v521_v8  ;;  %v296_v32 = vsub.f32 %v292_v26, %v294_v20 }
  0x3d   : > { %286 = vst.msk [vmem:[%s244_s30 + $0x8] sm:$0xff] %vm284_vm0, %v283_v25  ;;  %v304_v33 = vsub.f32 %v300_v27, %v302_v28  ;;  %297 = vst.msk [vmem:[%s254_s8] sm:$0xff] %vm284_vm0, %v295_v29 }
  0x3e   : > { %v307_v34 = vadd.f32 %v305_v24, %v303_v30  ;;  %298 = vst.msk [vmem:[%s254_s8 + $0x8] sm:$0xff] %vm284_vm0, %v296_v32 }
  0x3f   : > { %v308_v35 = vadd.f32 %v306_v31, %v304_v33 }
  0x40   : > { %309 = vst.msk [vmem:[%s264_s11] sm:$0xff] %vm284_vm0, %v307_v34 }
  0x41   : > { %310 = vst.msk [vmem:[%s264_s11 + $0x8] sm:$0xff] %vm284_vm0, %v308_v35 }
  0x42 PF: > { %s17_s17 = sadd.s32 1, %s667_s17   ;;  %s833_s12 = smov %s651_s13 }
  0x43   : > { %p14_p7 = scmp.ge.s32.totalorder %s17_s17, 4   ;;  %s834_s13 = smov %s655_s14 }
  0x44   : > { %s835_s14 = smov %s737_s23  ;;  %s836_s15 = smov %s663_s16 }
  0x45   : > { %s837_s16 = smov %s839_s19  ;;  %16 = sbr.rel (!%p14_p7) target bundleno = 4 (0x4), region = 90 }
  0x4c   :  { %391 = vsyncpa [#allocation3], 1 }
  0x4d   :  { %393 = vsyncpa [#allocation3 + $0x1], 1 }

// kernel: fsimc.6
= control target key start
LH: loop header
LB: loop body
LE: loop exit
PB: predicated region body
PF: predicated region fallthrough
CT: control target
= control target key end

     0   :  { %s579_s12 = smov 0   ;;  %s581_s13 = smov 0   ;;  %s629_s0 = inlined_call_operand.vmem [shape: f32[2,3,16,16], index: 0, kind: input, shape index: {}]   ;;  %s630_s1 = inlined_call_operand.vmem [shape: f32[2,16,16], index: 1, kind: output, shape index: {0}]   ;;  %s631_s2 = inlined_call_operand.vmem [shape: f32[2,16,16], index: 2, kind: output, shape index: {1}]   ;;  %s632_s3 = inlined_call_operand.vmem [shape: f32[2,16,16], index: 3, kind: output, shape index: {2}]  }
   0x1   :  { %s583_s14 = smov 0  }
   0x2 LB: > { %s26_s15 = sadd.s32 1, %s553_s13  ;;  %p493_p0 = scmp.ge.s32.totalorder %s557_s14, 1  ;;  %s557_s14 = sphi %s583_s14, %s14_s14   ;;  %s553_s13 = sphi %s581_s13, %s634_s13   ;;  %s549_s12 = sphi %s579_s12, %s633_s12  }
   0x3   : > { %p28_p1 = scmp.ge.s32.totalorder %s26_s15, 2  ;;  %p167_p2 = scmp.lt.s32.totalorder %s557_s14, 3 }
   0x5   : > { %s636_s15 = smov (%p28_p1, %s26_s15), 0  ;;  %p168_p3 = pnand %p493_p0, %p167_p2 }
   0x6   : > { %p218_p4 = scmp.lt.s32.totalorder (!%p168_p3), %s549_s12, 1  ;;  %vm275_vm0 = vcmask (!%p168_p3), 130048  }
   0x7   : > { %171 = sbr.rel (%p168_p3) target bundleno = 32 (0x20), region = 24 }
   0xe   : > { %s638_s12 = smov (!%p218_p4, %s549_s12), 1 }
   0xf   : > { %s510_s16 = smul.u32 48, %s638_s12  ;;  %s600_s20 = sshll.u32 %s638_s12, 4 }
  0x10   : > { %s235_s23 = scalar_lea.vmem %s630_s1, %s600_s20  ;;  %s245_s26 = scalar_lea.vmem %s631_s2, %s600_s20 }
  0x11   : > { %s225_s19 = scalar_lea.vmem %s629_s0, %s510_s16  ;;  %s255_s29 = scalar_lea.vmem %s632_s3, %s600_s20 }
  0x12   : > { %v257_v0 = vld [vmem:[%s225_s19] sm:$0xff]  ;;  %v501_v1 = vld [vmem:[%s225_s19 + $0x10] sm:$0xff]  ;;  %v258_v6 = vld [vmem:[%s225_s19 + $0x8] sm:$0xff] }
  0x13   : > { %v503_v2 = vld [vmem:[%s225_s19 + $0x20] sm:$0xff]  ;;  %v265_v3 = vmul.f32 0.299, %v257_v0  ;;  %v267_v4 = vmul.f32 0.587, %v501_v1  ;;  %v502_v7 = vld [vmem:[%s225_s19 + $0x18] sm:$0xff] }
  0x14   : > { %v271_v5 = vmul.f32 0.114, %v503_v2  ;;  %v504_v8 = vld [vmem:[%s225_s19 + $0x28] sm:$0xff]  ;;  %v278_v9 = vmul.f32 0.596, %v257_v0 }
  0x15   : > { %v269_v10 = vadd.f32 %v267_v4, %v265_v3  ;;  %v266_v11 = vmul.f32 0.299, %v258_v6  ;;  %v268_v12 = vmul.f32 0.587, %v502_v7  ;;  %v272_v13 = vmul.f32 0.114, %v504_v8 }
  0x16   : > { %v280_v14 = vmul.f32 0.274, %v501_v1  ;;  %v284_v15 = vmul.f32 0.322, %v503_v2  ;;  %v279_v16 = vmul.f32 0.596, %v258_v6 }
  0x17   : > { %v273_v17 = vadd.f32 %v271_v5, %v269_v10  ;;  %v270_v18 = vadd.f32 %v268_v12, %v266_v11  ;;  %v281_v19 = vmul.f32 0.274, %v502_v7  ;;  %v285_v20 = vmul.f32 0.322, %v504_v8 }
  0x18   : > { %v282_v21 = vsub.f32 %v278_v9, %v280_v14  ;;  %v290_v22 = vmul.f32 0.211, %v257_v0  ;;  %v292_v23 = vmul.f32 0.523, %v501_v1  ;;  %v296_v24 = vmul.f32 0.312, %v503_v2 }
  0x19   : > { %276 = vst.msk [vmem:[%s235_s23] sm:$0xff] %vm275_vm0, %v273_v17  ;;  %v274_v25 = vadd.f32 %v272_v13, %v270_v18  ;;  %v283_v26 = vsub.f32 %v279_v16, %v281_v19  ;;  %v291_v27 = vmul.f32 0.211, %v258_v6  ;;  %v293_v28 = vmul.f32 0.523, %v502_v7 }
  0x1a   : > { %v286_v29 = vsub.f32 %v282_v21, %v284_v15  ;;  %v294_v30 = vsub.f32 %v290_v22, %v292_v23  ;;  %v297_v31 = vmul.f32 0.312, %v504_v8 }
  0x1b   : > { %277 = vst.msk [vmem:[%s235_s23 + $0x8] sm:$0xff] %vm275_vm0, %v274_v25  ;;  %v287_v32 = vsub.f32 %v283_v26, %v285_v20  ;;  %v295_v33 = vsub.f32 %v291_v27, %v293_v28 }
  0x1c   : > { %288 = vst.msk [vmem:[%s245_s26] sm:$0xff] %vm275_vm0, %v286_v29  ;;  %v298_v34 = vadd.f32 %v296_v24, %v294_v30 }
  0x1d   : > { %289 = vst.msk [vmem:[%s245_s26 + $0x8] sm:$0xff] %vm275_vm0, %v287_v32  ;;  %v299_v35 = vadd.f32 %v297_v31, %v295_v33 }
  0x1e   : > { %300 = vst.msk [vmem:[%s255_s29] sm:$0xff] %vm275_vm0, %v298_v34 }
  0x1f   : > { %301 = vst.msk [vmem:[%s255_s29 + $0x8] sm:$0xff] %vm275_vm0, %v299_v35 }
  0x20 PF: > { %s14_s14 = sadd.s32 1, %s557_s14   ;;  %s633_s12 = smov %s553_s13 }
  0x21   : > { %p11_p5 = scmp.ge.s32.totalorder %s14_s14, 4   ;;  %s634_s13 = smov %s636_s15 }
  0x23   :  { %13 = sbr.rel (!%p11_p5) target bundleno = 2 (0x2), region = 80 }

// kernel: fsimc.7
= control target key start
LH: loop header
LB: loop body
LE: loop exit
PB: predicated region body
PF: predicated region fallthrough
CT: control target
= control target key end

     0   :  { %s1179_s0 = inlined_call_operand.vmem [shape: f32[2,4], index: 0, kind: input, shape index: {}]   ;;  %s1180_s1 = inlined_call_operand.vmem [shape: f32[2,4,4,16,16], index: 1, kind: input, shape index: {}]   ;;  %s1181_s2 = inlined_call_operand.vmem [shape: f32[2,4,4,16,16], index: 2, kind: input, shape index: {}]   ;;  %s1182_s3 = inlined_call_operand.vmem [shape: f32[2,16,16], index: 3, kind: output, shape index: {}]  }
   0x1   :  { %s8_s14 = sshll.u32 %s1179_s0, 4  ;;  %s9_s14 = int_to_ptr.vmem [resolvable:$true] %s8_s14 }
   0x2   :  { %s752_s15 = scalar_lea.vmem %s9_s14, 32  ;;  %p757_p1 = scmp.lt.s32.totalorder %s9_s14, %s9_s14 }
   0x3   :  { %p753_p0 = scmp.ne.s32.totalorder %s9_s14, %s752_s15  ;;  %p758_p2 = scmp.lt.s32.totalorder %s752_s15, %s752_s15 }
   0x5   :  { %p759_p3 = por %p758_p2, %p757_p1 }
   0x7   :  { %p760_p4 = pnand %p759_p3, %p753_p0 }
   0x9   :  { %763 = shalt.err (!%p760_p4)  }
   0xa   :  { %s806_s16 = smov [#allocation5]  }
   0xb   :  { %11 = dma.vmem_to_smem %s9_s14, 32, %s806_s16, [#allocation4] }
   0xc   :  { %784 = dma.done.wait [#allocation4], 32 }
   0xd   :  { %785 = vsyncadd [#allocation4], 4294967264 }
   0xe   :  { %13 = sfence }
   0xf   :  { %s831_s17 = smov 0   ;;  %s833_s18 = smov 0  }
  0x10   :  { %s835_s19 = smov 0   ;;  %s837_s0 = smov 0  }
  0x11   :  { %s839_s20 = smov 0  }
  0x12 LB: > { %s31_s21 = sadd.s32 1, %s796_s19  ;;  %s38_s22 = sadd.s32 1, %s800_s0  ;;  %s804_s20 = sphi %s839_s20, %s19_s20   ;;  %s800_s0 = sphi %s837_s0, %s1188_s0   ;;  %s796_s19 = sphi %s835_s19, %s1187_s19   ;;  %s792_s18 = sphi %s833_s18, %s1186_s18   ;;  %s788_s17 = sphi %s831_s17, %s1185_s17  }
  0x13   : > { %p32_p5 = scmp.ge.s32.totalorder %s31_s21, 4  ;;  %p655_p6 = scmp.ge.s32.totalorder %s804_s20, 1 }
  0x14   : > { %p176_p7 = scmp.lt.s32.totalorder %s804_s20, 9 }
  0x15   : > { %s1190_s21 = smov (%p32_p5, %s31_s21), 0  ;;  %s1192_s22 = smov (!%p32_p5, %s38_s22), %s800_s0 }
  0x16   : > { %p177_p8 = pnand %p655_p6, %p176_p7  ;;  %p40_p9 = scmp.ge.s32.totalorder %s1192_s22, 2 }
  0x17   : > { %p224_p10 = scmp.lt.s32.totalorder (!%p177_p8), %s792_s18, 1  ;;  %p226_p11 = scmp.lt.s32.totalorder (!%p177_p8), %s788_s17, 3 }
  0x18   : > { %s1194_s22 = smov (%p40_p9, %s1192_s22), 0  ;;  %180 = sbr.rel (%p177_p8) target bundleno = 126 (0x7e), region = 28 }
  0x19   : > { %p664_p12 = scmp.ne.s32.totalorder (!%p177_p8), %s788_s17, 0 }
  0x1f   : > { %s225_s23 = scalar_select %p224_p10, %s792_s18, 1 }
  0x20   : > { %s227_s24 = scalar_select %p226_p11, %s788_s17, 3 }
  0x21   : > { %s657_s25 = sshll.u32 %s225_s23, 5  ;;  %s681_s26 = sshll.u32 %s225_s23, 4  ;;  %vm265_vm0 = vcmask (!%p664_p12), 130048   ;;  %v807_v0 = vmov (!%p664_p12), 0.0  }
  0x22   : > { %s656_s27 = sshll.u32 %s227_s24, 3  ;;  %s872_s30 = scalar_lea.vmem %s1182_s3, %s681_s26  ;;  %266 = vst.msk [vmem:[#allocation2] sm:$0xff] (!%p664_p12), %vm265_vm0, %v807_v0  ;;  %267 = vst.msk [vmem:[#allocation2 + $0x8] sm:$0xff] (!%p664_p12), %vm265_vm0, %v807_v0 }
  0x23   : > { %s233_s4 = sadd.s32 %s657_s25, %s656_s27  ;;  %264 = sbr.rel (%p664_p12) target bundleno = 42 (0x2a), region = 32  ;;  %268 = vst.msk [vmem:[#allocation3] sm:$0xff] (!%p664_p12), %vm265_vm0, %v807_v0  ;;  %269 = vst.msk [vmem:[#allocation3 + $0x8] sm:$0xff] (!%p664_p12), %vm265_vm0, %v807_v0 }
  0x24   : > { %s658_s5 = sshll.u32 %s233_s4, 3 }
  0x25   : > { %s877_s8 = scalar_lea.vmem %s1180_s1, %s658_s5  ;;  %s882_s11 = scalar_lea.vmem %s1181_s2, %s658_s5 }
  0x2a PF: > { %v886_v1 = vld [vmem:[%s877_s8] sm:$0xff]  ;;  %v892_v3 = vld [vmem:[%s877_s8 + $0x10] sm:$0xff]  ;;  %v919_v14 = vld [vmem:[%s877_s8 + $0x8] sm:$0xff]  ;;  %vm505_vm12 = vcmask 130048   ;;  %s490_s12 = sshra.s32 %s788_s17, 7  ;;  %s495_s15 = sand.u32 127, %s788_s17 }
  0x2b   : > { %v889_v2 = vld [vmem:[%s882_s11] sm:$0xff]  ;;  %v274_v4 = vmul.f32 %v886_v1, %v886_v1  ;;  %v899_v6 = vld [vmem:[%s882_s11 + $0x10] sm:$0xff]  ;;  %v320_v7 = vadd.f32 %v892_v3, %v886_v1  ;;  %v922_v15 = vld [vmem:[%s882_s11 + $0x8] sm:$0xff]  ;;  %v300_v17 = vmul.f32 %v892_v3, %v892_v3  ;;  %v275_v33 = vmul.f32 %v919_v14, %v919_v14  ;;  %s492_s13 = sadd.s32 %s792_s18, %s490_s12  ;;  %p678_p13 = scmp.ne.s32.totalorder %s788_s17, 3 }
  0x2c   : > { %v276_v5 = vmul.f32 %v889_v2, %v889_v2  ;;  %v904_v8 = vld [vmem:[%s877_s8 + $0x20] sm:$0xff]  ;;  %v322_v10 = vadd.f32 %v899_v6, %v889_v2  ;;  %v912_v11 = vld [vmem:[%s877_s8 + $0x30] sm:$0xff]  ;;  %v925_v16 = vld [vmem:[%s877_s8 + $0x18] sm:$0xff]  ;;  %v302_v18 = vmul.f32 %v899_v6, %v899_v6  ;;  %v277_v37 = vmul.f32 %v922_v15, %v922_v15  ;;  %s677_s14 = sshll.u32 %s492_s13, 7 }
  0x2d   : > { %v907_v9 = vld [vmem:[%s882_s11 + $0x20] sm:$0xff]  ;;  %v915_v12 = vld [vmem:[%s882_s11 + $0x30] sm:$0xff]  ;;  %v352_v13 = vadd.f32 %v904_v8, %v320_v7  ;;  %v933_v20 = vld [vmem:[%s882_s11 + $0x18] sm:$0xff]  ;;  %v332_v22 = vmul.f32 %v904_v8, %v904_v8  ;;  %v321_v28 = vadd.f32 %v925_v16, %v919_v14  ;;  %v364_v30 = vmul.f32 %v912_v11, %v912_v11  ;;  %s496_s16 = sadd.s32 %s677_s14, %s495_s15 }
  0x2e   : > { %v354_v19 = vadd.f32 %v907_v9, %v322_v10  ;;  %v935_v21 = vadd.f32 %v276_v5, %v274_v4  ;;  %v334_v23 = vmul.f32 %v907_v9, %v907_v9  ;;  %v945_v25 = vld [vmem:[%s877_s8 + $0x28] sm:$0xff]  ;;  %v323_v29 = vadd.f32 %v933_v20, %v922_v15  ;;  %v966_v34 = vld [vmem:[%s877_s8 + $0x38] sm:$0xff]  ;;  %s1119_s18 = sld [smem:[#allocation5 + %s496_s16]] }
  0x2f   : > { %v942_v24 = vadd.f32 %v912_v11, %v352_v13  ;;  %v948_v26 = vld [vmem:[%s882_s11 + $0x28] sm:$0xff]  ;;  %v366_v31 = vmul.f32 %v915_v12, %v915_v12  ;;  %v969_v35 = vld [vmem:[%s882_s11 + $0x38] sm:$0xff]  ;;  %v353_v38 = vadd.f32 %v945_v25, %v321_v28  ;;  %v977_v40 = vadd.f32 %v302_v18, %v300_v17 }
  0x30   : > { %v951_v27 = vadd.f32 %v915_v12, %v354_v19  ;;  %v355_v39 = vadd.f32 %v948_v26, %v323_v29  ;;  %v979_v41 = vadd.f32 %v334_v23, %v332_v22  ;;  %v301_v42 = vmul.f32 %v925_v16, %v925_v16 }
  0x31   : > { %v390_v32 = vmul.f32 %v942_v24, %v942_v24  ;;  %724 = vrsqrt.f32 %v935_v21  ;;  %v303_v44 = vmul.f32 %v933_v20, %v933_v20  ;;  %v989_v45 = vadd.f32 %v966_v34, %v353_v38 }
  0x32   : > { %v392_v36 = vmul.f32 %v951_v27, %v951_v27  ;;  %v992_v46 = vadd.f32 %v969_v35, %v355_v39  ;;  %v994_v47 = vadd.f32 %v366_v31, %v364_v30  ;;  %v333_v48 = vmul.f32 %v945_v25, %v945_v25 }
  0x33   : > { %v335_v49 = vmul.f32 %v948_v26, %v948_v26  ;;  %v1001_v50 = vadd.f32 %v277_v37, %v275_v33  ;;  %v365_v51 = vmul.f32 %v966_v34, %v966_v34  ;;  %v367_v52 = vmul.f32 %v969_v35, %v969_v35 }
  0x34   : > { %v984_v43 = vadd.f32 %v392_v36, %v390_v32  ;;  %v391_v53 = vmul.f32 %v989_v45, %v989_v45  ;;  %v393_v54 = vmul.f32 %v992_v46, %v992_v46  ;;  %v1012_v55 = vadd.f32 %v303_v44, %v301_v42 }
  0x35   : > { %v1015_v56 = vadd.f32 %v335_v49, %v333_v48  ;;  %v1020_v58 = vadd.f32 %v367_v52, %v365_v51  ;;  %vm282_vm1 = vcmp.eq.f32.partialorder %v935_v21, inf  ;;  %vm284_vm3 = vcmp.eq.f32.partialorder %v935_v21, 0.0 }
  0x36   : > { %726 = vrsqrt.f32 %v984_v43  ;;  %v1017_v57 = vadd.f32 %v393_v54, %v391_v53  ;;  %vm398_vm2 = vcmp.eq.f32.partialorder %v984_v43, inf  ;;  %v285_v59 = vand.u32 2147483648, %v935_v21 }
  0x37   : > { %728 = vrsqrt.f32 %v977_v40  ;;  %vm400_vm4 = vcmp.eq.f32.partialorder %v984_v43, 0.0  ;;  %v401_v60 = vand.u32 2147483648, %v984_v43  ;;  %vm308_vm5 = vcmp.eq.f32.partialorder %v977_v40, inf }
  0x38   : > { %730 = vrsqrt.f32 %v979_v41  ;;  %vm310_vm6 = vcmp.eq.f32.partialorder %v977_v40, 0.0  ;;  %v311_v62 = vand.u32 2147483648, %v977_v40  ;;  %vm340_vm7 = vcmp.eq.f32.partialorder %v979_v41, inf }
  0x39   : > { %732 = vrsqrt.f32 %v994_v47  ;;  %vm342_vm8 = vcmp.eq.f32.partialorder %v979_v41, 0.0  ;;  %v343_v0 = vand.u32 2147483648, %v979_v41  ;;  %vm372_vm9 = vcmp.eq.f32.partialorder %v994_v47, inf }
  0x3a   : > { %734 = vrsqrt.f32 %v1001_v50  ;;  %vm405_vm10 = vcmp.eq.f32.partialorder %v1017_v57, inf  ;;  %vm374_vm11 = vcmp.eq.f32.partialorder %v994_v47, 0.0  ;;  %v375_v4 = vand.u32 2147483648, %v994_v47 }
  0x3b   : > { %736 = vrsqrt.f32 %v1017_v57  ;;  %v725_v61 = vpop.eup %724  ;;  %v408_v7 = vand.u32 2147483648, %v1017_v57  ;;  %vm289_vm13 = vcmp.eq.f32.partialorder %v1001_v50, inf  ;;  %vm291_vm14 = vcmp.eq.f32.partialorder %v1001_v50, 0.0 }
  0x3c   : > { %738 = vrsqrt.f32 %v1012_v55  ;;  %v281_v63 = vmul.f32 %v725_v61, %v935_v21  ;;  %v292_v18 = vand.u32 2147483648, %v1001_v50  ;;  %vm317_vm0 = vcmp.eq.f32.partialorder %v1012_v55, 0.0 }
  0x3d   : > { %740 = vrsqrt.f32 %v1015_v56  ;;  %v318_v23 = vand.u32 2147483648, %v1012_v55  ;;  %vm349_vm15 = vcmp.eq.f32.partialorder %v1015_v56, 0.0  ;;  %v350_v38 = vand.u32 2147483648, %v1015_v56 }
  0x3e   : > { %742 = vrsqrt.f32 %v1020_v58  ;;  %v283_v10 = vsel %vm282_vm1, %v935_v21, %v281_v63  ;;  %vm347_vm1 = vcmp.eq.f32.partialorder %v1015_v56, inf }
  0x3f   : > { %v286_v30 = vsel %vm284_vm3, %v285_v59, %v283_v10  ;;  %vm1184_vm3 = vcmp.eq.f32.partialorder %v1012_v55, inf  ;;  %v382_v10 = vand.u32 2147483648, %v1020_v58 }
  0x40   : > { %v727_v5 = vpop.eup %726 }
  0x41   : > { %v729_v13 = vpop.eup %728  ;;  %v397_v17 = vmul.f32 %v727_v5, %v984_v43 }
  0x42   : > { %v731_v19 = vpop.eup %730  ;;  %v307_v22 = vmul.f32 %v729_v13, %v977_v40 }
  0x43   : > { %v733_v28 = vpop.eup %732  ;;  %v399_v29 = vsel %vm398_vm2, %v984_v43, %v397_v17  ;;  %v339_v31 = vmul.f32 %v731_v19, %v979_v41  ;;  %vm1183_vm2 = vcmp.eq.f32.partialorder %v1017_v57, 0.0 }
  0x44   : > { %v735_v32 = vpop.eup %734  ;;  %v402_v33 = vsel %vm400_vm4, %v401_v60, %v399_v29  ;;  %v309_v36 = vsel %vm308_vm5, %v977_v40, %v307_v22  ;;  %v371_v37 = vmul.f32 %v733_v28, %v994_v47  ;;  %vm379_vm4 = vcmp.eq.f32.partialorder %v1020_v58, inf  ;;  %v509_v29 = vld [vmem:[#allocation3 + $0x8] sm:$0xff] }
  0x45   : > { %v737_v39 = vpop.eup %736  ;;  %v410_v42 = vadd.f32 0.0001, %v402_v33  ;;  %v312_v21 = vsel %vm310_vm6, %v311_v62, %v309_v36  ;;  %v341_v44 = vsel %vm340_vm7, %v979_v41, %v339_v31  ;;  %v288_v43 = vmul.f32 %v735_v32, %v1001_v50 }
  0x46   : > { %v739_v48 = vpop.eup %738  ;;  %v404_v49 = vmul.f32 %v737_v39, %v1017_v57  ;;  %v324_v51 = vadd.f32 %v312_v21, %v286_v30  ;;  %v344_v52 = vsel %vm342_vm8, %v343_v0, %v341_v44  ;;  %v373_v40 = vsel %vm372_vm9, %v994_v47, %v371_v37 }
  0x47   : > { %v741_v53 = vpop.eup %740  ;;  %744 = vrcp.f32 %v410_v42  ;;  %v376_v54 = vsel %vm374_vm11, %v375_v4, %v373_v40  ;;  %v290_v59 = vsel %vm289_vm13, %v1001_v50, %v288_v43  ;;  %v314_v60 = vmul.f32 %v739_v48, %v1012_v55  ;;  %v508_v4 = vld [vmem:[#allocation3] sm:$0xff] }
  0x48   : > { %v406_v41 = vsel %vm405_vm10, %v1017_v57, %v404_v49  ;;  %v356_v61 = vadd.f32 %v344_v52, %v324_v51  ;;  %v293_v62 = vsel %vm291_vm14, %v292_v18, %v290_v59  ;;  %v346_v63 = vmul.f32 %v741_v53, %v1015_v56  ;;  %v743_v0 = vpop.eup %742 }
  0x49   : > { %v409_v47 = vsel %vm1183_vm2, %v408_v7, %v406_v41  ;;  %v316_v5 = vsel %vm1184_vm3, %v1012_v55, %v314_v60  ;;  %v378_v19 = vmul.f32 %v743_v0, %v1020_v58  ;;  %vm381_vm5 = vcmp.eq.f32.partialorder %v1020_v58, 0.0 }
  0x4a   : > { %v411_v13 = vadd.f32 0.0001, %v409_v47  ;;  %v388_v50 = vadd.f32 %v376_v54, %v356_v61  ;;  %v319_v17 = vsel %vm317_vm0, %v318_v23, %v316_v5  ;;  %v348_v18 = vsel %vm347_vm1, %v1015_v56, %v346_v63 }
  0x4b   : > { %v325_v57 = vadd.f32 %v319_v17, %v293_v62  ;;  %v351_v7 = vsel %vm349_vm15, %v350_v38, %v348_v18  ;;  %v380_v55 = vsel %vm379_vm4, %v1020_v58, %v378_v19  ;;  %v498_v62 = vstv %s1119_s18 }
  0x4c   : > { %v510_v22 = vadd.f32 %v508_v4, %v388_v50  ;;  %746 = vrcp.f32 %v411_v13  ;;  %v383_v23 = vsel %vm381_vm5, %v382_v10, %v380_v55 }
  0x4d   : > { %v357_v28 = vadd.f32 %v351_v7, %v325_v57 }
  0x4e   : > { %512 = vst.msk [vmem:[#allocation3] sm:$0xff] %vm505_vm12, %v510_v22 }
  0x4f   : > { %v389_v30 = vadd.f32 %v383_v23, %v357_v28 }
  0x51   : > { %v745_v31 = vpop.eup %744  ;;  %v511_v56 = vadd.f32 %v509_v29, %v389_v30 }
  0x52   : > { %v414_v32 = vmul.f32 %v745_v31, %v942_v24  ;;  %v416_v33 = vmul.f32 %v745_v31, %v951_v27 }
  0x53   : > { %513 = vst.msk [vmem:[#allocation3 + $0x8] sm:$0xff] %vm505_vm12, %v511_v56 }
  0x54   : > { %v418_v36 = vmul.f32 %v414_v32, %v886_v1  ;;  %v420_v58 = vmul.f32 %v416_v33, %v889_v2  ;;  %v424_v37 = vmul.f32 %v416_v33, %v886_v1  ;;  %v426_v38 = vmul.f32 %v414_v32, %v889_v2 }
  0x55   : > { %v434_v39 = vmul.f32 %v892_v3, %v414_v32  ;;  %v436_v42 = vmul.f32 %v899_v6, %v416_v33  ;;  %v440_v24 = vmul.f32 %v892_v3, %v416_v33  ;;  %v442_v27 = vmul.f32 %v899_v6, %v414_v32 }
  0x56   : > { %v422_v21 = vadd.f32 %v420_v58, %v418_v36  ;;  %v428_v44 = vsub.f32 %v424_v37, %v426_v38  ;;  %v452_v43 = vmul.f32 %v904_v8, %v414_v32  ;;  %v454_v48 = vmul.f32 %v907_v9, %v416_v33  ;;  %v747_v49 = vpop.eup %746 }
  0x57   : > { %v438_v51 = vadd.f32 %v436_v42, %v434_v39  ;;  %v444_v1 = vsub.f32 %v440_v24, %v442_v27  ;;  %v458_v2 = vmul.f32 %v904_v8, %v416_v33  ;;  %v460_v52 = vmul.f32 %v907_v9, %v414_v32  ;;  %v488_v42 = vld [vmem:[#allocation2] sm:$0xff] }
  0x58   : > { %v430_v40 = vand.u32 2147483647, %v428_v44  ;;  %v456_v53 = vadd.f32 %v454_v48, %v452_v43  ;;  %v470_v3 = vmul.f32 %v912_v11, %v414_v32  ;;  %v472_v6 = vmul.f32 %v915_v12, %v416_v33 }
  0x59   : > { %v446_v54 = vand.u32 2147483647, %v444_v1  ;;  %v462_v59 = vsub.f32 %v458_v2, %v460_v52  ;;  %v476_v60 = vmul.f32 %v912_v11, %v416_v33  ;;  %v478_v41 = vmul.f32 %v915_v12, %v414_v32  ;;  %v489_v52 = vld [vmem:[#allocation2 + $0x8] sm:$0xff] }
  0x5a   : > { %v432_v61 = vsub.f32 %v422_v21, %v430_v40  ;;  %v415_v63 = vmul.f32 %v747_v49, %v989_v45  ;;  %v417_v8 = vmul.f32 %v747_v49, %v992_v46  ;;  %v474_v47 = vadd.f32 %v472_v6, %v470_v3  ;;  %v521_v3 = vld [vmem:[#allocation3 + $0x8] sm:$0xff] (!%p678_p13) }
  0x5b   : > { %v448_v0 = vsub.f32 %v438_v51, %v446_v54  ;;  %v464_v9 = vand.u32 2147483647, %v462_v59  ;;  %v480_v4 = vsub.f32 %v476_v60, %v478_v41 }
  0x5c   : > { %v419_v5 = vmul.f32 %v415_v63, %v919_v14  ;;  %v421_v10 = vmul.f32 %v417_v8, %v922_v15  ;;  %v425_v13 = vmul.f32 %v417_v8, %v919_v14  ;;  %v427_v11 = vmul.f32 %v415_v63, %v922_v15 }
  0x5d   : > { %v450_v50 = vadd.f32 %v448_v0, %v432_v61  ;;  %v466_v12 = vsub.f32 %v456_v53, %v464_v9  ;;  %v482_v17 = vand.u32 2147483647, %v480_v4  ;;  %v435_v18 = vmul.f32 %v925_v16, %v415_v63 }
  0x5e   : > { %v423_v45 = vadd.f32 %v421_v10, %v419_v5  ;;  %v429_v57 = vsub.f32 %v425_v13, %v427_v11  ;;  %v437_v46 = vmul.f32 %v933_v20, %v417_v8  ;;  %v441_v7 = vmul.f32 %v925_v16, %v417_v8 }
  0x5f   : > { %v468_v19 = vadd.f32 %v466_v12, %v450_v50  ;;  %v484_v22 = vsub.f32 %v474_v47, %v482_v17  ;;  %v443_v28 = vmul.f32 %v933_v20, %v415_v63  ;;  %v453_v55 = vmul.f32 %v945_v25, %v415_v63 }
  0x60   : > { %v431_v14 = vand.u32 2147483647, %v429_v57  ;;  %v439_v23 = vadd.f32 %v437_v46, %v435_v18  ;;  %v455_v15 = vmul.f32 %v948_v26, %v417_v8  ;;  %v459_v29 = vmul.f32 %v945_v25, %v417_v8 }
  0x61   : > { %v486_v30 = vadd.f32 %v484_v22, %v468_v19  ;;  %v445_v31 = vsub.f32 %v441_v7, %v443_v28  ;;  %v461_v56 = vmul.f32 %v948_v26, %v415_v63  ;;  %v471_v32 = vmul.f32 %v966_v34, %v415_v63 }
  0x62   : > { %v433_v33 = vsub.f32 %v423_v45, %v431_v14  ;;  %v457_v16 = vadd.f32 %v455_v15, %v453_v55  ;;  %v473_v36 = vmul.f32 %v969_v35, %v417_v8  ;;  %v477_v20 = vmul.f32 %v966_v34, %v417_v8 }
  0x63   : > { %v499_v58 = vsub.f32 %v486_v30, %v498_v62  ;;  %v447_v37 = vand.u32 2147483647, %v445_v31  ;;  %v463_v38 = vsub.f32 %v459_v29, %v461_v56  ;;  %v479_v39 = vmul.f32 %v969_v35, %v415_v63  ;;  %v520_v35 = vld [vmem:[#allocation3] sm:$0xff] (!%p678_p13) }
  0x64   : > { %v475_v24 = vadd.f32 %v473_v36, %v471_v32  ;;  %748 = vrcp.f32 (!%p678_p13), %v520_v35 }
  0x65   : > { %v501_v25 = vmax.f32 %v499_v58, 0.0  ;;  %v449_v27 = vsub.f32 %v439_v23, %v447_v37  ;;  %v465_v21 = vand.u32 2147483647, %v463_v38  ;;  %v481_v44 = vsub.f32 %v477_v20, %v479_v39 }
  0x66   : > { %750 = vrcp.f32 (!%p678_p13), %v521_v3 }
  0x67   : > { %v503_v26 = vadd.f32 %v501_v25, %v488_v42  ;;  %v451_v43 = vadd.f32 %v449_v27, %v433_v33  ;;  %v467_v48 = vsub.f32 %v457_v16, %v465_v21  ;;  %v483_v49 = vand.u32 2147483647, %v481_v44 }
  0x69   : > { %506 = vst.msk [vmem:[#allocation2] sm:$0xff] %vm505_vm12, %v503_v26  ;;  %v469_v51 = vadd.f32 %v467_v48, %v451_v43  ;;  %v485_v1 = vsub.f32 %v475_v24, %v483_v49 }
  0x6b   : > { %v487_v34 = vadd.f32 %v485_v1, %v469_v51 }
  0x6d   : > { %v500_v2 = vsub.f32 %v487_v34, %v498_v62  ;;  %517 = sbr.rel (%p678_p13) target bundleno = 126 (0x7e), region = 36 }
  0x6e   : > { %v749_v59 = vpop.eup (!%p678_p13), %748 }
  0x6f   : > { %v502_v40 = vmax.f32 %v500_v2, 0.0 }
  0x70   : > { %v518_v6 = vld [vmem:[#allocation2] sm:$0xff] (!%p678_p13)  ;;  %v751_v60 = vpop.eup (!%p678_p13), %750 }
  0x71   : > { %v504_v53 = vadd.f32 %v502_v40, %v489_v52  ;;  %v523_v41 = vmul.f32 (!%p678_p13), %v749_v59, %v518_v6 }
  0x73   : > { %507 = vst.msk [vmem:[#allocation2 + $0x8] sm:$0xff] %vm505_vm12, %v504_v53  ;;  %526 = vst.msk [vmem:[%s872_s30] sm:$0xff] (!%p678_p13), %vm505_vm12, %v523_v41 }
  0x7a   : > { %v519_v54 = vld [vmem:[#allocation2 + $0x8] sm:$0xff] }
  0x7b   : > { %v525_v61 = vmul.f32 %v751_v60, %v519_v54 }
  0x7d   : > { %527 = vst.msk [vmem:[%s872_s30 + $0x8] sm:$0xff] %vm505_vm12, %v525_v61 }
  0x7e PF: > { %s19_s20 = sadd.s32 1, %s804_s20   ;;  %s1185_s17 = smov %s796_s19 }
  0x7f   : > { %p16_p0 = scmp.ge.s32.totalorder %s19_s20, 10   ;;  %s1186_s18 = smov %s800_s0 }
  0x80   : > { %s1187_s19 = smov %s1190_s21  ;;  %s1188_s0 = smov %s1194_s22 }
  0x81   :  { %18 = sbr.rel (!%p16_p0) target bundleno = 18 (0x12), region = 75 }

// kernel: fsimc.9
= control target key start
LH: loop header
LB: loop body
LE: loop exit
PB: predicated region body
PF: predicated region fallthrough
CT: control target
= control target key end

     0   :  { %s2025_s21 = smov 0   ;;  %s2027_s22 = smov 0   ;;  %s2363_s0 = inlined_call_operand.vmem [shape: f32[2,16,16], index: 0, kind: input, shape index: {}, may-alias: {0,1,2}]   ;;  %s2364_s1 = inlined_call_operand.vmem [shape: f32[2,16,16], index: 1, kind: input, shape index: {}, may-alias: {0,1,2}]   ;;  %s2365_s2 = inlined_call_operand.vmem [shape: f32[2,16,16], index: 2, kind: input, shape index: {}, may-alias: {0,1,2}]   ;;  %s2366_s3 = inlined_call_operand.vmem [shape: f32[2,16,16], index: 3, kind: input, shape index: {}, may-alias: {3,4,5}]   ;;  %s2367_s4 = inlined_call_operand.vmem [shape: f32[2,16,16], index: 4, kind: input, shape index: {}, may-alias: {3,4,5}]   ;;  %s2368_s5 = inlined_call_operand.vmem [shape: f32[2,16,16], index: 5, kind: input, shape index: {}, may-alias: {3,4,5}]   ;;  %s2369_s6 = inlined_call_operand.vmem [shape: f32[2,16,16], index: 6, kind: input, shape index: {}]   ;;  %s2370_s7 = inlined_call_operand.vmem [shape: f32[2,16,16], index: 7, kind: input, shape index: {}]   ;;  %s2371_s8 = inlined_call_operand.vmem [shape: f32[2,16,16], index: 8, kind: input, shape index: {}]   ;;  %s2372_s9 = inlined_call_operand.vmem [shape: f32[2,16,16], index: 9, kind: input, shape index: {}]   ;;  %s2373_s10 = inlined_call_operand.vmem [shape: f32[2,16,16], index: 10, kind: input, shape index: {}]   ;;  %s2374_s11 = inlined_call_operand.vmem [shape: f32[2,16,16], index: 11, kind: input, shape index: {}]   ;;  %s2375_s12 = inlined_call_operand.vmem [shape: f32[2,1,1,16], index: 12, kind: output, shape index: {0}]   ;;  %s2376_s13 = inlined_call_operand.vmem [shape: f32[2,1,1,16], index: 13, kind: output, shape index: {1}]  }
   0x1   :  { %s2029_s23 = smov 0  }
   0x2 LB: > { %s36_s24 = sadd.s32 1, %s1945_s22  ;;  %p1786_p0 = scmp.ge.s32.totalorder %s1949_s23, 1  ;;  %s1949_s23 = sphi %s2029_s23, %s24_s23   ;;  %s1945_s22 = sphi %s2027_s22, %s2378_s22   ;;  %s1941_s21 = sphi %s2025_s21, %s2377_s21  }
   0x3   : > { %p38_p1 = scmp.ge.s32.totalorder %s36_s24, 2  ;;  %p656_p2 = scmp.lt.s32.totalorder %s1949_s23, 3 }
   0x5   : > { %s2380_s24 = smov (%p38_p1, %s36_s24), 0  ;;  %p657_p3 = pnand %p1786_p0, %p656_p2 }
   0x6   : > { %p823_p4 = scmp.lt.s32.totalorder (!%p657_p3), %s1941_s21, 1  ;;  %s1951_s16 = smov (!%p657_p3), 16   ;;  %v1952_v18 = vmov (!%p657_p3), 0.0   ;;  %vm1454_vm2 = vcmask (!%p657_p3), 130048   ;;  %vm1464_vm3 = vcmask (!%p657_p3), 122880   ;;  %vm1016_vm4 = vcmask (!%p657_p3), 1047680  }
   0x7   : > { %660 = sbr.rel (%p657_p3) target bundleno = 484 (0x1e4), region = 68  ;;  %s1953_s26 = smov (!%p657_p3), 113  }
   0x8   : > { %s1954_s27 = smov (!%p657_p3), 127  }
   0xe   : > { %s2382_s21 = smov (!%p823_p4, %s1941_s21), 1 }
   0xf   : > { %s2046_s25 = sshll.u32 %s2382_s21, 4  ;;  %s977_s20 = scalar_lea.vmem %s2376_s13, %s2382_s21 }
  0x10   : > { %s830_s28 = scalar_lea.vmem %s2363_s0, %s2046_s25  ;;  %s914_s1 = scalar_lea.vmem %s2369_s6, %s2046_s25 }
  0x11   : > { %s924_s15 = scalar_lea.vmem %s2370_s7, %s2046_s25  ;;  %v2060_v0 = vld [vmem:[%s830_s28] sm:$0xff]  ;;  %v1363_v2 = vld [vmem:[%s914_s1 + $0x8] sm:$0xff]  ;;  %s872_s18 = scalar_lea.vmem %s2366_s3, %s2046_s25 }
  0x12   : > { %v1362_v1 = vld [vmem:[%s914_s1] sm:$0xff]  ;;  %v1365_v4 = vld [vmem:[%s924_s15 + $0x8] sm:$0xff]  ;;  %v1367_v6 = vmul.f32 2.0, %v1363_v2  ;;  %v1373_v8 = vmul.f32 %v1363_v2, %v1363_v2  ;;  %1017 = vrot.lane.b32.xlu0 %v2060_v0, %s1951_s16  ;;  %s934_s30 = scalar_lea.vmem %s2371_s8, %s2046_s25  ;;  %s954_s2 = scalar_lea.vmem %s2373_s10, %s2046_s25 }
  0x13   : > { %v1364_v3 = vld [vmem:[%s924_s15] sm:$0xff]  ;;  %v1366_v5 = vmul.f32 2.0, %v1362_v1  ;;  %v1372_v7 = vmul.f32 %v1362_v1, %v1362_v1  ;;  %v1375_v10 = vmul.f32 %v1365_v4, %v1365_v4  ;;  %v2076_v15 = vld [vmem:[%s830_s28 + $0x8] sm:$0xff]  ;;  %vm1385_vm1 = vcmp.gt.f32.partialorder %v1363_v2, %v1365_v4  ;;  %s944_s17 = scalar_lea.vmem %s2372_s9, %s2046_s25  ;;  %s964_s5 = scalar_lea.vmem %s2374_s11, %s2046_s25 }
  0x14   : > { %v1374_v9 = vmul.f32 %v1364_v3, %v1364_v3  ;;  %v2066_v12 = vmul.f32 %v1367_v6, %v1365_v4  ;;  %v2078_v16 = vld [vmem:[%s872_s18] sm:$0xff]  ;;  %v2084_v17 = vld [vmem:[%s872_s18 + $0x8] sm:$0xff]  ;;  %vm1384_vm0 = vcmp.gt.f32.partialorder %v1362_v1, %v1364_v3  ;;  %v2091_v20 = vsel %vm1385_vm1, %v1363_v2, %v1365_v4 }
  0x15   : > { %v2064_v11 = vmul.f32 %v1366_v5, %v1364_v3  ;;  %v2074_v14 = vadd.f32 %v1375_v10, %v1373_v8  ;;  %1184 = vrot.lane.b32.xlu1 %v2078_v16, %s1951_s16  ;;  %v2089_v19 = vsel %vm1384_vm0, %v1362_v1, %v1364_v3  ;;  %v1469_v22 = vsel %vm1454_vm2, %v2091_v20, 0.0 }
  0x16   : > { %v2072_v13 = vadd.f32 %v1374_v9, %v1372_v7  ;;  %1020 = vrot.lane.b32.xlu0 %v2076_v15, %s1951_s16  ;;  %v1468_v21 = vsel %vm1454_vm2, %v2089_v19, 0.0 }
  0x17   : > { %v1470_v23 = vadd.f32 %v1469_v22, %v1468_v21  ;;  %v1370_v8 = vadd.f32 0.85, %v2064_v11  ;;  %v1371_v21 = vadd.f32 0.85, %v2066_v12  ;;  %v1388_v11 = vld [vmem:[%s934_s30] sm:$0xff] }
  0x18   : > { %v1378_v6 = vadd.f32 0.85, %v2072_v13  ;;  %v1390_v12 = vld [vmem:[%s954_s2] sm:$0xff] }
  0x19   : > { %1187 = vrot.lane.b32.xlu1 %v2084_v17, %s1951_s16  ;;  %v1471_v24 = vrot.slane %v1470_v23, 4 }
  0x1a   : > { %1856 = vrot.lane.b32.xlu0 %v1952_v18, %s1951_s16  ;;  %1895 = vrcp.f32 %v1378_v6 }
  0x1b   : > { %v1472_v25 = vadd.f32 %v1471_v24, %v1470_v23  ;;  %v1394_v23 = vld [vmem:[%s964_s5] sm:$0xff]  ;;  %v1389_v24 = vld [vmem:[%s934_s30 + $0x8] sm:$0xff] }
  0x1d   : > { %1861 = vrot.lane.b32.xlu1 %v1952_v18, %s1951_s16  ;;  %v1473_v26 = vrot.slane %v1472_v25, 2  ;;  %v1379_v18 = vadd.f32 0.85, %v2074_v14  ;;  %v1392_v14 = vld [vmem:[%s944_s17] sm:$0xff] }
  0x1f   : > { %v1474_v27 = vadd.f32 %v1473_v26, %v1472_v25  ;;  %1897 = vrcp.f32 %v1379_v18  ;;  %v1391_v25 = vld [vmem:[%s954_s2 + $0x8] sm:$0xff]  ;;  %v1402_v26 = vmul.f32 %v1388_v11, %v1388_v11 }
  0x21   : > { %v1475_v28 = vrot.slane %v1474_v27, 1 }
  0x23   : > { %v1476_v29 = vadd.f32 %v1475_v28, %v1474_v27  ;;  %v1404_v27 = vmul.f32 %v1390_v12, %v1390_v12  ;;  %v1393_v28 = vld [vmem:[%s944_s17 + $0x8] sm:$0xff] }
  0x24   : > { %v1896_v9 = vpop.eup %1895 }
  0x25   : > { %1477 = vst.msk [vmem:[%s977_s20] sm:$0x1] %vm1464_vm3, %v1476_v29  ;;  %v2135_v10 = vmul.f32 %v1896_v9, %v1370_v8  ;;  %v1395_v29 = vld [vmem:[%s964_s5 + $0x8] sm:$0xff]  ;;  %s971_s20 = scalar_lea.vmem %s2375_s12, %s2382_s21 }
  0x29   : > { %v1898_v13 = vpop.eup %1897 }
  0x2a   : > { %v2139_v22 = vmul.f32 %v1898_v13, %v1371_v21 }
  0x84   : > { %v1018_v30 = vpop.permute.xlu0 %1017 }
  0x85   : > { %v1019_v31 = vsel %vm1016_vm4, %v1018_v30, %v2060_v0  ;;  %v1420_v30 = vmul.f32 %v1392_v14, %v1392_v14 }
  0x86   : > { %1023 = vrot.lane.b32.xlu0 %v1019_v31, %s1951_s16  ;;  %v1422_v31 = vmul.f32 %v1394_v23, %v1394_v23 }
  0x87   : > { %v1185_v33 = vpop.permute.xlu1 %1184 }
  0x88   : > { %v1021_v32 = vpop.permute.xlu0 %1020  ;;  %v1186_v35 = vsel %vm1016_vm4, %v1185_v33, %v2078_v16  ;;  %v1405_v33 = vmul.f32 %v1391_v25, %v1391_v25 }
  0x89   : > { %v1022_v34 = vsel %vm1016_vm4, %v1021_v32, %v2076_v15  ;;  %v1403_v32 = vmul.f32 %v1389_v24, %v1389_v24 }
  0x8a   : > { %1025 = vrot.lane.b32.xlu1 %v1022_v34, %s1951_s16  ;;  %1190 = vrot.lane.b32.xlu0 %v1186_v35, %s1951_s16  ;;  %v1406_v34 = vadd.f32 %v1404_v27, %v1402_v26  ;;  %v1421_v35 = vmul.f32 %v1393_v28, %v1393_v28  ;;  %v1122_v26 = vmul.f32 10.0, %v2060_v0 }
  0x8b   : > { %v1188_v37 = vpop.permute.xlu1 %1187 }
  0x8c   : > { %v1857_v36 = vpop.permute.xlu0 %1856  ;;  %v1189_v40 = vsel %vm1016_vm4, %v1188_v37, %v2084_v17  ;;  %v1424_v37 = vadd.f32 %v1422_v31, %v1420_v30 }
  0x8d   : > { %v1859_v38 = vunpack.i.h.bf16 %v1857_v36  ;;  %v1858_v39 = vunpack.i.l.bf16 %v1857_v36  ;;  %v1423_v36 = vmul.f32 %v1395_v29, %v1395_v29 }
  0x8e   : > { %1192 = vrot.lane.b32.xlu1 %v1189_v40, %s1951_s16 }
  0x8f   : > { %v1218_v41 = vsel %vm1016_vm4, %v1859_v38, 0.0  ;;  %v1052_v42 = vsel %vm1016_vm4, %v1858_v39, 0.0  ;;  %v1862_v44 = vpop.permute.xlu1 %1861  ;;  %v1407_v38 = vadd.f32 %v1405_v33, %v1403_v32  ;;  %v1408_v39 = vadd.f32 200.0, %v1406_v34 }
  0x90   : > { %v1865_v43 = vpack.i.bf16 %v1218_v41, %v1052_v42  ;;  %v1864_v45 = vunpack.i.h.bf16 %v1862_v44  ;;  %v1863_v46 = vunpack.i.l.bf16 %v1862_v44  ;;  %v1425_v40 = vadd.f32 %v1423_v36, %v1421_v35 }
  0x91   : > { %v1426_v41 = vadd.f32 200.0, %v1424_v37  ;;  %v1409_v42 = vadd.f32 200.0, %v1407_v38  ;;  %1899 = vrcp.f32 %v1408_v39  ;;  %v1396_v44 = vmul.f32 2.0, %v1388_v11 }
  0x92   : > { %1866 = vrot.lane.b32.xlu0 %v1865_v43, %s1951_s16  ;;  %v1234_v47 = vsel %vm1016_vm4, %v1864_v45, 0.0  ;;  %v1068_v48 = vsel %vm1016_vm4, %v1863_v46, 0.0  ;;  %v1427_v43 = vadd.f32 200.0, %v1425_v40  ;;  %v1414_v45 = vmul.f32 2.0, %v1392_v14 }
  0x93   : > { %v1870_v49 = vpack.i.bf16 %v1234_v47, %v1068_v48  ;;  %1901 = vrcp.f32 %v1426_v41  ;;  %v1397_v46 = vmul.f32 2.0, %v1389_v24  ;;  %v1415_v47 = vmul.f32 2.0, %v1393_v28 }
  0x94   : > { %1903 = vrcp.f32 %v1409_v42  ;;  %v1398_v48 = vmul.f32 %v1396_v44, %v1390_v12  ;;  %v2185_v32 = vmul.f32 10.0, %v2084_v17  ;;  %v1282_v41 = vmul.f32 10.0, %v2078_v16 }
  0x95   : > { %1871 = vrot.lane.b32.xlu1 %v1870_v49, %s1951_s16  ;;  %1905 = vrcp.f32 %v1427_v43  ;;  %v1416_v49 = vmul.f32 %v1414_v45, %v1394_v23 }
  0xf8   : > { %v1024_v50 = vpop.permute.xlu0 %1023 }
  0xf9   : > { %v1027_v61 = vsel %vm1016_vm4, %v1024_v50, %v2060_v0  ;;  %v1399_v50 = vmul.f32 %v1397_v46, %v1391_v25  ;;  %v1123_v25 = vmul.f32 10.0, %v2076_v15 }
  0xfc   : > { %v1191_v51 = vpop.permute.xlu0 %1190  ;;  %v1026_v57 = vpop.permute.xlu1 %1025 }
  0xfd   : > { %v1028_v60 = vsel %vm1016_vm4, %v1026_v57, %v2076_v15  ;;  %v1194_v3 = vsel %vm1016_vm4, %v1191_v51, %v2078_v16  ;;  %v1417_v51 = vmul.f32 %v1415_v47, %v1395_v29 }
 0x100   : > { %v1193_v59 = vpop.permute.xlu1 %1192 }
 0x101   : > { %v1195_v2 = vsel %vm1016_vm4, %v1193_v59, %v2084_v17  ;;  %v1419_v59 = vadd.f32 200.0, %v1417_v51 }
 0x104   : > { %v1867_v52 = vpop.permute.xlu0 %1866 }
 0x105   : > { %v1869_v53 = vunpack.i.h.bf16 %v1867_v52  ;;  %v1868_v54 = vunpack.i.l.bf16 %v1867_v52  ;;  %v1900_v52 = vpop.eup %1899 }
 0x107   : > { %v1221_v55 = vsel %vm1016_vm4, %v1869_v53, 0.0  ;;  %v1055_v56 = vsel %vm1016_vm4, %v1868_v54, 0.0  ;;  %v1872_v62 = vpop.permute.xlu1 %1871  ;;  %v1400_v53 = vadd.f32 200.0, %v1398_v48  ;;  %v1418_v54 = vadd.f32 200.0, %v1416_v49 }
 0x108   : > { %v1880_v58 = vpack.i.bf16 %v1221_v55, %v1055_v56  ;;  %v1874_v63 = vunpack.i.h.bf16 %v1872_v62  ;;  %v1873_v1 = vunpack.i.l.bf16 %v1872_v62  ;;  %v978_v55 = vlaneseq  ;;  %v1902_v56 = vpop.eup %1901 }
 0x109   : > { %v1904_v57 = vpop.eup %1903  ;;  %v1429_v62 = vmul.f32 %v1902_v56, %v1418_v54 }
 0x10a   : > { %1881 = vrot.lane.b32.xlu1 %v1880_v58, %s1953_s26  ;;  %1876 = vrot.lane.b32.xlu0 %v1880_v58, %s1954_s27  ;;  %v1237_v4 = vsel %vm1016_vm4, %v1874_v63, 0.0  ;;  %v1071_v5 = vsel %vm1016_vm4, %v1873_v1, 0.0  ;;  %v1401_v58 = vadd.f32 200.0, %v1399_v50  ;;  %v2157_v63 = vand.u32 127, %v978_v55 }
 0x10b   : > { %v1890_v7 = vpack.i.bf16 %v1237_v4, %v1071_v5  ;;  %v2161_v8 = vshrl.u32 %v978_v55, 7 }
 0x10c   : > { %vm1039_vm5 = vcmp.ge.s32.totalorder %v2157_v63, 1  ;;  %vm1015_vm6 = vcmp.lt.s32.totalorder %v2157_v63, 15 }
 0x10d   : > { %v2173_v24 = vsub.s32 0, %v2161_v8  ;;  %vm1082_vm7 = vcmp.eq.s32.totalorder %v2161_v8, 0  ;;  %vm1086_vm8 = vcmp.lt.s32.totalorder %v2161_v8, 1  ;;  %vm1105_vm9 = vcmp.lt.s32.totalorder %v2161_v8, 7 }
 0x10e   : > { %1033 = vrot.lane.b32.xlu1 %v1028_v60, %s1954_s27  ;;  %1031 = vrot.lane.b32.xlu0 %v1027_v61, %s1954_s27  ;;  %v2205_v51 = vadd.s32 8, %v2161_v8 }
 0x110   : > { %vm1102_vm10 = vcmp.eq.s32.totalorder %v2205_v51, 15 }
 0x112   : > { %1042 = vrot.lane.b32.xlu1 %v1028_v60, %s1953_s26  ;;  %1040 = vrot.lane.b32.xlu0 %v1027_v61, %s1953_s26  ;;  %v1906_v60 = vpop.eup %1905  ;;  %v1411_v61 = vmul.f32 %v1900_v52, %v1400_v53 }
 0x113   : > { %v1431_v4 = vmul.f32 %v1906_v60, %v1419_v59 }
 0x116   : > { %1200 = vrot.lane.b32.xlu1 %v1195_v2, %s1954_s27  ;;  %1198 = vrot.lane.b32.xlu0 %v1194_v3, %s1954_s27 }
 0x11a   : > { %1208 = vrot.lane.b32.xlu1 %v1195_v2, %s1953_s26  ;;  %1206 = vrot.lane.b32.xlu0 %v1194_v3, %s1953_s26  ;;  %v1413_v3 = vmul.f32 %v1904_v57, %v1401_v58 }
 0x11c   : > { %v2169_v14 = vmul.f32 %v1431_v4, %v1413_v3 }
 0x11e   : > { %1891 = vrot.lane.b32.xlu1 %v1890_v7, %s1953_s26  ;;  %1886 = vrot.lane.b32.xlu0 %v1890_v7, %s1954_s27  ;;  %v2159_v7 = vmul.f32 %v1429_v62, %v1411_v61 }
 0x120   : > { %v1434_v23 = vand.u32 2147483647, %v2159_v7 }
 0x122   : > { %1907 = vlog2.f32 %v1434_v23 }
 0x17c   : > { %v1882_v1 = vpop.permute.xlu1 %1881  ;;  %v1877_v2 = vpop.permute.xlu0 %1876 }
 0x17d   : > { %v1883_v5 = vunpack.i.l.bf16 %v1882_v1  ;;  %v1878_v6 = vunpack.i.l.bf16 %v1877_v2  ;;  %v1884_v9 = vunpack.i.h.bf16 %v1882_v1  ;;  %v1879_v18 = vunpack.i.h.bf16 %v1877_v2 }
 0x17f   : > { %v1064_v11 = vsel %vm1039_vm5, %v1883_v5, 0.0  ;;  %v1060_v12 = vsel %vm1015_vm6, %v1878_v6, 0.0  ;;  %v1230_v27 = vsel %vm1039_vm5, %v1884_v9, 0.0  ;;  %v1226_v28 = vsel %vm1015_vm6, %v1879_v18, 0.0 }
 0x180   : > { %v1034_v21 = vpop.permute.xlu1 %1033  ;;  %v1032_v13 = vpop.permute.xlu0 %1031  ;;  %v1065_v29 = vsub.f32 %v1060_v12, %v1064_v11  ;;  %v1130_v17 = vmul.f32 3.0, %v1064_v11  ;;  %v1231_v39 = vsub.f32 %v1226_v28, %v1230_v27  ;;  %v1133_v40 = vmul.f32 3.0, %v1060_v12 }
 0x181   : > { %v1038_v15 = vsel %vm1015_vm6, %v1034_v21, 0.0  ;;  %v1037_v33 = vsel %vm1015_vm6, %v1032_v13, 0.0  ;;  %v1290_v52 = vmul.f32 3.0, %v1230_v27  ;;  %v1293_v53 = vmul.f32 3.0, %v1226_v28 }
 0x182   : > { %v1127_v42 = vmul.f32 3.0, %v1038_v15  ;;  %v1092_v16 = vrot.slane %v1065_v29, %v2173_v24  ;;  %v1255_v55 = vrot.slane %v1231_v39, %v2173_v24  ;;  %v1126_v56 = vmul.f32 3.0, %v1037_v33 }
 0x183   : > { %v1134_v59 = vadd.f32 %v1133_v40, %v1130_v17  ;;  %v2238_v27 = vadd.f32 %v1293_v53, %v1290_v52 }
 0x184   : > { %v1043_v30 = vpop.permute.xlu1 %1042  ;;  %v1041_v31 = vpop.permute.xlu0 %1040 }
 0x185   : > { %v1047_v0 = vsel %vm1039_vm5, %v1043_v30, 0.0  ;;  %v1046_v34 = vsel %vm1039_vm5, %v1041_v31, 0.0  ;;  %v1157_v31 = vrot.slane %v1134_v59, %v2173_v24 }
 0x186   : > { %v2195_v35 = vsub.f32 %v1038_v15, %v1047_v0  ;;  %v1121_v36 = vmul.f32 3.0, %v1047_v0  ;;  %v2197_v37 = vsub.f32 %v1037_v33, %v1046_v34  ;;  %v1120_v38 = vmul.f32 3.0, %v1046_v34 }
 0x188   : > { %v1085_v43 = vrot.slane %v2195_v35, 7  ;;  %v1104_v44 = vrot.slane %v2195_v35, 1  ;;  %v1125_v45 = vadd.f32 %v1123_v25, %v1121_v36  ;;  %v1201_v46 = vpop.permute.xlu1 %1200  ;;  %v1199_v47 = vpop.permute.xlu0 %1198  ;;  %v1084_v48 = vrot.slane %v2197_v37, 7 }
 0x189   : > { %v1103_v49 = vrot.slane %v2197_v37, 1  ;;  %v1124_v50 = vadd.f32 %v1122_v26, %v1120_v38  ;;  %v1097_v61 = vmul.f32 10.0, %v2197_v37  ;;  %v1205_v62 = vsel %vm1015_vm6, %v1201_v46, 0.0 }
 0x18a   : > { %v2208_v54 = vadd.f32 %v1127_v42, %v1125_v45  ;;  %v1088_v57 = vsel %vm1086_vm8, %v1085_v43, %v1084_v48  ;;  %v1204_v6 = vsel %vm1015_vm6, %v1199_v47, 0.0  ;;  %v1087_v15 = vsel %vm1086_vm8, %v1084_v48, %v1085_v43 }
 0x18b   : > { %v1106_v58 = vsel %vm1105_vm9, %v1103_v49, %v1104_v44  ;;  %v1093_v60 = vsel %vm1082_vm7, %v1092_v16, %v1088_v57  ;;  %v2225_v5 = vadd.f32 %v1126_v56, %v1124_v50  ;;  %v1287_v36 = vmul.f32 3.0, %v1205_v62 }
 0x18c   : > { %v1209_v1 = vpop.permute.xlu1 %1208  ;;  %v1207_v2 = vpop.permute.xlu0 %1206  ;;  %v1141_v3 = vrot.slane %v2208_v54, 1  ;;  %v1095_v4 = vmul.f32 3.0, %v1093_v60  ;;  %v1151_v9 = vrot.slane %v2208_v54, 7  ;;  %v1114_v18 = vmul.f32 3.0, %v1106_v58 }
 0x18d   : > { %v1213_v21 = vsel %vm1039_vm5, %v1209_v1, 0.0  ;;  %v1212_v13 = vsel %vm1039_vm5, %v1207_v2, 0.0  ;;  %v1140_v12 = vrot.slane %v2225_v5, 1  ;;  %v1150_v25 = vrot.slane %v2225_v5, 7 }
 0x18e   : > { %v1099_v11 = vadd.f32 %v1097_v61, %v1095_v4  ;;  %v2236_v26 = vsub.f32 %v1205_v62, %v1213_v21  ;;  %v1281_v28 = vmul.f32 3.0, %v1213_v21  ;;  %v2240_v29 = vsub.f32 %v1204_v6, %v1212_v13 }
 0x18f   : > { %v1280_v30 = vmul.f32 3.0, %v1212_v13  ;;  %v1142_v0 = vsel %vm1105_vm9, %v1140_v12, %v1141_v3  ;;  %v1153_v34 = vsel %vm1086_vm8, %v1151_v9, %v1150_v25  ;;  %v1098_v45 = vmul.f32 10.0, %v2195_v35 }
 0x190   : > { %v1116_v33 = vadd.f32 %v1114_v18, %v1099_v11  ;;  %v1249_v38 = vrot.slane %v2236_v26, 7  ;;  %v1265_v17 = vrot.slane %v2236_v26, 1  ;;  %v1158_v40 = vsel %vm1082_vm7, %v1157_v31, %v1153_v34  ;;  %v1892_v59 = vpop.permute.xlu1 %1891  ;;  %v1887_v60 = vpop.permute.xlu0 %1886 }
 0x191   : > { %v1285_v42 = vadd.f32 %v2185_v32, %v1281_v28  ;;  %v1248_v43 = vrot.slane %v2240_v29, 7  ;;  %v1160_v46 = vsub.f32 %v1142_v0, %v1158_v40  ;;  %v1264_v47 = vrot.slane %v2240_v29, 1 }
 0x192   : > { %v1118_v39 = vmul.f32 0.0625, %v1116_v33  ;;  %v1284_v48 = vadd.f32 %v1282_v41, %v1280_v30  ;;  %v1096_v50 = vmul.f32 3.0, %v1087_v15  ;;  %v1286_v52 = vmul.f32 3.0, %v1204_v6 }
 0x193   : > { %v2265_v53 = vadd.f32 %v1287_v36, %v1285_v42  ;;  %v1251_v16 = vsel %vm1086_vm8, %v1249_v38, %v1248_v43  ;;  %v1162_v56 = vmul.f32 0.0625, %v1160_v46  ;;  %v1266_v58 = vsel %vm1105_vm9, %v1264_v47, %v1265_v17 }
 0x194   : > { %v1164_v57 = vmul.f32 %v1118_v39, %v1118_v39  ;;  %v1256_v32 = vsel %vm1082_vm7, %v1255_v55, %v1251_v16  ;;  %v1250_v41 = vsel %vm1086_vm8, %v1248_v43, %v1249_v38  ;;  %v1260_v1 = vmul.f32 10.0, %v2240_v29 }
 0x195   : > { %v1301_v61 = vrot.slane %v2265_v53, 1  ;;  %v1258_v62 = vmul.f32 3.0, %v1256_v32  ;;  %v1166_v2 = vmul.f32 %v1162_v56, %v1162_v56  ;;  %v1311_v4 = vrot.slane %v2265_v53, 7 }
 0x196   : > { %v1274_v6 = vmul.f32 3.0, %v1266_v58  ;;  %v1288_v18 = vadd.f32 %v1286_v52, %v1284_v48  ;;  %v1894_v55 = vunpack.i.h.bf16 %v1892_v59  ;;  %v1893_v13 = vunpack.i.l.bf16 %v1892_v59 }
 0x197   : > { %v1262_v21 = vadd.f32 %v1260_v1, %v1258_v62  ;;  %v1889_v11 = vunpack.i.h.bf16 %v1887_v60  ;;  %v2278_v28 = vadd.f32 %v1166_v2, %v1164_v57  ;;  %v1888_v15 = vunpack.i.l.bf16 %v1887_v60 }
 0x198   : > { %v1300_v30 = vrot.slane %v1288_v18, 1  ;;  %v1310_v31 = vrot.slane %v1288_v18, 7  ;;  %v1246_v0 = vsel %vm1039_vm5, %v1894_v55, 0.0  ;;  %v1080_v29 = vsel %vm1039_vm5, %v1893_v13, 0.0  ;;  %v1908_v18 = vpop.eup %1907 }
 0x199   : > { %v1276_v33 = vadd.f32 %v1274_v6, %v1262_v21  ;;  %v1242_v34 = vsel %vm1015_vm6, %v1889_v11, 0.0  ;;  %v1317_v36 = vrot.slane %v2238_v27, %v2173_v24  ;;  %v1107_v38 = vsel %vm1105_vm9, %v1104_v44, %v1103_v49 }
 0x19a   : > { %v1100_v39 = vadd.f32 %v1098_v45, %v1096_v50  ;;  %v1259_v40 = vmul.f32 3.0, %v1250_v41  ;;  %v1302_v43 = vsel %vm1105_vm9, %v1300_v30, %v1301_v61  ;;  %v1313_v7 = vsel %vm1086_vm8, %v1311_v4, %v1310_v31 }
 0x19b   : > { %v1278_v42 = vmul.f32 0.0625, %v1276_v33  ;;  %v1295_v23 = vmul.f32 3.0, %v1246_v0  ;;  %v1135_v27 = vmul.f32 3.0, %v1080_v29  ;;  %v1247_v46 = vsub.f32 %v1242_v34, %v1246_v0 }
 0x19c   : > { %1909 = vrsqrt.f32 %v2278_v28  ;;  %v1318_v35 = vsel %vm1082_vm7, %v1317_v36, %v1313_v7  ;;  %v1298_v37 = vmul.f32 3.0, %v1242_v34  ;;  %v1076_v44 = vsel %vm1015_vm6, %v1888_v15, 0.0 }
 0x19d   : > { %v1320_v49 = vsub.f32 %v1302_v43, %v1318_v35  ;;  %v1271_v45 = vrot.slane %v1247_v46, %v2173_v24  ;;  %v1081_v48 = vsub.f32 %v1076_v44, %v1080_v29  ;;  %v1138_v50 = vmul.f32 3.0, %v1076_v44 }
 0x19e   : > { %v1261_v52 = vmul.f32 10.0, %v2236_v26  ;;  %v1267_v53 = vsel %vm1105_vm9, %v1265_v17, %v1264_v47  ;;  %v1324_v16 = vmul.f32 %v1278_v42, %v1278_v42  ;;  %v1299_v56 = vadd.f32 %v1298_v37, %v1295_v23 }
 0x19f   : > { %v1322_v57 = vmul.f32 0.0625, %v1320_v49  ;;  %v1273_v32 = vsel %vm1102_vm10, %v1271_v45, %v1267_v53  ;;  %v1111_v58 = vrot.slane %v1081_v48, %v2173_v24  ;;  %v1139_v63 = vadd.f32 %v1138_v50, %v1135_v27 }
 0x1a0   : > { %v1143_v59 = vsel %vm1105_vm9, %v1141_v3, %v1140_v12  ;;  %v1263_v26 = vadd.f32 %v1261_v52, %v1259_v40  ;;  %v1275_v60 = vmul.f32 3.0, %v1273_v32  ;;  %v1307_v17 = vrot.slane %v1299_v56, %v2173_v24 }
 0x1a1   : > { %v1303_v47 = vsel %vm1105_vm9, %v1301_v61, %v1300_v30  ;;  %v1326_v41 = vmul.f32 %v1322_v57, %v1322_v57  ;;  %v1113_v62 = vsel %vm1102_vm10, %v1111_v58, %v1107_v38  ;;  %v1147_v1 = vrot.slane %v1139_v63, %v2173_v24 }
 0x1a2   : > { %v1312_v2 = vsel %vm1086_vm8, %v1310_v31, %v1311_v4  ;;  %v1277_v6 = vadd.f32 %v1275_v60, %v1263_v26  ;;  %v1309_v3 = vsel %vm1102_vm10, %v1307_v17, %v1303_v47  ;;  %v1115_v12 = vmul.f32 3.0, %v1113_v62 }
 0x1a3   : > { %v1152_v61 = vsel %vm1086_vm8, %v1150_v25, %v1151_v9  ;;  %v1328_v21 = vadd.f32 %v1326_v41, %v1324_v16  ;;  %v1321_v55 = vsub.f32 %v1309_v3, %v1312_v2  ;;  %v1149_v24 = vsel %vm1102_vm10, %v1147_v1, %v1143_v59 }
 0x1a4   : > { %v1279_v13 = vmul.f32 0.0625, %v1277_v6  ;;  %v1117_v4 = vadd.f32 %v1115_v12, %v1100_v39  ;;  %v1161_v11 = vsub.f32 %v1149_v24, %v1152_v61  ;;  %v1435_v31 = vand.u32 2147483647, %v2169_v14 }
 0x1a5   : > { %1911 = vrsqrt.f32 %v1328_v21  ;;  %v1323_v15 = vmul.f32 0.0625, %v1321_v55  ;;  %vm1172_vm11 = vcmp.eq.f32.partialorder %v2278_v28, inf  ;;  %v1437_v14 = vmul.f32 0.6931472, %v1908_v18 }
 0x1a6   : > { %v1910_v30 = vpop.eup %1909  ;;  %v1325_v33 = vmul.f32 %v1279_v13, %v1279_v13  ;;  %v1119_v54 = vmul.f32 0.0625, %v1117_v4  ;;  %v1163_v0 = vmul.f32 0.0625, %v1161_v11  ;;  %1913 = vlog2.f32 %v1435_v31 }
 0x1a7   : > { %v1327_v5 = vmul.f32 %v1323_v15, %v1323_v15  ;;  %v1171_v9 = vmul.f32 %v1910_v30, %v2278_v28  ;;  %v1175_v38 = vand.u32 2147483648, %v2278_v28  ;;  %vm1174_vm12 = vcmp.eq.f32.partialorder %v2278_v28, 0.0 }
 0x1a8   : > { %v1165_v29 = vmul.f32 %v1119_v54, %v1119_v54  ;;  %v1167_v8 = vmul.f32 %v1163_v0, %v1163_v0  ;;  %vm1332_vm13 = vcmp.eq.f32.partialorder %v1328_v21, inf  ;;  %v1335_v42 = vand.u32 2147483648, %v1328_v21 }
 0x1a9   : > { %v1329_v25 = vadd.f32 %v1327_v5, %v1325_v33  ;;  %v1173_v34 = vsel %vm1172_vm11, %v2278_v28, %v1171_v9  ;;  %vm1334_vm14 = vcmp.eq.f32.partialorder %v1328_v21, 0.0  ;;  %v1440_v7 = vmul.f32 0.03, %v1437_v14 }
 0x1aa   : > { %v1169_v51 = vadd.f32 %v1167_v8, %v1165_v29  ;;  %v1176_v40 = vsel %vm1174_vm12, %v1175_v38, %v1173_v34 }
 0x1ab   : > { %1915 = vrsqrt.f32 %v1329_v25  ;;  %v1350_v46 = vmul.f32 %v1176_v40, %v1176_v40  ;;  %v1442_v48 = vmul.f32 1.442695, %v1440_v7  ;;  %vm1339_vm15 = vcmp.eq.f32.partialorder %v1329_v25, inf }
 0x1ac   : > { %1917 = vrsqrt.f32 %v1169_v51  ;;  %v1342_v28 = vand.u32 2147483648, %v1329_v25  ;;  %vm1341_vm0 = vcmp.eq.f32.partialorder %v1329_v25, 0.0  ;;  %vm1179_vm1 = vcmp.eq.f32.partialorder %v1169_v51, inf }
 0x1ad   : > { %v1182_v56 = vand.u32 2147483648, %v1169_v51  ;;  %vm1181_vm4 = vcmp.eq.f32.partialorder %v1169_v51, 0.0  ;;  %v1344_v60 = vmul.f32 2.0, %v1176_v40 }
 0x1af   : > { %v1912_v36 = vpop.eup %1911 }
 0x1b0   : > { %v1331_v39 = vmul.f32 %v1912_v36, %v1328_v21  ;;  %v1914_v27 = vpop.eup %1913 }
 0x1b1   : > { %v1439_v45 = vmul.f32 0.6931472, %v1914_v27 }
 0x1b2   : > { %v1333_v43 = vsel %vm1332_vm13, %v1328_v21, %v1331_v39 }
 0x1b3   : > { %v1336_v23 = vsel %vm1334_vm14, %v1335_v42, %v1333_v43  ;;  %v1441_v59 = vmul.f32 0.03, %v1439_v45 }
 0x1b4   : > { %v1352_v35 = vmul.f32 %v1336_v23, %v1336_v23  ;;  %v1346_v47 = vmul.f32 %v1344_v60, %v1336_v23 }
 0x1b5   : > { %v1916_v37 = vpop.eup %1915  ;;  %v1444_v41 = vmul.f32 1.442695, %v1441_v59 }
 0x1b6   : > { %v1354_v44 = vadd.f32 %v1352_v35, %v1350_v46  ;;  %v1918_v49 = vpop.eup %1917  ;;  %v1338_v50 = vmul.f32 %v1916_v37, %v1329_v25  ;;  %v1348_v1 = vadd.f32 160.0, %v1346_v47 }
 0x1b7   : > { %v1178_v53 = vmul.f32 %v1918_v49, %v1169_v51 }
 0x1b8   : > { %v1356_v52 = vadd.f32 160.0, %v1354_v44  ;;  %v1340_v16 = vsel %vm1339_vm15, %v1329_v25, %v1338_v50 }
 0x1b9   : > { %v1343_v57 = vsel %vm1341_vm0, %v1342_v28, %v1340_v16  ;;  %v1180_v32 = vsel %vm1179_vm1, %v1169_v51, %v1178_v53 }
 0x1ba   : > { %1919 = vrcp.f32 %v1356_v52  ;;  %v1353_v58 = vmul.f32 %v1343_v57, %v1343_v57  ;;  %v1183_v63 = vsel %vm1181_vm4, %v1182_v56, %v1180_v32 }
 0x1bb   : > { %1921 = vpow2.f32 %v1442_v48  ;;  %v1351_v26 = vmul.f32 %v1183_v63, %v1183_v63  ;;  %v1345_v2 = vmul.f32 2.0, %v1183_v63 }
 0x1bd   : > { %v1355_v17 = vadd.f32 %v1353_v58, %v1351_v26  ;;  %v1347_v61 = vmul.f32 %v1345_v2, %v1343_v57 }
 0x1bf   : > { %v1357_v62 = vadd.f32 160.0, %v1355_v17  ;;  %v1349_v55 = vadd.f32 160.0, %v1347_v61 }
 0x1c1   : > { %1923 = vrcp.f32 %v1357_v62 }
 0x1c2   : > { %1925 = vpow2.f32 %v1444_v41 }
 0x1c4   : > { %v1920_v6 = vpop.eup %1919 }
 0x1c5   : > { %v1359_v3 = vmul.f32 %v1920_v6, %v1348_v1  ;;  %v1922_v12 = vpop.eup %1921 }
 0x1c7   : > { %v1446_v18 = vmul.f32 %v2135_v10, %v1359_v3 }
 0x1c9   : > { %v1448_v21 = vmul.f32 %v1922_v12, %v1446_v18 }
 0x1cb   : > { %v1924_v24 = vpop.eup %1923  ;;  %v1450_v30 = vmul.f32 %v1448_v21, %v2089_v19 }
 0x1cc   : > { %v1361_v13 = vmul.f32 %v1924_v24, %v1349_v55  ;;  %v1926_v4 = vpop.eup %1925 }
 0x1cd   : > { %v1455_v33 = vsel %vm1454_vm2, %v1450_v30, 0.0 }
 0x1ce   : > { %v1447_v11 = vmul.f32 %v2139_v22, %v1361_v13 }
 0x1d0   : > { %v1449_v31 = vmul.f32 %v1926_v4, %v1447_v11 }
 0x1d2   : > { %v1451_v15 = vmul.f32 %v1449_v31, %v2091_v20 }
 0x1d4   : > { %v1456_v54 = vsel %vm1454_vm2, %v1451_v15, 0.0 }
 0x1d5   : > { %v1457_v0 = vadd.f32 %v1456_v54, %v1455_v33 }
 0x1d7   : > { %v1458_v10 = vrot.slane %v1457_v0, 4 }
 0x1d9   : > { %v1459_v5 = vadd.f32 %v1458_v10, %v1457_v0 }
 0x1db   : > { %v1460_v29 = vrot.slane %v1459_v5, 2 }
 0x1dd   : > { %v1461_v8 = vadd.f32 %v1460_v29, %v1459_v5 }
 0x1df   : > { %v1462_v9 = vrot.slane %v1461_v8, 1 }
 0x1e1   : > { %v1463_v22 = vadd.f32 %v1462_v9, %v1461_v8 }
 0x1e3   : > { %1465 = vst.msk [vmem:[%s971_s20] sm:$0x1] %vm1464_vm3, %v1463_v22 }
 0x1e4 PF: > { %s24_s23 = sadd.s32 1, %s1949_s23   ;;  %s2377_s21 = smov %s1945_s22 }
 0x1e5   : > { %p21_p5 = scmp.ge.s32.totalorder %s24_s23, 4   ;;  %s2378_s22 = smov %s2380_s24 }
 0x1e7   :  { %23 = sbr.rel (!%p21_p5) target bundleno = 2 (0x2), region = 143 }

</bundles_post_ra>
